<compile_context>
chip_gen: v6e
topology: v6e:2x2x1
jax: 0.10.0
libtpu: 0.0.40
codegen_flags: <defaults>
</compile_context>

<pallas_src>
import functools

import numpy as np
import jax
import jax.numpy as jnp
from jax import lax
from jax.experimental import pallas as pl
from jax.experimental.pallas import tpu as pltpu


# ----------------------------------------------------------------------------
# Host-side constant matrices (static per bin)
# ----------------------------------------------------------------------------
def _pool_matrix_t(H, W, b):
    """AdaptiveAvgPool2d(b) as a (b*b, H*W) matmul operand; exact when
    H % b == 0 and W % b == 0 (window weights are powers of two -> exact bf16)."""
    # TODO(synk): general AdaptiveAvgPool2d variable windows for non-divisible bins.
    wh, ww = H // b, W // b
    P = np.zeros((b * b, H * W), np.float32)
    for i in range(H):
        for j in range(W):
            P[(i // wh) * b + (j // ww), i * W + j] = 1.0 / (wh * ww)
    return P


def _interp_matrix(dst, src):
    """align_corners=True bilinear resampling matrix, (dst, src)."""
    A = np.zeros((dst, src), np.float32)
    if src == 1:
        A[:, 0] = 1.0
        return A
    for i in range(dst):
        coord = i * (src - 1) / (dst - 1) if dst > 1 else 0.0
        i0 = min(int(np.floor(coord)), src - 1)
        i1 = min(i0 + 1, src - 1)
        frac = coord - i0
        A[i, i0] += 1.0 - frac
        A[i, i1] += frac
    return A


def _upsample_matrix_t(H, W, b):
    """kron(Ah, Aw).T of shape (b*b, H*W)."""
    U = np.kron(_interp_matrix(H, b), _interp_matrix(W, b))   # (H*W, b*b)
    return np.ascontiguousarray(U.T)


def _shift_mats_stacked(b):
    """Stacked 3x3 shift matrices S (9*L, L), L=b*b, such that for y in the
    transposed (L, C) layout (S @ y)[t*L + p, c] is the zero-padded
    3x3-neighbour of pixel p at tap t (t = kh*3 + kw)."""
    L = b * b
    S = np.zeros((9 * L, L), np.float32)
    t = 0
    for dh in (-1, 0, 1):
        for dw in (-1, 0, 1):
            for pi in range(b):
                for pj in range(b):
                    qi, qj = pi + dh, pj + dw
                    if 0 <= qi < b and 0 <= qj < b:
                        S[t * L + pi * b + pj, qi * b + qj] = 1.0
            t += 1
    return S


# ----------------------------------------------------------------------------
# Kernel 1: merged PPM branches (all bins).  One grid step per batch element;
#   pool -> beg convs -> PAM & CAM -> dw 3x3 -> upsample, all in VMEM.
# ----------------------------------------------------------------------------
def _branch_kernel(*refs, nbins):
    f32, bf16 = jnp.float32, jnp.bfloat16
    x_ref = refs[0]
    bin_consts = refs[1:1 + 3 * nbins]
    (wb1_ref, bb1_ref, wb2_ref, bb2_ref, wq_ref, bq_ref, wk_ref, bk_ref,
     wv_ref, bv_ref, we1_ref, be1_ref, we2_ref, be2_ref,
     g_ref) = refs[1 + 3 * nbins:1 + 3 * nbins + 15]
    out_ref = refs[-1]

    red = wb1_ref.shape[2]
    x = x_ref[...]                                            # (Cin, HW) bf16

    def softmax_rows(e):
        e = e - jnp.max(e, axis=-1, keepdims=True)
        p = jnp.exp(e)
        return p * pl.reciprocal(jnp.sum(p, axis=-1, keepdims=True), approx=True)

    for i in range(nbins):
        pm_ref, ss_ref, ut_ref = bin_consts[3 * i:3 * i + 3]
        Lb = pm_ref.shape[0]
        ut = ut_ref[...]                                      # (Lb, HW) bf16

        # adaptive avg pool; transposed (Lb, Cin) layout -> channels lane-dense
        xf = lax.dot_general(pm_ref[...], x, (((1,), (1,)), ((), ())),
                             preferred_element_type=f32)      # (Lb, Cin)
        xf = xf.astype(bf16)

        def dwconv_bn_relu(y, we, be):
            # depthwise 3x3 (padding=1), BN scale folded into taps.  ONE stacked
            # shift matmul + per-tap VPU slice-FMA (instead of 9 tiny matmuls).
            if Lb == 1:
                acc = y * we[4:5, :]                  # only the centre tap is in-bounds
            else:
                shifted = jnp.dot(ss_ref[...], y,
                                  preferred_element_type=f32)  # (9*Lb, red)
                acc = jnp.zeros_like(y)
                for t in range(9):
                    acc = acc + shifted[t * Lb:(t + 1) * Lb, :] * we[t:t + 1, :]
            return jnp.maximum(acc + be, 0.0)

        # -------- branch A: beg conv1 -> PAM -> depthwise conv1 -> upsample ---
        xa = jnp.maximum(jnp.dot(xf, wb1_ref[i], preferred_element_type=f32)
                         + bb1_ref[i], 0.0)                    # (Lb, red) f32
        q = jnp.dot(xa, wq_ref[i], preferred_element_type=f32) + bq_ref[i]   # (Lb, cq)
        k = jnp.dot(xa, wk_ref[i], preferred_element_type=f32) + bk_ref[i]   # (Lb, cq)
        v = jnp.dot(xa, wv_ref[i], preferred_element_type=f32) + bv_ref[i]   # (Lb, red)
        energy = lax.dot_general(q, k, (((1,), (1,)), ((), ())),
                                 preferred_element_type=f32)   # (Lb, Lb)
        attn = softmax_rows(energy)
        pam = jnp.dot(attn, v, preferred_element_type=f32)     # (Lb, red)
        xa = g_ref[i, 0] * pam + xa
        xa = dwconv_bn_relu(xa, we1_ref[i], be1_ref[i])
        oa = lax.dot_general(xa.astype(bf16), ut, (((0,), (0,)), ((), ())),
                             preferred_element_type=f32)       # (red, HW)
        out_ref[pl.ds(2 * i * red, red), :] = oa.astype(out_ref.dtype)

        # -------- branch B: beg conv2 -> CAM -> depthwise conv2 -> upsample ---
        xb = jnp.maximum(jnp.dot(xf, wb2_ref[i], preferred_element_type=f32)
                         + bb2_ref[i], 0.0)                    # (Lb, red)
        eng = lax.dot_general(xb, xb, (((0,), (0,)), ((), ())),
                              preferred_element_type=f32)      # (red, red)
        attn_c = softmax_rows(jnp.max(eng, axis=-1, keepdims=True) - eng)
        cam = lax.dot_general(xb, attn_c, (((1,), (1,)), ((), ())),
                              preferred_element_type=f32)      # (Lb, red)
        xb = g_ref[i, 1] * cam + xb
        xb = dwconv_bn_relu(xb, we2_ref[i], be2_ref[i])
        ob = lax.dot_general(xb.astype(bf16), ut, (((0,), (0,)), ((), ())),
                             preferred_element_type=f32)       # (red, HW)
        out_ref[pl.ds((2 * i + 1) * red, red), :] = ob.astype(out_ref.dtype)


def ppm_branches(x_ncl, p, bins, H, W):
    """All pyramid bins fused into ONE pallas_call: x is read from HBM once and
    the concatenated [a0, b0, a1, b1, ...] branch features come back in bf16."""
    N, Cin, HW = x_ncl.shape
    nbins = len(bins)
    red = p['wb1'].shape[2]
    Ctot = 2 * nbins * red

    c2 = lambda n: (0, 0)
    consts, const_specs = [], []
    for b in bins:
        Lb = b * b
        consts += [jnp.asarray(_pool_matrix_t(H, W, b), jnp.bfloat16),   # (Lb, HW)
                   jnp.asarray(_shift_mats_stacked(b), jnp.float32),     # (9Lb, Lb)
                   jnp.asarray(_upsample_matrix_t(H, W, b), jnp.bfloat16)]  # (Lb, HW)
        const_specs += [pl.BlockSpec((Lb, HW), c2),
                        pl.BlockSpec((9 * Lb, Lb), c2),
                        pl.BlockSpec((Lb, HW), c2)]

    w_names = ('wb1', 'bb1', 'wb2', 'bb2', 'wq', 'bq', 'wk', 'bk',
               'wv', 'bv', 'we1', 'be1', 'we2', 'be2')
    weights = [p[nm] for nm in w_names]
    w_specs = [pl.BlockSpec(w.shape, lambda n: (0, 0, 0)) for w in weights]

    return pl.pallas_call(
        functools.partial(_branch_kernel, nbins=nbins),
        out_shape=jax.ShapeDtypeStruct((N, Ctot, HW), jnp.bfloat16),
        grid=(N,),
        in_specs=([pl.BlockSpec((None, Cin, HW), lambda n: (n, 0, 0))]   # x (bf16)
                  + const_specs + w_specs
                  + [pl.BlockSpec(memory_space=pltpu.MemorySpace.SMEM)]),  # gammas
        out_specs=pl.BlockSpec((None, Ctot, HW), lambda n: (n, 0, 0)),
        compiler_params=pltpu.CompilerParams(dimension_semantics=("parallel",)),
    )(x_ncl, *consts, *weights, p['gammas'])


# ----------------------------------------------------------------------------
# Kernel 2: final fuse 1x1 conv + BN + ReLU.  Weight split per operand (x chunk
#   + branch chunk) => no HBM concatenate; bf16 MXU operands; HW-tiled grid.
# ----------------------------------------------------------------------------
def _fuse_kernel(x_ref, br_ref, wx_ref, wbr_ref, b_ref, o_ref):
    f32 = jnp.float32
    acc = jnp.dot(wx_ref[...], x_ref[...], preferred_element_type=f32)
    acc = acc + jnp.dot(wbr_ref[...], br_ref[...], preferred_element_type=f32)
    o_ref[...] = jnp.maximum(acc + b_ref[...], 0.0)


def _pick_hw_tile(HW, max_tile=2048):
    """Largest 128-aligned divisor of HW <= max_tile (falls back to full HW)."""
    if HW <= max_tile:
        return HW
    for t in range(max_tile - max_tile % 128, 127, -128):
        if HW % t == 0:
            return t
    return HW   # TODO(synk): remainder tiles for HW not 128-divisible.


def fuse_conv(x_ncl, feats, wx, wbr, bias):
    N, Cin, HW = x_ncl.shape
    Ctot = feats.shape[1]
    out_dim = bias.shape[0]
    hw_tile = _pick_hw_tile(HW)
    n_hw = HW // hw_tile

    return pl.pallas_call(
        _fuse_kernel,
        out_shape=jax.ShapeDtypeStruct((N, out_dim, HW), jnp.float32),
        grid=(N, n_hw),
        in_specs=[
            pl.BlockSpec((None, Cin, hw_tile), lambda n, h: (n, 0, h)),    # x (bf16)
            pl.BlockSpec((None, Ctot, hw_tile), lambda n, h: (n, 0, h)),   # branches (bf16)
            pl.BlockSpec((out_dim, Cin), lambda n, h: (0, 0)),             # wf_x (bf16)
            pl.BlockSpec((out_dim, Ctot), lambda n, h: (0, 0)),            # wf_br (bf16)
            pl.BlockSpec((out_dim, 1), lambda n, h: (0, 0)),               # bias (f32)
        ],
        out_specs=pl.BlockSpec((None, out_dim, hw_tile), lambda n, h: (n, 0, h)),
        compiler_params=pltpu.CompilerParams(
            dimension_semantics=("parallel", "parallel")),
    )(x_ncl, feats, wx, wbr, bias)


# ----------------------------------------------------------------------------
# Parameters (deterministic synthetic init; eval-mode BN folded; transposed and
#   stacked per bin; weights feeding big MXU dots stored in bf16)
# ----------------------------------------------------------------------------
def init_params(key, in_dim, red, out_dim, bins):
    nbins = len(bins)
    keys = iter(jax.random.split(key, 128))
    nk = lambda: next(keys)
    f32, bf16 = jnp.float32, jnp.bfloat16

    def bn(c):
        s = 0.5 + jax.random.uniform(nk(), (c,), f32)
        b = 0.1 * jax.random.normal(nk(), (c,), f32)
        return s, b

    cq = max(red // 8, 1)
    acc = {nm: [] for nm in ('wb1', 'bb1', 'wb2', 'bb2', 'wq', 'bq', 'wk', 'bk',
                             'wv', 'bv', 'we1', 'be1', 'we2', 'be2', 'gammas')}
    for _ in bins:
        w1 = 0.2 * jax.random.normal(nk(), (red, in_dim), f32)
        s1, b1 = bn(red)
        acc['wb1'].append((w1 * s1[:, None]).T)                 # (Cin, red)
        acc['bb1'].append(b1[None, :])                          # (1, red)
        w2 = 0.2 * jax.random.normal(nk(), (red, in_dim), f32)
        s2, b2 = bn(red)
        acc['wb2'].append((w2 * s2[:, None]).T)
        acc['bb2'].append(b2[None, :])
        acc['wq'].append(0.2 * jax.random.normal(nk(), (cq, red), f32).T)   # (red, cq)
        acc['bq'].append(0.1 * jax.random.normal(nk(), (cq,), f32)[None, :])
        acc['wk'].append(0.2 * jax.random.normal(nk(), (cq, red), f32).T)
        acc['bk'].append(0.1 * jax.random.normal(nk(), (cq,), f32)[None, :])
        acc['wv'].append(0.2 * jax.random.normal(nk(), (red, red), f32).T)  # (red, red)
        acc['bv'].append(0.1 * jax.random.normal(nk(), (red,), f32)[None, :])
        we1 = 0.2 * jax.random.normal(nk(), (red, 3, 3), f32)
        se1, sb1 = bn(red)
        acc['we1'].append((we1 * se1[:, None, None]).reshape(red, 9).T)     # (9, red)
        acc['be1'].append(sb1[None, :])
        we2 = 0.2 * jax.random.normal(nk(), (red, 3, 3), f32)
        se2, sb2 = bn(red)
        acc['we2'].append((we2 * se2[:, None, None]).reshape(red, 9).T)
        acc['be2'].append(sb2[None, :])
        # PyTorch inits gamma = 0; use a nonzero deterministic value so the
        # attention paths are numerically exercised.  [gamma_pam, gamma_cam]
        acc['gammas'].append(jnp.array([0.1, 0.1], f32))

    params = {nm: jnp.stack(v) for nm, v in acc.items()}
    params['wb1'] = params['wb1'].astype(bf16)
    params['wb2'] = params['wb2'].astype(bf16)

    ccat = in_dim + 2 * red * nbins
    wf = 0.2 * jax.random.normal(nk(), (out_dim, ccat), f32)
    sf, bfv = bn(out_dim)
    wf = wf * sf[:, None]
    # split along the concat axis: [x | a0, b0, a1, b1, ...]
    params['wf_x'] = wf[:, :in_dim].astype(bf16)
    params['wf_br'] = wf[:, in_dim:].astype(bf16)
    params['bf'] = bfv[:, None]
    return params


# ----------------------------------------------------------------------------
# Forward (matches Attention_PPM.forward; NCHW in/out, zero transposes)
# ----------------------------------------------------------------------------
def attention_ppm_forward(x_nchw, params, bins):
    N, Cin, H, W = x_nchw.shape
    x_ncl = x_nchw.reshape(N, Cin, H * W).astype(jnp.bfloat16)     # bf16 MXU/HBM path
    feats = ppm_branches(x_ncl, params, bins, H, W)                # (N, 2*nbins*red, HW) bf16
    out = fuse_conv(x_ncl, feats, params['wf_x'], params['wf_br'], params['bf'])
    return out.reshape(N, out.shape[1], H, W)


if __name__ == "__main__":
    in_dim, reduction_dim, out_dim = 4, 16, 16
    bins = (1, 2, 4)
    N, H, W = 2, 16, 16

    key = jax.random.PRNGKey(0)
    kx, kp = jax.random.split(key)
    x = jax.random.normal(kx, (N, in_dim, H, W), jnp.float32)       # NCHW, like PyTorch
    params = init_params(kp, in_dim, reduction_dim, out_dim, bins)

    fwd = jax.jit(lambda inp: attention_ppm_forward(inp, params, bins))
    out = jax.block_until_ready(fwd(x))
    assert out.shape == (N, out_dim, H, W)
    assert bool(jnp.all(jnp.isfinite(out)))
    print("KERNEL_OK")
</pallas_src>

<mosaic_0001>
module attributes {stable_mosaic.version = 11 : i64} {
  func.func @_fuse_kernel(%arg0: i32, %arg1: i32, %arg2: memref<1x4x256xbf16, #tpu.memory_space<vmem>>, %arg3: memref<1x96x256xbf16, #tpu.memory_space<vmem>>, %arg4: memref<16x4xbf16, #tpu.memory_space<vmem>>, %arg5: memref<16x96xbf16, #tpu.memory_space<vmem>>, %arg6: memref<16x1xf32, #tpu.memory_space<vmem>>, %arg7: memref<1x16x256xf32, #tpu.memory_space<vmem>>) attributes {dimension_semantics = [#tpu.dimension_semantics<parallel>, #tpu.dimension_semantics<parallel>], iteration_bounds = array<i64: 2, 1>, scalar_prefetch = 0 : i64, scratch_operands = 0 : i64, tpu.core_type = #tpu.core_type<tc>, window_params = [{transform_indices = @transform_0, window_bounds = array<i64: 1, 4, 256>}, {transform_indices = @transform_1, window_bounds = array<i64: 1, 96, 256>}, {pipeline_mode = #tpu.pipeline_mode<synchronous>, transform_indices = @transform_2, window_bounds = array<i64: 16, 4>}, {pipeline_mode = #tpu.pipeline_mode<synchronous>, transform_indices = @transform_3, window_bounds = array<i64: 16, 96>}, {pipeline_mode = #tpu.pipeline_mode<synchronous>, transform_indices = @transform_4, window_bounds = array<i64: 16, 1>}, {transform_indices = @transform_5, window_bounds = array<i64: 1, 16, 256>}]} {
    %c0 = arith.constant 0 : index
    %c0_0 = arith.constant 0 : index
    %0 = vector.load %arg4[%c0, %c0_0] : memref<16x4xbf16, #tpu.memory_space<vmem>>, vector<16x4xbf16>
    %c0_1 = arith.constant 0 : index
    %c0_2 = arith.constant 0 : index
    %c0_3 = arith.constant 0 : index
    %1 = vector.load %arg2[%c0_1, %c0_2, %c0_3] : memref<1x4x256xbf16, #tpu.memory_space<vmem>>, vector<1x4x256xbf16>
    %2 = vector.shape_cast %1 : vector<1x4x256xbf16> to vector<4x256xbf16>
    %cst = arith.constant dense<0.000000e+00> : vector<16x256xf32>
    %3 = tpu.matmul %0, %2, %cst {dimension_numbers = #tpu.dot_dimension_numbers<[1], [0], [0], [1], [0, 0, 1, 1], [], []>} : vector<16x4xbf16>, vector<4x256xbf16>, vector<16x256xf32> -> vector<16x256xf32>
    %c0_4 = arith.constant 0 : index
    %c0_5 = arith.constant 0 : index
    %4 = vector.load %arg5[%c0_4, %c0_5] : memref<16x96xbf16, #tpu.memory_space<vmem>>, vector<16x96xbf16>
    %c0_6 = arith.constant 0 : index
    %c0_7 = arith.constant 0 : index
    %c0_8 = arith.constant 0 : index
    %5 = vector.load %arg3[%c0_6, %c0_7, %c0_8] : memref<1x96x256xbf16, #tpu.memory_space<vmem>>, vector<1x96x256xbf16>
    %6 = vector.shape_cast %5 : vector<1x96x256xbf16> to vector<96x256xbf16>
    %cst_9 = arith.constant dense<0.000000e+00> : vector<16x256xf32>
    %7 = tpu.matmul %4, %6, %cst_9 {dimension_numbers = #tpu.dot_dimension_numbers<[1], [0], [0], [1], [0, 0, 1, 1], [], []>} : vector<16x96xbf16>, vector<96x256xbf16>, vector<16x256xf32> -> vector<16x256xf32>
    %8 = arith.addf %3, %7 : vector<16x256xf32>
    %c0_10 = arith.constant 0 : index
    %c0_11 = arith.constant 0 : index
    %9 = vector.load %arg6[%c0_10, %c0_11] : memref<16x1xf32, #tpu.memory_space<vmem>>, vector<16x1xf32>
    %10 = vector.broadcast %9 : vector<16x1xf32> to vector<16x256xf32>
    %11 = arith.addf %8, %10 : vector<16x256xf32>
    %cst_12 = arith.constant 0.000000e+00 : f32
    %12 = vector.broadcast %cst_12 : f32 to vector<16x256xf32>
    %13 = arith.maximumf %11, %12 : vector<16x256xf32>
    %c0_13 = arith.constant 0 : index
    %c0_14 = arith.constant 0 : index
    %c0_15 = arith.constant 0 : index
    %14 = vector.load %arg7[%c0_13, %c0_14, %c0_15] : memref<1x16x256xf32, #tpu.memory_space<vmem>>, vector<1x16x256xf32>
    %15 = vector.shape_cast %14 : vector<1x16x256xf32> to vector<16x256xf32>
    %16 = vector.shape_cast %13 : vector<16x256xf32> to vector<1x16x256xf32>
    tpu.vector_store %arg7[%c0_13, %c0_14, %c0_15], %16 {strides = array<i32>} : memref<1x16x256xf32, #tpu.memory_space<vmem>>, vector<1x16x256xf32>,
    return
  }
  func.func @transform_0(%arg0: i32, %arg1: i32) -> (i32, i32, i32) {
    %c0_i32 = arith.constant 0 : i32
    %c0_i32_0 = arith.constant 0 : i32
    return %arg0, %c0_i32, %arg1 : i32, i32, i32
  }
  func.func @transform_1(%arg0: i32, %arg1: i32) -> (i32, i32, i32) {
    %c0_i32 = arith.constant 0 : i32
    %c0_i32_0 = arith.constant 0 : i32
    return %arg0, %c0_i32, %arg1 : i32, i32, i32
  }
  func.func @transform_2(%arg0: i32, %arg1: i32) -> (i32, i32) {
    %c0_i32 = arith.constant 0 : i32
    %c0_i32_0 = arith.constant 0 : i32
    %c0_i32_1 = arith.constant 0 : i32
    return %c0_i32, %c0_i32_0 : i32, i32
  }
  func.func @transform_3(%arg0: i32, %arg1: i32) -> (i32, i32) {
    %c0_i32 = arith.constant 0 : i32
    %c0_i32_0 = arith.constant 0 : i32
    %c0_i32_1 = arith.constant 0 : i32
    return %c0_i32, %c0_i32_0 : i32, i32
  }
  func.func @transform_4(%arg0: i32, %arg1: i32) -> (i32, i32) {
    %c0_i32 = arith.constant 0 : i32
    %c0_i32_0 = arith.constant 0 : i32
    %c0_i32_1 = arith.constant 0 : i32
    return %c0_i32, %c0_i32_0 : i32, i32
  }
  func.func @transform_5(%arg0: i32, %arg1: i32) -> (i32, i32, i32) {
    %c0_i32 = arith.constant 0 : i32
    %c0_i32_0 = arith.constant 0 : i32
    return %arg0, %c0_i32, %arg1 : i32, i32, i32
  }
}

module attributes {stable_mosaic.version = 11 : i64} {
  func.func @_branch_kernel(%arg0: i32, %arg1: memref<1x4x256xbf16, #tpu.memory_space<vmem>>, %arg2: memref<1x256xbf16, #tpu.memory_space<vmem>>, %arg3: memref<9x1xf32, #tpu.memory_space<vmem>>, %arg4: memref<1x256xbf16, #tpu.memory_space<vmem>>, %arg5: memref<4x256xbf16, #tpu.memory_space<vmem>>, %arg6: memref<36x4xf32, #tpu.memory_space<vmem>>, %arg7: memref<4x256xbf16, #tpu.memory_space<vmem>>, %arg8: memref<16x256xbf16, #tpu.memory_space<vmem>>, %arg9: memref<144x16xf32, #tpu.memory_space<vmem>>, %arg10: memref<16x256xbf16, #tpu.memory_space<vmem>>, %arg11: memref<3x4x16xbf16, #tpu.memory_space<vmem>>, %arg12: memref<3x1x16xf32, #tpu.memory_space<vmem>>, %arg13: memref<3x4x16xbf16, #tpu.memory_space<vmem>>, %arg14: memref<3x1x16xf32, #tpu.memory_space<vmem>>, %arg15: memref<3x16x2xf32, #tpu.memory_space<vmem>>, %arg16: memref<3x1x2xf32, #tpu.memory_space<vmem>>, %arg17: memref<3x16x2xf32, #tpu.memory_space<vmem>>, %arg18: memref<3x1x2xf32, #tpu.memory_space<vmem>>, %arg19: memref<3x16x16xf32, #tpu.memory_space<vmem>>, %arg20: memref<3x1x16xf32, #tpu.memory_space<vmem>>, %arg21: memref<3x9x16xf32, #tpu.memory_space<vmem>>, %arg22: memref<3x1x16xf32, #tpu.memory_space<vmem>>, %arg23: memref<3x9x16xf32, #tpu.memory_space<vmem>>, %arg24: memref<3x1x16xf32, #tpu.memory_space<vmem>>, %arg25: memref<3x2xf32, #tpu.memory_space<smem>>, %arg26: memref<1x96x256xbf16, #tpu.memory_space<vmem>>) attributes {dimension_semantics = [#tpu.dimension_semantics<parallel>], iteration_bounds = array<i64: 2>, scalar_prefetch = 0 : i64, scratch_operands = 0 : i64, tpu.core_type = #tpu.core_type<tc>, window_params = [{transform_indices = @transform_0, window_bounds = array<i64: 1, 4, 256>}, {pipeline_mode = #tpu.pipeline_mode<synchronous>, transform_indices = @transform_1, window_bounds = array<i64: 1, 256>}, {pipeline_mode = #tpu.pipeline_mode<synchronous>, transform_indices = @transform_2, window_bounds = array<i64: 9, 1>}, {pipeline_mode = #tpu.pipeline_mode<synchronous>, transform_indices = @transform_3, window_bounds = array<i64: 1, 256>}, {pipeline_mode = #tpu.pipeline_mode<synchronous>, transform_indices = @transform_4, window_bounds = array<i64: 4, 256>}, {pipeline_mode = #tpu.pipeline_mode<synchronous>, transform_indices = @transform_5, window_bounds = array<i64: 36, 4>}, {pipeline_mode = #tpu.pipeline_mode<synchronous>, transform_indices = @transform_6, window_bounds = array<i64: 4, 256>}, {pipeline_mode = #tpu.pipeline_mode<synchronous>, transform_indices = @transform_7, window_bounds = array<i64: 16, 256>}, {pipeline_mode = #tpu.pipeline_mode<synchronous>, transform_indices = @transform_8, window_bounds = array<i64: 144, 16>}, {pipeline_mode = #tpu.pipeline_mode<synchronous>, transform_indices = @transform_9, window_bounds = array<i64: 16, 256>}, {pipeline_mode = #tpu.pipeline_mode<synchronous>, transform_indices = @transform_10, window_bounds = array<i64: 3, 4, 16>}, {pipeline_mode = #tpu.pipeline_mode<synchronous>, transform_indices = @transform_11, window_bounds = array<i64: 3, 1, 16>}, {pipeline_mode = #tpu.pipeline_mode<synchronous>, transform_indices = @transform_12, window_bounds = array<i64: 3, 4, 16>}, {pipeline_mode = #tpu.pipeline_mode<synchronous>, transform_indices = @transform_13, window_bounds = array<i64: 3, 1, 16>}, {pipeline_mode = #tpu.pipeline_mode<synchronous>, transform_indices = @transform_14, window_bounds = array<i64: 3, 16, 2>}, {pipeline_mode = #tpu.pipeline_mode<synchronous>, transform_indices = @transform_15, window_bounds = array<i64: 3, 1, 2>}, {pipeline_mode = #tpu.pipeline_mode<synchronous>, transform_indices = @transform_16, window_bounds = array<i64: 3, 16, 2>}, {pipeline_mode = #tpu.pipeline_mode<synchronous>, transform_indices = @transform_17, window_bounds = array<i64: 3, 1, 2>}, {pipeline_mode = #tpu.pipeline_mode<synchronous>, transform_indices = @transform_18, window_bounds = array<i64: 3, 16, 16>}, {pipeline_mode = #tpu.pipeline_mode<synchronous>, transform_indices = @transform_19, window_bounds = array<i64: 3, 1, 16>}, {pipeline_mode = #tpu.pipeline_mode<synchronous>, transform_indices = @transform_20, window_bounds = array<i64: 3, 9, 16>}, {pipeline_mode = #tpu.pipeline_mode<synchronous>, transform_indices = @transform_21, window_bounds = array<i64: 3, 1, 16>}, {pipeline_mode = #tpu.pipeline_mode<synchronous>, transform_indices = @transform_22, window_bounds = array<i64: 3, 9, 16>}, {pipeline_mode = #tpu.pipeline_mode<synchronous>, transform_indices = @transform_23, window_bounds = array<i64: 3, 1, 16>}, {transform_indices = @transform_24, window_bounds = array<i64: 3, 2>}, {transform_indices = @transform_25, window_bounds = array<i64: 1, 96, 256>}]} {
    %c0 = arith.constant 0 : index
    %c0_0 = arith.constant 0 : index
    %c0_1 = arith.constant 0 : index
    %0 = vector.load %arg1[%c0, %c0_0, %c0_1] : memref<1x4x256xbf16, #tpu.memory_space<vmem>>, vector<1x4x256xbf16>
    %1 = vector.shape_cast %0 : vector<1x4x256xbf16> to vector<4x256xbf16>
    %c0_2 = arith.constant 0 : index
    %c0_3 = arith.constant 0 : index
    %2 = vector.load %arg4[%c0_2, %c0_3] : memref<1x256xbf16, #tpu.memory_space<vmem>>, vector<1x256xbf16>
    %c0_4 = arith.constant 0 : index
    %c0_5 = arith.constant 0 : index
    %3 = vector.load %arg2[%c0_4, %c0_5] : memref<1x256xbf16, #tpu.memory_space<vmem>>, vector<1x256xbf16>
    %cst = arith.constant dense<0.000000e+00> : vector<1x4xf32>
    %4 = tpu.matmul %3, %1, %cst {dimension_numbers = #tpu.dot_dimension_numbers<[1], [1], [0], [0], [0, 0, 1, 0], [], []>} : vector<1x256xbf16>, vector<4x256xbf16>, vector<1x4xf32> -> vector<1x4xf32>
    %5 = arith.truncf %4 : vector<1x4xf32> to vector<1x4xbf16>
    %c0_6 = arith.constant 0 : index
    %c0_7 = arith.constant 0 : index
    %c0_8 = arith.constant 0 : index
    %6 = vector.load %arg11[%c0_6, %c0_7, %c0_8] : memref<3x4x16xbf16, #tpu.memory_space<vmem>>, vector<1x4x16xbf16>
    %7 = vector.shape_cast %6 : vector<1x4x16xbf16> to vector<4x16xbf16>
    %cst_9 = arith.constant dense<0.000000e+00> : vector<1x16xf32>
    %8 = tpu.matmul %5, %7, %cst_9 {dimension_numbers = #tpu.dot_dimension_numbers<[1], [0], [0], [1], [0, 0, 1, 1], [], []>} : vector<1x4xbf16>, vector<4x16xbf16>, vector<1x16xf32> -> vector<1x16xf32>
    %c0_10 = arith.constant 0 : index
    %c0_11 = arith.constant 0 : index
    %c0_12 = arith.constant 0 : index
    %9 = vector.load %arg12[%c0_10, %c0_11, %c0_12] : memref<3x1x16xf32, #tpu.memory_space<vmem>>, vector<1x1x16xf32>
    %10 = vector.shape_cast %9 : vector<1x1x16xf32> to vector<1x16xf32>
    %11 = arith.addf %8, %10 : vector<1x16xf32>
    %cst_13 = arith.constant 0.000000e+00 : f32
    %12 = vector.broadcast %cst_13 : f32 to vector<1x16xf32>
    %13 = arith.maximumf %11, %12 : vector<1x16xf32>
    %c0_14 = arith.constant 0 : index
    %c0_15 = arith.constant 0 : index
    %c0_16 = arith.constant 0 : index
    %14 = vector.load %arg15[%c0_14, %c0_15, %c0_16] : memref<3x16x2xf32, #tpu.memory_space<vmem>>, vector<1x16x2xf32>
    %15 = vector.shape_cast %14 : vector<1x16x2xf32> to vector<16x2xf32>
    %cst_17 = arith.constant dense<0.000000e+00> : vector<1x2xf32>
    %16 = tpu.matmul %13, %15, %cst_17 {dimension_numbers = #tpu.dot_dimension_numbers<[1], [0], [0], [1], [0, 0, 1, 1], [], []>} : vector<1x16xf32>, vector<16x2xf32>, vector<1x2xf32> -> vector<1x2xf32>
    %c0_18 = arith.constant 0 : index
    %c0_19 = arith.constant 0 : index
    %c0_20 = arith.constant 0 : index
    %17 = vector.load %arg16[%c0_18, %c0_19, %c0_20] : memref<3x1x2xf32, #tpu.memory_space<vmem>>, vector<1x1x2xf32>
    %18 = vector.shape_cast %17 : vector<1x1x2xf32> to vector<1x2xf32>
    %19 = arith.addf %16, %18 : vector<1x2xf32>
    %c0_21 = arith.constant 0 : index
    %c0_22 = arith.constant 0 : index
    %c0_23 = arith.constant 0 : index
    %20 = vector.load %arg17[%c0_21, %c0_22, %c0_23] : memref<3x16x2xf32, #tpu.memory_space<vmem>>, vector<1x16x2xf32>
    %21 = vector.shape_cast %20 : vector<1x16x2xf32> to vector<16x2xf32>
    %cst_24 = arith.constant dense<0.000000e+00> : vector<1x2xf32>
    %22 = tpu.matmul %13, %21, %cst_24 {dimension_numbers = #tpu.dot_dimension_numbers<[1], [0], [0], [1], [0, 0, 1, 1], [], []>} : vector<1x16xf32>, vector<16x2xf32>, vector<1x2xf32> -> vector<1x2xf32>
    %c0_25 = arith.constant 0 : index
    %c0_26 = arith.constant 0 : index
    %c0_27 = arith.constant 0 : index
    %23 = vector.load %arg18[%c0_25, %c0_26, %c0_27] : memref<3x1x2xf32, #tpu.memory_space<vmem>>, vector<1x1x2xf32>
    %24 = vector.shape_cast %23 : vector<1x1x2xf32> to vector<1x2xf32>
    %25 = arith.addf %22, %24 : vector<1x2xf32>
    %c0_28 = arith.constant 0 : index
    %c0_29 = arith.constant 0 : index
    %c0_30 = arith.constant 0 : index
    %26 = vector.load %arg19[%c0_28, %c0_29, %c0_30] : memref<3x16x16xf32, #tpu.memory_space<vmem>>, vector<1x16x16xf32>
    %27 = vector.shape_cast %26 : vector<1x16x16xf32> to vector<16x16xf32>
    %cst_31 = arith.constant dense<0.000000e+00> : vector<1x16xf32>
    %28 = tpu.matmul %13, %27, %cst_31 {dimension_numbers = #tpu.dot_dimension_numbers<[1], [0], [0], [1], [0, 0, 1, 1], [], []>} : vector<1x16xf32>, vector<16x16xf32>, vector<1x16xf32> -> vector<1x16xf32>
    %c0_32 = arith.constant 0 : index
    %c0_33 = arith.constant 0 : index
    %c0_34 = arith.constant 0 : index
    %29 = vector.load %arg20[%c0_32, %c0_33, %c0_34] : memref<3x1x16xf32, #tpu.memory_space<vmem>>, vector<1x1x16xf32>
    %30 = vector.shape_cast %29 : vector<1x1x16xf32> to vector<1x16xf32>
    %31 = arith.addf %28, %30 : vector<1x16xf32>
    %cst_35 = arith.constant dense<0.000000e+00> : vector<1x1xf32>
    %32 = tpu.matmul %19, %25, %cst_35 {dimension_numbers = #tpu.dot_dimension_numbers<[1], [1], [0], [0], [0, 0, 1, 0], [], []>} : vector<1x2xf32>, vector<1x2xf32>, vector<1x1xf32> -> vector<1x1xf32>
    %cst_36 = arith.constant dense<0xFF800000> : vector<1xf32>
    %33 = vector.multi_reduction <maximumf>, %32, %cst_36 [1] : vector<1x1xf32> to vector<1xf32>
    %34 = vector.shape_cast %33 : vector<1xf32> to vector<1x1xf32>
    %35 = arith.subf %32, %34 : vector<1x1xf32>
    %36 = math.exp %35 : vector<1x1xf32>
    %cst_37 = arith.constant dense<0.000000e+00> : vector<1xf32>
    %37 = vector.multi_reduction <add>, %36, %cst_37 [1] : vector<1x1xf32> to vector<1xf32>
    %38 = vector.shape_cast %37 : vector<1xf32> to vector<1x1xf32>
    %39 = tpu.reciprocal %38 {approx = true} : vector<1x1xf32> -> vector<1x1xf32>
    %40 = arith.mulf %36, %39 : vector<1x1xf32>
    %cst_38 = arith.constant dense<0.000000e+00> : vector<1x16xf32>
    %41 = tpu.matmul %40, %31, %cst_38 {dimension_numbers = #tpu.dot_dimension_numbers<[1], [0], [0], [1], [0, 0, 1, 1], [], []>} : vector<1x1xf32>, vector<1x16xf32>, vector<1x16xf32> -> vector<1x16xf32>
    %c0_39 = arith.constant 0 : index
    %c0_40 = arith.constant 0 : index
    %42 = memref.load %arg25[%c0_39, %c0_40] : memref<3x2xf32, #tpu.memory_space<smem>>
    %43 = vector.broadcast %42 : f32 to vector<1x16xf32>
    %44 = arith.mulf %43, %41 : vector<1x16xf32>
    %45 = arith.addf %44, %13 : vector<1x16xf32>
    %c0_41 = arith.constant 0 : index
    %c0_42 = arith.constant 0 : index
    %c0_43 = arith.constant 0 : index
    %46 = vector.load %arg21[%c0_41, %c0_42, %c0_43] : memref<3x9x16xf32, #tpu.memory_space<vmem>>, vector<1x9x16xf32>
    %47 = vector.shape_cast %46 : vector<1x9x16xf32> to vector<9x16xf32>
    %c0_44 = arith.constant 0 : index
    %c0_45 = arith.constant 0 : index
    %c0_46 = arith.constant 0 : index
    %48 = vector.load %arg22[%c0_44, %c0_45, %c0_46] : memref<3x1x16xf32, #tpu.memory_space<vmem>>, vector<1x1x16xf32>
    %49 = vector.shape_cast %48 : vector<1x1x16xf32> to vector<1x16xf32>
    %50 = vector.extract_strided_slice %47 {offsets = [4, 0], sizes = [1, 16], strides = [1, 1]} : vector<9x16xf32> to vector<1x16xf32>
    %51 = arith.mulf %45, %50 : vector<1x16xf32>
    %52 = arith.addf %51, %49 : vector<1x16xf32>
    %cst_47 = arith.constant 0.000000e+00 : f32
    %53 = vector.broadcast %cst_47 : f32 to vector<1x16xf32>
    %54 = arith.maximumf %52, %53 : vector<1x16xf32>
    %55 = arith.truncf %54 : vector<1x16xf32> to vector<1x16xbf16>
    %cst_48 = arith.constant dense<0.000000e+00> : vector<16x256xf32>
    %56 = tpu.matmul %55, %2, %cst_48 {dimension_numbers = #tpu.dot_dimension_numbers<[0], [0], [1], [1], [0, 1, 1, 1], [], []>} : vector<1x16xbf16>, vector<1x256xbf16>, vector<16x256xf32> -> vector<16x256xf32>
    %57 = arith.truncf %56 : vector<16x256xf32> to vector<16x256xbf16>
    %c0_49 = arith.constant 0 : index
    %c0_50 = arith.constant 0 : index
    %c0_51 = arith.constant 0 : index
    %58 = vector.load %arg26[%c0_49, %c0_50, %c0_51] : memref<1x96x256xbf16, #tpu.memory_space<vmem>>, vector<1x16x256xbf16>
    %59 = vector.shape_cast %58 : vector<1x16x256xbf16> to vector<16x256xbf16>
    %60 = vector.shape_cast %57 : vector<16x256xbf16> to vector<1x16x256xbf16>
    tpu.vector_store %arg26[%c0_49, %c0_50, %c0_51], %60 {strides = array<i32>} : memref<1x96x256xbf16, #tpu.memory_space<vmem>>, vector<1x16x256xbf16>,
    %c0_52 = arith.constant 0 : index
    %c0_53 = arith.constant 0 : index
    %c0_54 = arith.constant 0 : index
    %61 = vector.load %arg13[%c0_52, %c0_53, %c0_54] : memref<3x4x16xbf16, #tpu.memory_space<vmem>>, vector<1x4x16xbf16>
    %62 = vector.shape_cast %61 : vector<1x4x16xbf16> to vector<4x16xbf16>
    %cst_55 = arith.constant dense<0.000000e+00> : vector<1x16xf32>
    %63 = tpu.matmul %5, %62, %cst_55 {dimension_numbers = #tpu.dot_dimension_numbers<[1], [0], [0], [1], [0, 0, 1, 1], [], []>} : vector<1x4xbf16>, vector<4x16xbf16>, vector<1x16xf32> -> vector<1x16xf32>
    %c0_56 = arith.constant 0 : index
    %c0_57 = arith.constant 0 : index
    %c0_58 = arith.constant 0 : index
    %64 = vector.load %arg14[%c0_56, %c0_57, %c0_58] : memref<3x1x16xf32, #tpu.memory_space<vmem>>, vector<1x1x16xf32>
    %65 = vector.shape_cast %64 : vector<1x1x16xf32> to vector<1x16xf32>
    %66 = arith.addf %63, %65 : vector<1x16xf32>
    %cst_59 = arith.constant 0.000000e+00 : f32
    %67 = vector.broadcast %cst_59 : f32 to vector<1x16xf32>
    %68 = arith.maximumf %66, %67 : vector<1x16xf32>
    %cst_60 = arith.constant dense<0.000000e+00> : vector<16x16xf32>
    %69 = tpu.matmul %68, %68, %cst_60 {dimension_numbers = #tpu.dot_dimension_numbers<[0], [0], [1], [1], [0, 1, 1, 1], [], []>} : vector<1x16xf32>, vector<1x16xf32>, vector<16x16xf32> -> vector<16x16xf32>
    %cst_61 = arith.constant dense<0xFF800000> : vector<16xf32>
    %70 = vector.multi_reduction <maximumf>, %69, %cst_61 [1] : vector<16x16xf32> to vector<16xf32>
    %71 = vector.shape_cast %70 : vector<16xf32> to vector<16x1xf32>
    %72 = vector.broadcast %71 : vector<16x1xf32> to vector<16x16xf32>
    %73 = arith.subf %72, %69 : vector<16x16xf32>
    %cst_62 = arith.constant dense<0xFF800000> : vector<16xf32>
    %74 = vector.multi_reduction <maximumf>, %73, %cst_62 [1] : vector<16x16xf32> to vector<16xf32>
    %75 = vector.shape_cast %74 : vector<16xf32> to vector<16x1xf32>
    %76 = vector.broadcast %75 : vector<16x1xf32> to vector<16x16xf32>
    %77 = arith.subf %73, %76 : vector<16x16xf32>
    %78 = math.exp %77 : vector<16x16xf32>
    %cst_63 = arith.constant dense<0.000000e+00> : vector<16xf32>
    %79 = vector.multi_reduction <add>, %78, %cst_63 [1] : vector<16x16xf32> to vector<16xf32>
    %80 = vector.shape_cast %79 : vector<16xf32> to vector<16x1xf32>
    %81 = tpu.reciprocal %80 {approx = true} : vector<16x1xf32> -> vector<16x1xf32>
    %82 = vector.broadcast %81 : vector<16x1xf32> to vector<16x16xf32>
    %83 = arith.mulf %78, %82 : vector<16x16xf32>
    %cst_64 = arith.constant dense<0.000000e+00> : vector<1x16xf32>
    %84 = tpu.matmul %68, %83, %cst_64 {dimension_numbers = #tpu.dot_dimension_numbers<[1], [1], [0], [0], [0, 0, 1, 0], [], []>} : vector<1x16xf32>, vector<16x16xf32>, vector<1x16xf32> -> vector<1x16xf32>
    %c0_65 = arith.constant 0 : index
    %c1 = arith.constant 1 : index
    %85 = memref.load %arg25[%c0_65, %c1] : memref<3x2xf32, #tpu.memory_space<smem>>
    %86 = vector.broadcast %85 : f32 to vector<1x16xf32>
    %87 = arith.mulf %86, %84 : vector<1x16xf32>
    %88 = arith.addf %87, %68 : vector<1x16xf32>
    %c0_66 = arith.constant 0 : index
    %c0_67 = arith.constant 0 : index
    %c0_68 = arith.constant 0 : index
    %89 = vector.load %arg23[%c0_66, %c0_67, %c0_68] : memref<3x9x16xf32, #tpu.memory_space<vmem>>, vector<1x9x16xf32>
    %90 = vector.shape_cast %89 : vector<1x9x16xf32> to vector<9x16xf32>
    %c0_69 = arith.constant 0 : index
    %c0_70 = arith.constant 0 : index
    %c0_71 = arith.constant 0 : index
    %91 = vector.load %arg24[%c0_69, %c0_70, %c0_71] : memref<3x1x16xf32, #tpu.memory_space<vmem>>, vector<1x1x16xf32>
    %92 = vector.shape_cast %91 : vector<1x1x16xf32> to vector<1x16xf32>
    %93 = vector.extract_strided_slice %90 {offsets = [4, 0], sizes = [1, 16], strides = [1, 1]} : vector<9x16xf32> to vector<1x16xf32>
    %94 = arith.mulf %88, %93 : vector<1x16xf32>
    %95 = arith.addf %94, %92 : vector<1x16xf32>
    %cst_72 = arith.constant 0.000000e+00 : f32
    %96 = vector.broadcast %cst_72 : f32 to vector<1x16xf32>
    %97 = arith.maximumf %95, %96 : vector<1x16xf32>
    %98 = arith.truncf %97 : vector<1x16xf32> to vector<1x16xbf16>
    %cst_73 = arith.constant dense<0.000000e+00> : vector<16x256xf32>
    %99 = tpu.matmul %98, %2, %cst_73 {dimension_numbers = #tpu.dot_dimension_numbers<[0], [0], [1], [1], [0, 1, 1, 1], [], []>} : vector<1x16xbf16>, vector<1x256xbf16>, vector<16x256xf32> -> vector<16x256xf32>
    %100 = arith.truncf %99 : vector<16x256xf32> to vector<16x256xbf16>
    %c0_74 = arith.constant 0 : index
    %c16 = arith.constant 16 : index
    %c0_75 = arith.constant 0 : index
    %101 = vector.load %arg26[%c0_74, %c16, %c0_75] : memref<1x96x256xbf16, #tpu.memory_space<vmem>>, vector<1x16x256xbf16>
    %102 = vector.shape_cast %101 : vector<1x16x256xbf16> to vector<16x256xbf16>
    %103 = vector.shape_cast %100 : vector<16x256xbf16> to vector<1x16x256xbf16>
    tpu.vector_store %arg26[%c0_74, %c16, %c0_75], %103 {strides = array<i32>} : memref<1x96x256xbf16, #tpu.memory_space<vmem>>, vector<1x16x256xbf16>,
    %c0_76 = arith.constant 0 : index
    %c0_77 = arith.constant 0 : index
    %104 = vector.load %arg7[%c0_76, %c0_77] : memref<4x256xbf16, #tpu.memory_space<vmem>>, vector<4x256xbf16>
    %c0_78 = arith.constant 0 : index
    %c0_79 = arith.constant 0 : index
    %105 = vector.load %arg5[%c0_78, %c0_79] : memref<4x256xbf16, #tpu.memory_space<vmem>>, vector<4x256xbf16>
    %cst_80 = arith.constant dense<0.000000e+00> : vector<4x4xf32>
    %106 = tpu.matmul %105, %1, %cst_80 {dimension_numbers = #tpu.dot_dimension_numbers<[1], [1], [0], [0], [0, 0, 1, 0], [], []>} : vector<4x256xbf16>, vector<4x256xbf16>, vector<4x4xf32> -> vector<4x4xf32>
    %107 = arith.truncf %106 : vector<4x4xf32> to vector<4x4xbf16>
    %c1_81 = arith.constant 1 : index
    %c0_82 = arith.constant 0 : index
    %c0_83 = arith.constant 0 : index
    %108 = vector.load %arg11[%c1_81, %c0_82, %c0_83] : memref<3x4x16xbf16, #tpu.memory_space<vmem>>, vector<1x4x16xbf16>
    %109 = vector.shape_cast %108 : vector<1x4x16xbf16> to vector<4x16xbf16>
    %cst_84 = arith.constant dense<0.000000e+00> : vector<4x16xf32>
    %110 = tpu.matmul %107, %109, %cst_84 {dimension_numbers = #tpu.dot_dimension_numbers<[1], [0], [0], [1], [0, 0, 1, 1], [], []>} : vector<4x4xbf16>, vector<4x16xbf16>, vector<4x16xf32> -> vector<4x16xf32>
    %c1_85 = arith.constant 1 : index
    %c0_86 = arith.constant 0 : index
    %c0_87 = arith.constant 0 : index
    %111 = vector.load %arg12[%c1_85, %c0_86, %c0_87] : memref<3x1x16xf32, #tpu.memory_space<vmem>>, vector<1x1x16xf32>
    %112 = vector.shape_cast %111 : vector<1x1x16xf32> to vector<1x16xf32>
    %113 = vector.broadcast %112 : vector<1x16xf32> to vector<4x16xf32>
    %114 = arith.addf %110, %113 : vector<4x16xf32>
    %cst_88 = arith.constant 0.000000e+00 : f32
    %115 = vector.broadcast %cst_88 : f32 to vector<4x16xf32>
    %116 = arith.maximumf %114, %115 : vector<4x16xf32>
    %c1_89 = arith.constant 1 : index
    %c0_90 = arith.constant 0 : index
    %c0_91 = arith.constant 0 : index
    %117 = vector.load %arg15[%c1_89, %c0_90, %c0_91] : memref<3x16x2xf32, #tpu.memory_space<vmem>>, vector<1x16x2xf32>
    %118 = vector.shape_cast %117 : vector<1x16x2xf32> to vector<16x2xf32>
    %cst_92 = arith.constant dense<0.000000e+00> : vector<4x2xf32>
    %119 = tpu.matmul %116, %118, %cst_92 {dimension_numbers = #tpu.dot_dimension_numbers<[1], [0], [0], [1], [0, 0, 1, 1], [], []>} : vector<4x16xf32>, vector<16x2xf32>, vector<4x2xf32> -> vector<4x2xf32>
    %c1_93 = arith.constant 1 : index
    %c0_94 = arith.constant 0 : index
    %c0_95 = arith.constant 0 : index
    %120 = vector.load %arg16[%c1_93, %c0_94, %c0_95] : memref<3x1x2xf32, #tpu.memory_space<vmem>>, vector<1x1x2xf32>
    %121 = vector.shape_cast %120 : vector<1x1x2xf32> to vector<1x2xf32>
    %122 = vector.broadcast %121 : vector<1x2xf32> to vector<4x2xf32>
    %123 = arith.addf %119, %122 : vector<4x2xf32>
    %c1_96 = arith.constant 1 : index
    %c0_97 = arith.constant 0 : index
    %c0_98 = arith.constant 0 : index
    %124 = vector.load %arg17[%c1_96, %c0_97, %c0_98] : memref<3x16x2xf32, #tpu.memory_space<vmem>>, vector<1x16x2xf32>
    %125 = vector.shape_cast %124 : vector<1x16x2xf32> to vector<16x2xf32>
    %cst_99 = arith.constant dense<0.000000e+00> : vector<4x2xf32>
    %126 = tpu.matmul %116, %125, %cst_99 {dimension_numbers = #tpu.dot_dimension_numbers<[1], [0], [0], [1], [0, 0, 1, 1], [], []>} : vector<4x16xf32>, vector<16x2xf32>, vector<4x2xf32> -> vector<4x2xf32>
    %c1_100 = arith.constant 1 : index
    %c0_101 = arith.constant 0 : index
    %c0_102 = arith.constant 0 : index
    %127 = vector.load %arg18[%c1_100, %c0_101, %c0_102] : memref<3x1x2xf32, #tpu.memory_space<vmem>>, vector<1x1x2xf32>
    %128 = vector.shape_cast %127 : vector<1x1x2xf32> to vector<1x2xf32>
    %129 = vector.broadcast %128 : vector<1x2xf32> to vector<4x2xf32>
    %130 = arith.addf %126, %129 : vector<4x2xf32>
    %c1_103 = arith.constant 1 : index
    %c0_104 = arith.constant 0 : index
    %c0_105 = arith.constant 0 : index
    %131 = vector.load %arg19[%c1_103, %c0_104, %c0_105] : memref<3x16x16xf32, #tpu.memory_space<vmem>>, vector<1x16x16xf32>
    %132 = vector.shape_cast %131 : vector<1x16x16xf32> to vector<16x16xf32>
    %cst_106 = arith.constant dense<0.000000e+00> : vector<4x16xf32>
    %133 = tpu.matmul %116, %132, %cst_106 {dimension_numbers = #tpu.dot_dimension_numbers<[1], [0], [0], [1], [0, 0, 1, 1], [], []>} : vector<4x16xf32>, vector<16x16xf32>, vector<4x16xf32> -> vector<4x16xf32>
    %c1_107 = arith.constant 1 : index
    %c0_108 = arith.constant 0 : index
    %c0_109 = arith.constant 0 : index
    %134 = vector.load %arg20[%c1_107, %c0_108, %c0_109] : memref<3x1x16xf32, #tpu.memory_space<vmem>>, vector<1x1x16xf32>
    %135 = vector.shape_cast %134 : vector<1x1x16xf32> to vector<1x16xf32>
    %136 = vector.broadcast %135 : vector<1x16xf32> to vector<4x16xf32>
    %137 = arith.addf %133, %136 : vector<4x16xf32>
    %cst_110 = arith.constant dense<0.000000e+00> : vector<4x4xf32>
    %138 = tpu.matmul %123, %130, %cst_110 {dimension_numbers = #tpu.dot_dimension_numbers<[1], [1], [0], [0], [0, 0, 1, 0], [], []>} : vector<4x2xf32>, vector<4x2xf32>, vector<4x4xf32> -> vector<4x4xf32>
    %cst_111 = arith.constant dense<0xFF800000> : vector<4xf32>
    %139 = vector.multi_reduction <maximumf>, %138, %cst_111 [1] : vector<4x4xf32> to vector<4xf32>
    %140 = vector.shape_cast %139 : vector<4xf32> to vector<4x1xf32>
    %141 = vector.broadcast %140 : vector<4x1xf32> to vector<4x4xf32>
    %142 = arith.subf %138, %141 : vector<4x4xf32>
    %143 = math.exp %142 : vector<4x4xf32>
    %cst_112 = arith.constant dense<0.000000e+00> : vector<4xf32>
    %144 = vector.multi_reduction <add>, %143, %cst_112 [1] : vector<4x4xf32> to vector<4xf32>
    %145 = vector.shape_cast %144 : vector<4xf32> to vector<4x1xf32>
    %146 = tpu.reciprocal %145 {approx = true} : vector<4x1xf32> -> vector<4x1xf32>
    %147 = vector.broadcast %146 : vector<4x1xf32> to vector<4x4xf32>
    %148 = arith.mulf %143, %147 : vector<4x4xf32>
    %cst_113 = arith.constant dense<0.000000e+00> : vector<4x16xf32>
    %149 = tpu.matmul %148, %137, %cst_113 {dimension_numbers = #tpu.dot_dimension_numbers<[1], [0], [0], [1], [0, 0, 1, 1], [], []>} : vector<4x4xf32>, vector<4x16xf32>, vector<4x16xf32> -> vector<4x16xf32>
    %c1_114 = arith.constant 1 : index
    %c0_115 = arith.constant 0 : index
    %150 = memref.load %arg25[%c1_114, %c0_115] : memref<3x2xf32, #tpu.memory_space<smem>>
    %151 = vector.broadcast %150 : f32 to vector<4x16xf32>
    %152 = arith.mulf %151, %149 : vector<4x16xf32>
    %153 = arith.addf %152, %116 : vector<4x16xf32>
    %c1_116 = arith.constant 1 : index
    %c0_117 = arith.constant 0 : index
    %c0_118 = arith.constant 0 : index
    %154 = vector.load %arg21[%c1_116, %c0_117, %c0_118] : memref<3x9x16xf32, #tpu.memory_space<vmem>>, vector<1x9x16xf32>
    %155 = vector.shape_cast %154 : vector<1x9x16xf32> to vector<9x16xf32>
    %c1_119 = arith.constant 1 : index
    %c0_120 = arith.constant 0 : index
    %c0_121 = arith.constant 0 : index
    %156 = vector.load %arg22[%c1_119, %c0_120, %c0_121] : memref<3x1x16xf32, #tpu.memory_space<vmem>>, vector<1x1x16xf32>
    %157 = vector.shape_cast %156 : vector<1x1x16xf32> to vector<1x16xf32>
    %c0_122 = arith.constant 0 : index
    %c0_123 = arith.constant 0 : index
    %158 = vector.load %arg6[%c0_122, %c0_123] : memref<36x4xf32, #tpu.memory_space<vmem>>, vector<36x4xf32>
    %cst_124 = arith.constant dense<0.000000e+00> : vector<36x16xf32>
    %159 = tpu.matmul %158, %153, %cst_124 {dimension_numbers = #tpu.dot_dimension_numbers<[1], [0], [0], [1], [0, 0, 1, 1], [], []>} : vector<36x4xf32>, vector<4x16xf32>, vector<36x16xf32> -> vector<36x16xf32>
    %cst_125 = arith.constant 0.000000e+00 : f32
    %160 = vector.broadcast %cst_125 : f32 to vector<4x16xf32>
    %161 = vector.extract_strided_slice %159 {offsets = [0, 0], sizes = [4, 16], strides = [1, 1]} : vector<36x16xf32> to vector<4x16xf32>
    %162 = vector.extract_strided_slice %155 {offsets = [0, 0], sizes = [1, 16], strides = [1, 1]} : vector<9x16xf32> to vector<1x16xf32>
    %163 = vector.broadcast %162 : vector<1x16xf32> to vector<4x16xf32>
    %164 = arith.mulf %161, %163 : vector<4x16xf32>
    %165 = arith.addf %160, %164 : vector<4x16xf32>
    %166 = vector.extract_strided_slice %159 {offsets = [4, 0], sizes = [4, 16], strides = [1, 1]} : vector<36x16xf32> to vector<4x16xf32>
    %167 = vector.extract_strided_slice %155 {offsets = [1, 0], sizes = [1, 16], strides = [1, 1]} : vector<9x16xf32> to vector<1x16xf32>
    %168 = vector.broadcast %167 : vector<1x16xf32> to vector<4x16xf32>
    %169 = arith.mulf %166, %168 : vector<4x16xf32>
    %170 = arith.addf %165, %169 : vector<4x16xf32>
    %171 = vector.extract_strided_slice %159 {offsets = [8, 0], sizes = [4, 16], strides = [1, 1]} : vector<36x16xf32> to vector<4x16xf32>
    %172 = vector.extract_strided_slice %155 {offsets = [2, 0], sizes = [1, 16], strides = [1, 1]} : vector<9x16xf32> to vector<1x16xf32>
    %173 = vector.broadcast %172 : vector<1x16xf32> to vector<4x16xf32>
    %174 = arith.mulf %171, %173 : vector<4x16xf32>
    %175 = arith.addf %170, %174 : vector<4x16xf32>
    %176 = vector.extract_strided_slice %159 {offsets = [12, 0], sizes = [4, 16], strides = [1, 1]} : vector<36x16xf32> to vector<4x16xf32>
    %177 = vector.extract_strided_slice %155 {offsets = [3, 0], sizes = [1, 16], strides = [1, 1]} : vector<9x16xf32> to vector<1x16xf32>
    %178 = vector.broadcast %177 : vector<1x16xf32> to vector<4x16xf32>
    %179 = arith.mulf %176, %178 : vector<4x16xf32>
    %180 = arith.addf %175, %179 : vector<4x16xf32>
    %181 = vector.extract_strided_slice %159 {offsets = [16, 0], sizes = [4, 16], strides = [1, 1]} : vector<36x16xf32> to vector<4x16xf32>
    %182 = vector.extract_strided_slice %155 {offsets = [4, 0], sizes = [1, 16], strides = [1, 1]} : vector<9x16xf32> to vector<1x16xf32>
    %183 = vector.broadcast %182 : vector<1x16xf32> to vector<4x16xf32>
    %184 = arith.mulf %181, %183 : vector<4x16xf32>
    %185 = arith.addf %180, %184 : vector<4x16xf32>
    %186 = vector.extract_strided_slice %159 {offsets = [20, 0], sizes = [4, 16], strides = [1, 1]} : vector<36x16xf32> to vector<4x16xf32>
    %187 = vector.extract_strided_slice %155 {offsets = [5, 0], sizes = [1, 16], strides = [1, 1]} : vector<9x16xf32> to vector<1x16xf32>
    %188 = vector.broadcast %187 : vector<1x16xf32> to vector<4x16xf32>
    %189 = arith.mulf %186, %188 : vector<4x16xf32>
    %190 = arith.addf %185, %189 : vector<4x16xf32>
    %191 = vector.extract_strided_slice %159 {offsets = [24, 0], sizes = [4, 16], strides = [1, 1]} : vector<36x16xf32> to vector<4x16xf32>
    %192 = vector.extract_strided_slice %155 {offsets = [6, 0], sizes = [1, 16], strides = [1, 1]} : vector<9x16xf32> to vector<1x16xf32>
    %193 = vector.broadcast %192 : vector<1x16xf32> to vector<4x16xf32>
    %194 = arith.mulf %191, %193 : vector<4x16xf32>
    %195 = arith.addf %190, %194 : vector<4x16xf32>
    %196 = vector.extract_strided_slice %159 {offsets = [28, 0], sizes = [4, 16], strides = [1, 1]} : vector<36x16xf32> to vector<4x16xf32>
    %197 = vector.extract_strided_slice %155 {offsets = [7, 0], sizes = [1, 16], strides = [1, 1]} : vector<9x16xf32> to vector<1x16xf32>
    %198 = vector.broadcast %197 : vector<1x16xf32> to vector<4x16xf32>
    %199 = arith.mulf %196, %198 : vector<4x16xf32>
    %200 = arith.addf %195, %199 : vector<4x16xf32>
    %201 = vector.extract_strided_slice %159 {offsets = [32, 0], sizes = [4, 16], strides = [1, 1]} : vector<36x16xf32> to vector<4x16xf32>
    %202 = vector.extract_strided_slice %155 {offsets = [8, 0], sizes = [1, 16], strides = [1, 1]} : vector<9x16xf32> to vector<1x16xf32>
    %203 = vector.broadcast %202 : vector<1x16xf32> to vector<4x16xf32>
    %204 = arith.mulf %201, %203 : vector<4x16xf32>
    %205 = arith.addf %200, %204 : vector<4x16xf32>
    %206 = vector.broadcast %157 : vector<1x16xf32> to vector<4x16xf32>
    %207 = arith.addf %205, %206 : vector<4x16xf32>
    %cst_126 = arith.constant 0.000000e+00 : f32
    %208 = vector.broadcast %cst_126 : f32 to vector<4x16xf32>
    %209 = arith.maximumf %207, %208 : vector<4x16xf32>
    %210 = arith.truncf %209 : vector<4x16xf32> to vector<4x16xbf16>
    %cst_127 = arith.constant dense<0.000000e+00> : vector<16x256xf32>
    %211 = tpu.matmul %210, %104, %cst_127 {dimension_numbers = #tpu.dot_dimension_numbers<[0], [0], [1], [1], [0, 1, 1, 1], [], []>} : vector<4x16xbf16>, vector<4x256xbf16>, vector<16x256xf32> -> vector<16x256xf32>
    %212 = arith.truncf %211 : vector<16x256xf32> to vector<16x256xbf16>
    %c0_128 = arith.constant 0 : index
    %c32 = arith.constant 32 : index
    %c0_129 = arith.constant 0 : index
    %213 = vector.load %arg26[%c0_128, %c32, %c0_129] : memref<1x96x256xbf16, #tpu.memory_space<vmem>>, vector<1x16x256xbf16>
    %214 = vector.shape_cast %213 : vector<1x16x256xbf16> to vector<16x256xbf16>
    %215 = vector.shape_cast %212 : vector<16x256xbf16> to vector<1x16x256xbf16>
    tpu.vector_store %arg26[%c0_128, %c32, %c0_129], %215 {strides = array<i32>} : memref<1x96x256xbf16, #tpu.memory_space<vmem>>, vector<1x16x256xbf16>,
    %c1_130 = arith.constant 1 : index
    %c0_131 = arith.constant 0 : index
    %c0_132 = arith.constant 0 : index
    %216 = vector.load %arg13[%c1_130, %c0_131, %c0_132] : memref<3x4x16xbf16, #tpu.memory_space<vmem>>, vector<1x4x16xbf16>
    %217 = vector.shape_cast %216 : vector<1x4x16xbf16> to vector<4x16xbf16>
    %cst_133 = arith.constant dense<0.000000e+00> : vector<4x16xf32>
    %218 = tpu.matmul %107, %217, %cst_133 {dimension_numbers = #tpu.dot_dimension_numbers<[1], [0], [0], [1], [0, 0, 1, 1], [], []>} : vector<4x4xbf16>, vector<4x16xbf16>, vector<4x16xf32> -> vector<4x16xf32>
    %c1_134 = arith.constant 1 : index
    %c0_135 = arith.constant 0 : index
    %c0_136 = arith.constant 0 : index
    %219 = vector.load %arg14[%c1_134, %c0_135, %c0_136] : memref<3x1x16xf32, #tpu.memory_space<vmem>>, vector<1x1x16xf32>
    %220 = vector.shape_cast %219 : vector<1x1x16xf32> to vector<1x16xf32>
    %221 = vector.broadcast %220 : vector<1x16xf32> to vector<4x16xf32>
    %222 = arith.addf %218, %221 : vector<4x16xf32>
    %cst_137 = arith.constant 0.000000e+00 : f32
    %223 = vector.broadcast %cst_137 : f32 to vector<4x16xf32>
    %224 = arith.maximumf %222, %223 : vector<4x16xf32>
    %cst_138 = arith.constant dense<0.000000e+00> : vector<16x16xf32>
    %225 = tpu.matmul %224, %224, %cst_138 {dimension_numbers = #tpu.dot_dimension_numbers<[0], [0], [1], [1], [0, 1, 1, 1], [], []>} : vector<4x16xf32>, vector<4x16xf32>, vector<16x16xf32> -> vector<16x16xf32>
    %cst_139 = arith.constant dense<0xFF800000> : vector<16xf32>
    %226 = vector.multi_reduction <maximumf>, %225, %cst_139 [1] : vector<16x16xf32> to vector<16xf32>
    %227 = vector.shape_cast %226 : vector<16xf32> to vector<16x1xf32>
    %228 = vector.broadcast %227 : vector<16x1xf32> to vector<16x16xf32>
    %229 = arith.subf %228, %225 : vector<16x16xf32>
    %cst_140 = arith.constant dense<0xFF800000> : vector<16xf32>
    %230 = vector.multi_reduction <maximumf>, %229, %cst_140 [1] : vector<16x16xf32> to vector<16xf32>
    %231 = vector.shape_cast %230 : vector<16xf32> to vector<16x1xf32>
    %232 = vector.broadcast %231 : vector<16x1xf32> to vector<16x16xf32>
    %233 = arith.subf %229, %232 : vector<16x16xf32>
    %234 = math.exp %233 : vector<16x16xf32>
    %cst_141 = arith.constant dense<0.000000e+00> : vector<16xf32>
    %235 = vector.multi_reduction <add>, %234, %cst_141 [1] : vector<16x16xf32> to vector<16xf32>
    %236 = vector.shape_cast %235 : vector<16xf32> to vector<16x1xf32>
    %237 = tpu.reciprocal %236 {approx = true} : vector<16x1xf32> -> vector<16x1xf32>
    %238 = vector.broadcast %237 : vector<16x1xf32> to vector<16x16xf32>
    %239 = arith.mulf %234, %238 : vector<16x16xf32>
    %cst_142 = arith.constant dense<0.000000e+00> : vector<4x16xf32>
    %240 = tpu.matmul %224, %239, %cst_142 {dimension_numbers = #tpu.dot_dimension_numbers<[1], [1], [0], [0], [0, 0, 1, 0], [], []>} : vector<4x16xf32>, vector<16x16xf32>, vector<4x16xf32> -> vector<4x16xf32>
    %c1_143 = arith.constant 1 : index
    %c1_144 = arith.constant 1 : index
    %241 = memref.load %arg25[%c1_143, %c1_144] : memref<3x2xf32, #tpu.memory_space<smem>>
    %242 = vector.broadcast %241 : f32 to vector<4x16xf32>
    %243 = arith.mulf %242, %240 : vector<4x16xf32>
    %244 = arith.addf %243, %224 : vector<4x16xf32>
    %c1_145 = arith.constant 1 : index
    %c0_146 = arith.constant 0 : index
    %c0_147 = arith.constant 0 : index
    %245 = vector.load %arg23[%c1_145, %c0_146, %c0_147] : memref<3x9x16xf32, #tpu.memory_space<vmem>>, vector<1x9x16xf32>
    %246 = vector.shape_cast %245 : vector<1x9x16xf32> to vector<9x16xf32>
    %c1_148 = arith.constant 1 : index
    %c0_149 = arith.constant 0 : index
    %c0_150 = arith.constant 0 : index
    %247 = vector.load %arg24[%c1_148, %c0_149, %c0_150] : memref<3x1x16xf32, #tpu.memory_space<vmem>>, vector<1x1x16xf32>
    %248 = vector.shape_cast %247 : vector<1x1x16xf32> to vector<1x16xf32>
    %c0_151 = arith.constant 0 : index
    %c0_152 = arith.constant 0 : index
    %249 = vector.load %arg6[%c0_151, %c0_152] : memref<36x4xf32, #tpu.memory_space<vmem>>, vector<36x4xf32>
    %cst_153 = arith.constant dense<0.000000e+00> : vector<36x16xf32>
    %250 = tpu.matmul %249, %244, %cst_153 {dimension_numbers = #tpu.dot_dimension_numbers<[1], [0], [0], [1], [0, 0, 1, 1], [], []>} : vector<36x4xf32>, vector<4x16xf32>, vector<36x16xf32> -> vector<36x16xf32>
    %cst_154 = arith.constant 0.000000e+00 : f32
    %251 = vector.broadcast %cst_154 : f32 to vector<4x16xf32>
    %252 = vector.extract_strided_slice %250 {offsets = [0, 0], sizes = [4, 16], strides = [1, 1]} : vector<36x16xf32> to vector<4x16xf32>
    %253 = vector.extract_strided_slice %246 {offsets = [0, 0], sizes = [1, 16], strides = [1, 1]} : vector<9x16xf32> to vector<1x16xf32>
    %254 = vector.broadcast %253 : vector<1x16xf32> to vector<4x16xf32>
    %255 = arith.mulf %252, %254 : vector<4x16xf32>
    %256 = arith.addf %251, %255 : vector<4x16xf32>
    %257 = vector.extract_strided_slice %250 {offsets = [4, 0], sizes = [4, 16], strides = [1, 1]} : vector<36x16xf32> to vector<4x16xf32>
    %258 = vector.extract_strided_slice %246 {offsets = [1, 0], sizes = [1, 16], strides = [1, 1]} : vector<9x16xf32> to vector<1x16xf32>
    %259 = vector.broadcast %258 : vector<1x16xf32> to vector<4x16xf32>
    %260 = arith.mulf %257, %259 : vector<4x16xf32>
    %261 = arith.addf %256, %260 : vector<4x16xf32>
    %262 = vector.extract_strided_slice %250 {offsets = [8, 0], sizes = [4, 16], strides = [1, 1]} : vector<36x16xf32> to vector<4x16xf32>
    %263 = vector.extract_strided_slice %246 {offsets = [2, 0], sizes = [1, 16], strides = [1, 1]} : vector<9x16xf32> to vector<1x16xf32>
    %264 = vector.broadcast %263 : vector<1x16xf32> to vector<4x16xf32>
    %265 = arith.mulf %262, %264 : vector<4x16xf32>
    %266 = arith.addf %261, %265 : vector<4x16xf32>
    %267 = vector.extract_strided_slice %250 {offsets = [12, 0], sizes = [4, 16], strides = [1, 1]} : vector<36x16xf32> to vector<4x16xf32>
    %268 = vector.extract_strided_slice %246 {offsets = [3, 0], sizes = [1, 16], strides = [1, 1]} : vector<9x16xf32> to vector<1x16xf32>
    %269 = vector.broadcast %268 : vector<1x16xf32> to vector<4x16xf32>
    %270 = arith.mulf %267, %269 : vector<4x16xf32>
    %271 = arith.addf %266, %270 : vector<4x16xf32>
    %272 = vector.extract_strided_slice %250 {offsets = [16, 0], sizes = [4, 16], strides = [1, 1]} : vector<36x16xf32> to vector<4x16xf32>
    %273 = vector.extract_strided_slice %246 {offsets = [4, 0], sizes = [1, 16], strides = [1, 1]} : vector<9x16xf32> to vector<1x16xf32>
    %274 = vector.broadcast %273 : vector<1x16xf32> to vector<4x16xf32>
    %275 = arith.mulf %272, %274 : vector<4x16xf32>
    %276 = arith.addf %271, %275 : vector<4x16xf32>
    %277 = vector.extract_strided_slice %250 {offsets = [20, 0], sizes = [4, 16], strides = [1, 1]} : vector<36x16xf32> to vector<4x16xf32>
    %278 = vector.extract_strided_slice %246 {offsets = [5, 0], sizes = [1, 16], strides = [1, 1]} : vector<9x16xf32> to vector<1x16xf32>
    %279 = vector.broadcast %278 : vector<1x16xf32> to vector<4x16xf32>
    %280 = arith.mulf %277, %279 : vector<4x16xf32>
    %281 = arith.addf %276, %280 : vector<4x16xf32>
    %282 = vector.extract_strided_slice %250 {offsets = [24, 0], sizes = [4, 16], strides = [1, 1]} : vector<36x16xf32> to vector<4x16xf32>
    %283 = vector.extract_strided_slice %246 {offsets = [6, 0], sizes = [1, 16], strides = [1, 1]} : vector<9x16xf32> to vector<1x16xf32>
    %284 = vector.broadcast %283 : vector<1x16xf32> to vector<4x16xf32>
    %285 = arith.mulf %282, %284 : vector<4x16xf32>
    %286 = arith.addf %281, %285 : vector<4x16xf32>
    %287 = vector.extract_strided_slice %250 {offsets = [28, 0], sizes = [4, 16], strides = [1, 1]} : vector<36x16xf32> to vector<4x16xf32>
    %288 = vector.extract_strided_slice %246 {offsets = [7, 0], sizes = [1, 16], strides = [1, 1]} : vector<9x16xf32> to vector<1x16xf32>
    %289 = vector.broadcast %288 : vector<1x16xf32> to vector<4x16xf32>
    %290 = arith.mulf %287, %289 : vector<4x16xf32>
    %291 = arith.addf %286, %290 : vector<4x16xf32>
    %292 = vector.extract_strided_slice %250 {offsets = [32, 0], sizes = [4, 16], strides = [1, 1]} : vector<36x16xf32> to vector<4x16xf32>
    %293 = vector.extract_strided_slice %246 {offsets = [8, 0], sizes = [1, 16], strides = [1, 1]} : vector<9x16xf32> to vector<1x16xf32>
    %294 = vector.broadcast %293 : vector<1x16xf32> to vector<4x16xf32>
    %295 = arith.mulf %292, %294 : vector<4x16xf32>
    %296 = arith.addf %291, %295 : vector<4x16xf32>
    %297 = vector.broadcast %248 : vector<1x16xf32> to vector<4x16xf32>
    %298 = arith.addf %296, %297 : vector<4x16xf32>
    %cst_155 = arith.constant 0.000000e+00 : f32
    %299 = vector.broadcast %cst_155 : f32 to vector<4x16xf32>
    %300 = arith.maximumf %298, %299 : vector<4x16xf32>
    %301 = arith.truncf %300 : vector<4x16xf32> to vector<4x16xbf16>
    %cst_156 = arith.constant dense<0.000000e+00> : vector<16x256xf32>
    %302 = tpu.matmul %301, %104, %cst_156 {dimension_numbers = #tpu.dot_dimension_numbers<[0], [0], [1], [1], [0, 1, 1, 1], [], []>} : vector<4x16xbf16>, vector<4x256xbf16>, vector<16x256xf32> -> vector<16x256xf32>
    %303 = arith.truncf %302 : vector<16x256xf32> to vector<16x256xbf16>
    %c0_157 = arith.constant 0 : index
    %c48 = arith.constant 48 : index
    %c0_158 = arith.constant 0 : index
    %304 = vector.load %arg26[%c0_157, %c48, %c0_158] : memref<1x96x256xbf16, #tpu.memory_space<vmem>>, vector<1x16x256xbf16>
    %305 = vector.shape_cast %304 : vector<1x16x256xbf16> to vector<16x256xbf16>
    %306 = vector.shape_cast %303 : vector<16x256xbf16> to vector<1x16x256xbf16>
    tpu.vector_store %arg26[%c0_157, %c48, %c0_158], %306 {strides = array<i32>} : memref<1x96x256xbf16, #tpu.memory_space<vmem>>, vector<1x16x256xbf16>,
    %c0_159 = arith.constant 0 : index
    %c0_160 = arith.constant 0 : index
    %307 = vector.load %arg10[%c0_159, %c0_160] : memref<16x256xbf16, #tpu.memory_space<vmem>>, vector<16x256xbf16>
    %c0_161 = arith.constant 0 : index
    %c0_162 = arith.constant 0 : index
    %308 = vector.load %arg8[%c0_161, %c0_162] : memref<16x256xbf16, #tpu.memory_space<vmem>>, vector<16x256xbf16>
    %cst_163 = arith.constant dense<0.000000e+00> : vector<16x4xf32>
    %309 = tpu.matmul %308, %1, %cst_163 {dimension_numbers = #tpu.dot_dimension_numbers<[1], [1], [0], [0], [0, 0, 1, 0], [], []>} : vector<16x256xbf16>, vector<4x256xbf16>, vector<16x4xf32> -> vector<16x4xf32>
    %310 = arith.truncf %309 : vector<16x4xf32> to vector<16x4xbf16>
    %c2 = arith.constant 2 : index
    %c0_164 = arith.constant 0 : index
    %c0_165 = arith.constant 0 : index
    %311 = vector.load %arg11[%c2, %c0_164, %c0_165] : memref<3x4x16xbf16, #tpu.memory_space<vmem>>, vector<1x4x16xbf16>
    %312 = vector.shape_cast %311 : vector<1x4x16xbf16> to vector<4x16xbf16>
    %cst_166 = arith.constant dense<0.000000e+00> : vector<16x16xf32>
    %313 = tpu.matmul %310, %312, %cst_166 {dimension_numbers = #tpu.dot_dimension_numbers<[1], [0], [0], [1], [0, 0, 1, 1], [], []>} : vector<16x4xbf16>, vector<4x16xbf16>, vector<16x16xf32> -> vector<16x16xf32>
    %c2_167 = arith.constant 2 : index
    %c0_168 = arith.constant 0 : index
    %c0_169 = arith.constant 0 : index
    %314 = vector.load %arg12[%c2_167, %c0_168, %c0_169] : memref<3x1x16xf32, #tpu.memory_space<vmem>>, vector<1x1x16xf32>
    %315 = vector.shape_cast %314 : vector<1x1x16xf32> to vector<1x16xf32>
    %316 = vector.broadcast %315 : vector<1x16xf32> to vector<16x16xf32>
    %317 = arith.addf %313, %316 : vector<16x16xf32>
    %cst_170 = arith.constant 0.000000e+00 : f32
    %318 = vector.broadcast %cst_170 : f32 to vector<16x16xf32>
    %319 = arith.maximumf %317, %318 : vector<16x16xf32>
    %c2_171 = arith.constant 2 : index
    %c0_172 = arith.constant 0 : index
    %c0_173 = arith.constant 0 : index
    %320 = vector.load %arg15[%c2_171, %c0_172, %c0_173] : memref<3x16x2xf32, #tpu.memory_space<vmem>>, vector<1x16x2xf32>
    %321 = vector.shape_cast %320 : vector<1x16x2xf32> to vector<16x2xf32>
    %cst_174 = arith.constant dense<0.000000e+00> : vector<16x2xf32>
    %322 = tpu.matmul %319, %321, %cst_174 {dimension_numbers = #tpu.dot_dimension_numbers<[1], [0], [0], [1], [0, 0, 1, 1], [], []>} : vector<16x16xf32>, vector<16x2xf32>, vector<16x2xf32> -> vector<16x2xf32>
    %c2_175 = arith.constant 2 : index
    %c0_176 = arith.constant 0 : index
    %c0_177 = arith.constant 0 : index
    %323 = vector.load %arg16[%c2_175, %c0_176, %c0_177] : memref<3x1x2xf32, #tpu.memory_space<vmem>>, vector<1x1x2xf32>
    %324 = vector.shape_cast %323 : vector<1x1x2xf32> to vector<1x2xf32>
    %325 = vector.broadcast %324 : vector<1x2xf32> to vector<16x2xf32>
    %326 = arith.addf %322, %325 : vector<16x2xf32>
    %c2_178 = arith.constant 2 : index
    %c0_179 = arith.constant 0 : index
    %c0_180 = arith.constant 0 : index
    %327 = vector.load %arg17[%c2_178, %c0_179, %c0_180] : memref<3x16x2xf32, #tpu.memory_space<vmem>>, vector<1x16x2xf32>
    %328 = vector.shape_cast %327 : vector<1x16x2xf32> to vector<16x2xf32>
    %cst_181 = arith.constant dense<0.000000e+00> : vector<16x2xf32>
    %329 = tpu.matmul %319, %328, %cst_181 {dimension_numbers = #tpu.dot_dimension_numbers<[1], [0], [0], [1], [0, 0, 1, 1], [], []>} : vector<16x16xf32>, vector<16x2xf32>, vector<16x2xf32> -> vector<16x2xf32>
    %c2_182 = arith.constant 2 : index
    %c0_183 = arith.constant 0 : index
    %c0_184 = arith.constant 0 : index
    %330 = vector.load %arg18[%c2_182, %c0_183, %c0_184] : memref<3x1x2xf32, #tpu.memory_space<vmem>>, vector<1x1x2xf32>
    %331 = vector.shape_cast %330 : vector<1x1x2xf32> to vector<1x2xf32>
    %332 = vector.broadcast %331 : vector<1x2xf32> to vector<16x2xf32>
    %333 = arith.addf %329, %332 : vector<16x2xf32>
    %c2_185 = arith.constant 2 : index
    %c0_186 = arith.constant 0 : index
    %c0_187 = arith.constant 0 : index
    %334 = vector.load %arg19[%c2_185, %c0_186, %c0_187] : memref<3x16x16xf32, #tpu.memory_space<vmem>>, vector<1x16x16xf32>
    %335 = vector.shape_cast %334 : vector<1x16x16xf32> to vector<16x16xf32>
    %cst_188 = arith.constant dense<0.000000e+00> : vector<16x16xf32>
    %336 = tpu.matmul %319, %335, %cst_188 {dimension_numbers = #tpu.dot_dimension_numbers<[1], [0], [0], [1], [0, 0, 1, 1], [], []>} : vector<16x16xf32>, vector<16x16xf32>, vector<16x16xf32> -> vector<16x16xf32>
    %c2_189 = arith.constant 2 : index
    %c0_190 = arith.constant 0 : index
    %c0_191 = arith.constant 0 : index
    %337 = vector.load %arg20[%c2_189, %c0_190, %c0_191] : memref<3x1x16xf32, #tpu.memory_space<vmem>>, vector<1x1x16xf32>
    %338 = vector.shape_cast %337 : vector<1x1x16xf32> to vector<1x16xf32>
    %339 = vector.broadcast %338 : vector<1x16xf32> to vector<16x16xf32>
    %340 = arith.addf %336, %339 : vector<16x16xf32>
    %cst_192 = arith.constant dense<0.000000e+00> : vector<16x16xf32>
    %341 = tpu.matmul %326, %333, %cst_192 {dimension_numbers = #tpu.dot_dimension_numbers<[1], [1], [0], [0], [0, 0, 1, 0], [], []>} : vector<16x2xf32>, vector<16x2xf32>, vector<16x16xf32> -> vector<16x16xf32>
    %cst_193 = arith.constant dense<0xFF800000> : vector<16xf32>
    %342 = vector.multi_reduction <maximumf>, %341, %cst_193 [1] : vector<16x16xf32> to vector<16xf32>
    %343 = vector.shape_cast %342 : vector<16xf32> to vector<16x1xf32>
    %344 = vector.broadcast %343 : vector<16x1xf32> to vector<16x16xf32>
    %345 = arith.subf %341, %344 : vector<16x16xf32>
    %346 = math.exp %345 : vector<16x16xf32>
    %cst_194 = arith.constant dense<0.000000e+00> : vector<16xf32>
    %347 = vector.multi_reduction <add>, %346, %cst_194 [1] : vector<16x16xf32> to vector<16xf32>
    %348 = vector.shape_cast %347 : vector<16xf32> to vector<16x1xf32>
    %349 = tpu.reciprocal %348 {approx = true} : vector<16x1xf32> -> vector<16x1xf32>
    %350 = vector.broadcast %349 : vector<16x1xf32> to vector<16x16xf32>
    %351 = arith.mulf %346, %350 : vector<16x16xf32>
    %cst_195 = arith.constant dense<0.000000e+00> : vector<16x16xf32>
    %352 = tpu.matmul %351, %340, %cst_195 {dimension_numbers = #tpu.dot_dimension_numbers<[1], [0], [0], [1], [0, 0, 1, 1], [], []>} : vector<16x16xf32>, vector<16x16xf32>, vector<16x16xf32> -> vector<16x16xf32>
    %c2_196 = arith.constant 2 : index
    %c0_197 = arith.constant 0 : index
    %353 = memref.load %arg25[%c2_196, %c0_197] : memref<3x2xf32, #tpu.memory_space<smem>>
    %354 = vector.broadcast %353 : f32 to vector<16x16xf32>
    %355 = arith.mulf %354, %352 : vector<16x16xf32>
    %356 = arith.addf %355, %319 : vector<16x16xf32>
    %c2_198 = arith.constant 2 : index
    %c0_199 = arith.constant 0 : index
    %c0_200 = arith.constant 0 : index
    %357 = vector.load %arg21[%c2_198, %c0_199, %c0_200] : memref<3x9x16xf32, #tpu.memory_space<vmem>>, vector<1x9x16xf32>
    %358 = vector.shape_cast %357 : vector<1x9x16xf32> to vector<9x16xf32>
    %c2_201 = arith.constant 2 : index
    %c0_202 = arith.constant 0 : index
    %c0_203 = arith.constant 0 : index
    %359 = vector.load %arg22[%c2_201, %c0_202, %c0_203] : memref<3x1x16xf32, #tpu.memory_space<vmem>>, vector<1x1x16xf32>
    %360 = vector.shape_cast %359 : vector<1x1x16xf32> to vector<1x16xf32>
    %c0_204 = arith.constant 0 : index
    %c0_205 = arith.constant 0 : index
    %361 = vector.load %arg9[%c0_204, %c0_205] : memref<144x16xf32, #tpu.memory_space<vmem>>, vector<144x16xf32>
    %cst_206 = arith.constant dense<0.000000e+00> : vector<144x16xf32>
    %362 = tpu.matmul %361, %356, %cst_206 {dimension_numbers = #tpu.dot_dimension_numbers<[1], [0], [0], [1], [0, 0, 1, 1], [], []>} : vector<144x16xf32>, vector<16x16xf32>, vector<144x16xf32> -> vector<144x16xf32>
    %cst_207 = arith.constant 0.000000e+00 : f32
    %363 = vector.broadcast %cst_207 : f32 to vector<16x16xf32>
    %364 = vector.extract_strided_slice %362 {offsets = [0, 0], sizes = [16, 16], strides = [1, 1]} : vector<144x16xf32> to vector<16x16xf32>
    %365 = vector.extract_strided_slice %358 {offsets = [0, 0], sizes = [1, 16], strides = [1, 1]} : vector<9x16xf32> to vector<1x16xf32>
    %366 = vector.broadcast %365 : vector<1x16xf32> to vector<16x16xf32>
    %367 = arith.mulf %364, %366 : vector<16x16xf32>
    %368 = arith.addf %363, %367 : vector<16x16xf32>
    %369 = vector.extract_strided_slice %362 {offsets = [16, 0], sizes = [16, 16], strides = [1, 1]} : vector<144x16xf32> to vector<16x16xf32>
    %370 = vector.extract_strided_slice %358 {offsets = [1, 0], sizes = [1, 16], strides = [1, 1]} : vector<9x16xf32> to vector<1x16xf32>
    %371 = vector.broadcast %370 : vector<1x16xf32> to vector<16x16xf32>
    %372 = arith.mulf %369, %371 : vector<16x16xf32>
    %373 = arith.addf %368, %372 : vector<16x16xf32>
    %374 = vector.extract_strided_slice %362 {offsets = [32, 0], sizes = [16, 16], strides = [1, 1]} : vector<144x16xf32> to vector<16x16xf32>
    %375 = vector.extract_strided_slice %358 {offsets = [2, 0], sizes = [1, 16], strides = [1, 1]} : vector<9x16xf32> to vector<1x16xf32>
    %376 = vector.broadcast %375 : vector<1x16xf32> to vector<16x16xf32>
    %377 = arith.mulf %374, %376 : vector<16x16xf32>
    %378 = arith.addf %373, %377 : vector<16x16xf32>
    %379 = vector.extract_strided_slice %362 {offsets = [48, 0], sizes = [16, 16], strides = [1, 1]} : vector<144x16xf32> to vector<16x16xf32>
    %380 = vector.extract_strided_slice %358 {offsets = [3, 0], sizes = [1, 16], strides = [1, 1]} : vector<9x16xf32> to vector<1x16xf32>
    %381 = vector.broadcast %380 : vector<1x16xf32> to vector<16x16xf32>
    %382 = arith.mulf %379, %381 : vector<16x16xf32>
    %383 = arith.addf %378, %382 : vector<16x16xf32>
    %384 = vector.extract_strided_slice %362 {offsets = [64, 0], sizes = [16, 16], strides = [1, 1]} : vector<144x16xf32> to vector<16x16xf32>
    %385 = vector.extract_strided_slice %358 {offsets = [4, 0], sizes = [1, 16], strides = [1, 1]} : vector<9x16xf32> to vector<1x16xf32>
    %386 = vector.broadcast %385 : vector<1x16xf32> to vector<16x16xf32>
    %387 = arith.mulf %384, %386 : vector<16x16xf32>
    %388 = arith.addf %383, %387 : vector<16x16xf32>
    %389 = vector.extract_strided_slice %362 {offsets = [80, 0], sizes = [16, 16], strides = [1, 1]} : vector<144x16xf32> to vector<16x16xf32>
    %390 = vector.extract_strided_slice %358 {offsets = [5, 0], sizes = [1, 16], strides = [1, 1]} : vector<9x16xf32> to vector<1x16xf32>
    %391 = vector.broadcast %390 : vector<1x16xf32> to vector<16x16xf32>
    %392 = arith.mulf %389, %391 : vector<16x16xf32>
    %393 = arith.addf %388, %392 : vector<16x16xf32>
    %394 = vector.extract_strided_slice %362 {offsets = [96, 0], sizes = [16, 16], strides = [1, 1]} : vector<144x16xf32> to vector<16x16xf32>
    %395 = vector.extract_strided_slice %358 {offsets = [6, 0], sizes = [1, 16], strides = [1, 1]} : vector<9x16xf32> to vector<1x16xf32>
    %396 = vector.broadcast %395 : vector<1x16xf32> to vector<16x16xf32>
    %397 = arith.mulf %394, %396 : vector<16x16xf32>
    %398 = arith.addf %393, %397 : vector<16x16xf32>
    %399 = vector.extract_strided_slice %362 {offsets = [112, 0], sizes = [16, 16], strides = [1, 1]} : vector<144x16xf32> to vector<16x16xf32>
    %400 = vector.extract_strided_slice %358 {offsets = [7, 0], sizes = [1, 16], strides = [1, 1]} : vector<9x16xf32> to vector<1x16xf32>
    %401 = vector.broadcast %400 : vector<1x16xf32> to vector<16x16xf32>
    %402 = arith.mulf %399, %401 : vector<16x16xf32>
    %403 = arith.addf %398, %402 : vector<16x16xf32>
    %404 = vector.extract_strided_slice %362 {offsets = [128, 0], sizes = [16, 16], strides = [1, 1]} : vector<144x16xf32> to vector<16x16xf32>
    %405 = vector.extract_strided_slice %358 {offsets = [8, 0], sizes = [1, 16], strides = [1, 1]} : vector<9x16xf32> to vector<1x16xf32>
    %406 = vector.broadcast %405 : vector<1x16xf32> to vector<16x16xf32>
    %407 = arith.mulf %404, %406 : vector<16x16xf32>
    %408 = arith.addf %403, %407 : vector<16x16xf32>
    %409 = vector.broadcast %360 : vector<1x16xf32> to vector<16x16xf32>
    %410 = arith.addf %408, %409 : vector<16x16xf32>
    %cst_208 = arith.constant 0.000000e+00 : f32
    %411 = vector.broadcast %cst_208 : f32 to vector<16x16xf32>
    %412 = arith.maximumf %410, %411 : vector<16x16xf32>
    %413 = arith.truncf %412 : vector<16x16xf32> to vector<16x16xbf16>
    %cst_209 = arith.constant dense<0.000000e+00> : vector<16x256xf32>
    %414 = tpu.matmul %413, %307, %cst_209 {dimension_numbers = #tpu.dot_dimension_numbers<[0], [0], [1], [1], [0, 1, 1, 1], [], []>} : vector<16x16xbf16>, vector<16x256xbf16>, vector<16x256xf32> -> vector<16x256xf32>
    %415 = arith.truncf %414 : vector<16x256xf32> to vector<16x256xbf16>
    %c0_210 = arith.constant 0 : index
    %c64 = arith.constant 64 : index
    %c0_211 = arith.constant 0 : index
    %416 = vector.load %arg26[%c0_210, %c64, %c0_211] : memref<1x96x256xbf16, #tpu.memory_space<vmem>>, vector<1x16x256xbf16>
    %417 = vector.shape_cast %416 : vector<1x16x256xbf16> to vector<16x256xbf16>
    %418 = vector.shape_cast %415 : vector<16x256xbf16> to vector<1x16x256xbf16>
    tpu.vector_store %arg26[%c0_210, %c64, %c0_211], %418 {strides = array<i32>} : memref<1x96x256xbf16, #tpu.memory_space<vmem>>, vector<1x16x256xbf16>,
    %c2_212 = arith.constant 2 : index
    %c0_213 = arith.constant 0 : index
    %c0_214 = arith.constant 0 : index
    %419 = vector.load %arg13[%c2_212, %c0_213, %c0_214] : memref<3x4x16xbf16, #tpu.memory_space<vmem>>, vector<1x4x16xbf16>
    %420 = vector.shape_cast %419 : vector<1x4x16xbf16> to vector<4x16xbf16>
    %cst_215 = arith.constant dense<0.000000e+00> : vector<16x16xf32>
    %421 = tpu.matmul %310, %420, %cst_215 {dimension_numbers = #tpu.dot_dimension_numbers<[1], [0], [0], [1], [0, 0, 1, 1], [], []>} : vector<16x4xbf16>, vector<4x16xbf16>, vector<16x16xf32> -> vector<16x16xf32>
    %c2_216 = arith.constant 2 : index
    %c0_217 = arith.constant 0 : index
    %c0_218 = arith.constant 0 : index
    %422 = vector.load %arg14[%c2_216, %c0_217, %c0_218] : memref<3x1x16xf32, #tpu.memory_space<vmem>>, vector<1x1x16xf32>
    %423 = vector.shape_cast %422 : vector<1x1x16xf32> to vector<1x16xf32>
    %424 = vector.broadcast %423 : vector<1x16xf32> to vector<16x16xf32>
    %425 = arith.addf %421, %424 : vector<16x16xf32>
    %cst_219 = arith.constant 0.000000e+00 : f32
    %426 = vector.broadcast %cst_219 : f32 to vector<16x16xf32>
    %427 = arith.maximumf %425, %426 : vector<16x16xf32>
    %cst_220 = arith.constant dense<0.000000e+00> : vector<16x16xf32>
    %428 = tpu.matmul %427, %427, %cst_220 {dimension_numbers = #tpu.dot_dimension_numbers<[0], [0], [1], [1], [0, 1, 1, 1], [], []>} : vector<16x16xf32>, vector<16x16xf32>, vector<16x16xf32> -> vector<16x16xf32>
    %cst_221 = arith.constant dense<0xFF800000> : vector<16xf32>
    %429 = vector.multi_reduction <maximumf>, %428, %cst_221 [1] : vector<16x16xf32> to vector<16xf32>
    %430 = vector.shape_cast %429 : vector<16xf32> to vector<16x1xf32>
    %431 = vector.broadcast %430 : vector<16x1xf32> to vector<16x16xf32>
    %432 = arith.subf %431, %428 : vector<16x16xf32>
    %cst_222 = arith.constant dense<0xFF800000> : vector<16xf32>
    %433 = vector.multi_reduction <maximumf>, %432, %cst_222 [1] : vector<16x16xf32> to vector<16xf32>
    %434 = vector.shape_cast %433 : vector<16xf32> to vector<16x1xf32>
    %435 = vector.broadcast %434 : vector<16x1xf32> to vector<16x16xf32>
    %436 = arith.subf %432, %435 : vector<16x16xf32>
    %437 = math.exp %436 : vector<16x16xf32>
    %cst_223 = arith.constant dense<0.000000e+00> : vector<16xf32>
    %438 = vector.multi_reduction <add>, %437, %cst_223 [1] : vector<16x16xf32> to vector<16xf32>
    %439 = vector.shape_cast %438 : vector<16xf32> to vector<16x1xf32>
    %440 = tpu.reciprocal %439 {approx = true} : vector<16x1xf32> -> vector<16x1xf32>
    %441 = vector.broadcast %440 : vector<16x1xf32> to vector<16x16xf32>
    %442 = arith.mulf %437, %441 : vector<16x16xf32>
    %cst_224 = arith.constant dense<0.000000e+00> : vector<16x16xf32>
    %443 = tpu.matmul %427, %442, %cst_224 {dimension_numbers = #tpu.dot_dimension_numbers<[1], [1], [0], [0], [0, 0, 1, 0], [], []>} : vector<16x16xf32>, vector<16x16xf32>, vector<16x16xf32> -> vector<16x16xf32>
    %c2_225 = arith.constant 2 : index
    %c1_226 = arith.constant 1 : index
    %444 = memref.load %arg25[%c2_225, %c1_226] : memref<3x2xf32, #tpu.memory_space<smem>>
    %445 = vector.broadcast %444 : f32 to vector<16x16xf32>
    %446 = arith.mulf %445, %443 : vector<16x16xf32>
    %447 = arith.addf %446, %427 : vector<16x16xf32>
    %c2_227 = arith.constant 2 : index
    %c0_228 = arith.constant 0 : index
    %c0_229 = arith.constant 0 : index
    %448 = vector.load %arg23[%c2_227, %c0_228, %c0_229] : memref<3x9x16xf32, #tpu.memory_space<vmem>>, vector<1x9x16xf32>
    %449 = vector.shape_cast %448 : vector<1x9x16xf32> to vector<9x16xf32>
    %c2_230 = arith.constant 2 : index
    %c0_231 = arith.constant 0 : index
    %c0_232 = arith.constant 0 : index
    %450 = vector.load %arg24[%c2_230, %c0_231, %c0_232] : memref<3x1x16xf32, #tpu.memory_space<vmem>>, vector<1x1x16xf32>
    %451 = vector.shape_cast %450 : vector<1x1x16xf32> to vector<1x16xf32>
    %c0_233 = arith.constant 0 : index
    %c0_234 = arith.constant 0 : index
    %452 = vector.load %arg9[%c0_233, %c0_234] : memref<144x16xf32, #tpu.memory_space<vmem>>, vector<144x16xf32>
    %cst_235 = arith.constant dense<0.000000e+00> : vector<144x16xf32>
    %453 = tpu.matmul %452, %447, %cst_235 {dimension_numbers = #tpu.dot_dimension_numbers<[1], [0], [0], [1], [0, 0, 1, 1], [], []>} : vector<144x16xf32>, vector<16x16xf32>, vector<144x16xf32> -> vector<144x16xf32>
    %cst_236 = arith.constant 0.000000e+00 : f32
    %454 = vector.broadcast %cst_236 : f32 to vector<16x16xf32>
    %455 = vector.extract_strided_slice %453 {offsets = [0, 0], sizes = [16, 16], strides = [1, 1]} : vector<144x16xf32> to vector<16x16xf32>
    %456 = vector.extract_strided_slice %449 {offsets = [0, 0], sizes = [1, 16], strides = [1, 1]} : vector<9x16xf32> to vector<1x16xf32>
    %457 = vector.broadcast %456 : vector<1x16xf32> to vector<16x16xf32>
    %458 = arith.mulf %455, %457 : vector<16x16xf32>
    %459 = arith.addf %454, %458 : vector<16x16xf32>
    %460 = vector.extract_strided_slice %453 {offsets = [16, 0], sizes = [16, 16], strides = [1, 1]} : vector<144x16xf32> to vector<16x16xf32>
    %461 = vector.extract_strided_slice %449 {offsets = [1, 0], sizes = [1, 16], strides = [1, 1]} : vector<9x16xf32> to vector<1x16xf32>
    %462 = vector.broadcast %461 : vector<1x16xf32> to vector<16x16xf32>
    %463 = arith.mulf %460, %462 : vector<16x16xf32>
    %464 = arith.addf %459, %463 : vector<16x16xf32>
    %465 = vector.extract_strided_slice %453 {offsets = [32, 0], sizes = [16, 16], strides = [1, 1]} : vector<144x16xf32> to vector<16x16xf32>
    %466 = vector.extract_strided_slice %449 {offsets = [2, 0], sizes = [1, 16], strides = [1, 1]} : vector<9x16xf32> to vector<1x16xf32>
    %467 = vector.broadcast %466 : vector<1x16xf32> to vector<16x16xf32>
    %468 = arith.mulf %465, %467 : vector<16x16xf32>
    %469 = arith.addf %464, %468 : vector<16x16xf32>
    %470 = vector.extract_strided_slice %453 {offsets = [48, 0], sizes = [16, 16], strides = [1, 1]} : vector<144x16xf32> to vector<16x16xf32>
    %471 = vector.extract_strided_slice %449 {offsets = [3, 0], sizes = [1, 16], strides = [1, 1]} : vector<9x16xf32> to vector<1x16xf32>
    %472 = vector.broadcast %471 : vector<1x16xf32> to vector<16x16xf32>
    %473 = arith.mulf %470, %472 : vector<16x16xf32>
    %474 = arith.addf %469, %473 : vector<16x16xf32>
    %475 = vector.extract_strided_slice %453 {offsets = [64, 0], sizes = [16, 16], strides = [1, 1]} : vector<144x16xf32> to vector<16x16xf32>
    %476 = vector.extract_strided_slice %449 {offsets = [4, 0], sizes = [1, 16], strides = [1, 1]} : vector<9x16xf32> to vector<1x16xf32>
    %477 = vector.broadcast %476 : vector<1x16xf32> to vector<16x16xf32>
    %478 = arith.mulf %475, %477 : vector<16x16xf32>
    %479 = arith.addf %474, %478 : vector<16x16xf32>
    %480 = vector.extract_strided_slice %453 {offsets = [80, 0], sizes = [16, 16], strides = [1, 1]} : vector<144x16xf32> to vector<16x16xf32>
    %481 = vector.extract_strided_slice %449 {offsets = [5, 0], sizes = [1, 16], strides = [1, 1]} : vector<9x16xf32> to vector<1x16xf32>
    %482 = vector.broadcast %481 : vector<1x16xf32> to vector<16x16xf32>
    %483 = arith.mulf %480, %482 : vector<16x16xf32>
    %484 = arith.addf %479, %483 : vector<16x16xf32>
    %485 = vector.extract_strided_slice %453 {offsets = [96, 0], sizes = [16, 16], strides = [1, 1]} : vector<144x16xf32> to vector<16x16xf32>
    %486 = vector.extract_strided_slice %449 {offsets = [6, 0], sizes = [1, 16], strides = [1, 1]} : vector<9x16xf32> to vector<1x16xf32>
    %487 = vector.broadcast %486 : vector<1x16xf32> to vector<16x16xf32>
    %488 = arith.mulf %485, %487 : vector<16x16xf32>
    %489 = arith.addf %484, %488 : vector<16x16xf32>
    %490 = vector.extract_strided_slice %453 {offsets = [112, 0], sizes = [16, 16], strides = [1, 1]} : vector<144x16xf32> to vector<16x16xf32>
    %491 = vector.extract_strided_slice %449 {offsets = [7, 0], sizes = [1, 16], strides = [1, 1]} : vector<9x16xf32> to vector<1x16xf32>
    %492 = vector.broadcast %491 : vector<1x16xf32> to vector<16x16xf32>
    %493 = arith.mulf %490, %492 : vector<16x16xf32>
    %494 = arith.addf %489, %493 : vector<16x16xf32>
    %495 = vector.extract_strided_slice %453 {offsets = [128, 0], sizes = [16, 16], strides = [1, 1]} : vector<144x16xf32> to vector<16x16xf32>
    %496 = vector.extract_strided_slice %449 {offsets = [8, 0], sizes = [1, 16], strides = [1, 1]} : vector<9x16xf32> to vector<1x16xf32>
    %497 = vector.broadcast %496 : vector<1x16xf32> to vector<16x16xf32>
    %498 = arith.mulf %495, %497 : vector<16x16xf32>
    %499 = arith.addf %494, %498 : vector<16x16xf32>
    %500 = vector.broadcast %451 : vector<1x16xf32> to vector<16x16xf32>
    %501 = arith.addf %499, %500 : vector<16x16xf32>
    %cst_237 = arith.constant 0.000000e+00 : f32
    %502 = vector.broadcast %cst_237 : f32 to vector<16x16xf32>
    %503 = arith.maximumf %501, %502 : vector<16x16xf32>
    %504 = arith.truncf %503 : vector<16x16xf32> to vector<16x16xbf16>
    %cst_238 = arith.constant dense<0.000000e+00> : vector<16x256xf32>
    %505 = tpu.matmul %504, %307, %cst_238 {dimension_numbers = #tpu.dot_dimension_numbers<[0], [0], [1], [1], [0, 1, 1, 1], [], []>} : vector<16x16xbf16>, vector<16x256xbf16>, vector<16x256xf32> -> vector<16x256xf32>
    %506 = arith.truncf %505 : vector<16x256xf32> to vector<16x256xbf16>
    %c0_239 = arith.constant 0 : index
    %c80 = arith.constant 80 : index
    %c0_240 = arith.constant 0 : index
    %507 = vector.load %arg26[%c0_239, %c80, %c0_240] : memref<1x96x256xbf16, #tpu.memory_space<vmem>>, vector<1x16x256xbf16>
    %508 = vector.shape_cast %507 : vector<1x16x256xbf16> to vector<16x256xbf16>
    %509 = vector.shape_cast %506 : vector<16x256xbf16> to vector<1x16x256xbf16>
    tpu.vector_store %arg26[%c0_239, %c80, %c0_240], %509 {strides = array<i32>} : memref<1x96x256xbf16, #tpu.memory_space<vmem>>, vector<1x16x256xbf16>,
    return
  }
  func.func @transform_0(%arg0: i32) -> (i32, i32, i32) {
    %c0_i32 = arith.constant 0 : i32
    %c0_i32_0 = arith.constant 0 : i32
    %c0_i32_1 = arith.constant 0 : i32
    return %arg0, %c0_i32, %c0_i32_0 : i32, i32, i32
  }
  func.func @transform_1(%arg0: i32) -> (i32, i32) {
    %c0_i32 = arith.constant 0 : i32
    %c0_i32_0 = arith.constant 0 : i32
    %c0_i32_1 = arith.constant 0 : i32
    return %c0_i32, %c0_i32_0 : i32, i32
  }
  func.func @transform_2(%arg0: i32) -> (i32, i32) {
    %c0_i32 = arith.constant 0 : i32
    %c0_i32_0 = arith.constant 0 : i32
    %c0_i32_1 = arith.constant 0 : i32
    return %c0_i32, %c0_i32_0 : i32, i32
  }
  func.func @transform_3(%arg0: i32) -> (i32, i32) {
    %c0_i32 = arith.constant 0 : i32
    %c0_i32_0 = arith.constant 0 : i32
    %c0_i32_1 = arith.constant 0 : i32
    return %c0_i32, %c0_i32_0 : i32, i32
  }
  func.func @transform_4(%arg0: i32) -> (i32, i32) {
    %c0_i32 = arith.constant 0 : i32
    %c0_i32_0 = arith.constant 0 : i32
    %c0_i32_1 = arith.constant 0 : i32
    return %c0_i32, %c0_i32_0 : i32, i32
  }
  func.func @transform_5(%arg0: i32) -> (i32, i32) {
    %c0_i32 = arith.constant 0 : i32
    %c0_i32_0 = arith.constant 0 : i32
    %c0_i32_1 = arith.constant 0 : i32
    return %c0_i32, %c0_i32_0 : i32, i32
  }
  func.func @transform_6(%arg0: i32) -> (i32, i32) {
    %c0_i32 = arith.constant 0 : i32
    %c0_i32_0 = arith.constant 0 : i32
    %c0_i32_1 = arith.constant 0 : i32
    return %c0_i32, %c0_i32_0 : i32, i32
  }
  func.func @transform_7(%arg0: i32) -> (i32, i32) {
    %c0_i32 = arith.constant 0 : i32
    %c0_i32_0 = arith.constant 0 : i32
    %c0_i32_1 = arith.constant 0 : i32
    return %c0_i32, %c0_i32_0 : i32, i32
  }
  func.func @transform_8(%arg0: i32) -> (i32, i32) {
    %c0_i32 = arith.constant 0 : i32
    %c0_i32_0 = arith.constant 0 : i32
    %c0_i32_1 = arith.constant 0 : i32
    return %c0_i32, %c0_i32_0 : i32, i32
  }
  func.func @transform_9(%arg0: i32) -> (i32, i32) {
    %c0_i32 = arith.constant 0 : i32
    %c0_i32_0 = arith.constant 0 : i32
    %c0_i32_1 = arith.constant 0 : i32
    return %c0_i32, %c0_i32_0 : i32, i32
  }
  func.func @transform_10(%arg0: i32) -> (i32, i32, i32) {
    %c0_i32 = arith.constant 0 : i32
    %c0_i32_0 = arith.constant 0 : i32
    %c0_i32_1 = arith.constant 0 : i32
    %c0_i32_2 = arith.constant 0 : i32
    return %c0_i32, %c0_i32_0, %c0_i32_1 : i32, i32, i32
  }
  func.func @transform_11(%arg0: i32) -> (i32, i32, i32) {
    %c0_i32 = arith.constant 0 : i32
    %c0_i32_0 = arith.constant 0 : i32
    %c0_i32_1 = arith.constant 0 : i32
    %c0_i32_2 = arith.constant 0 : i32
    return %c0_i32, %c0_i32_0, %c0_i32_1 : i32, i32, i32
  }
  func.func @transform_12(%arg0: i32) -> (i32, i32, i32) {
    %c0_i32 = arith.constant 0 : i32
    %c0_i32_0 = arith.constant 0 : i32
    %c0_i32_1 = arith.constant 0 : i32
    %c0_i32_2 = arith.constant 0 : i32
    return %c0_i32, %c0_i32_0, %c0_i32_1 : i32, i32, i32
  }
  func.func @transform_13(%arg0: i32) -> (i32, i32, i32) {
    %c0_i32 = arith.constant 0 : i32
    %c0_i32_0 = arith.constant 0 : i32
    %c0_i32_1 = arith.constant 0 : i32
    %c0_i32_2 = arith.constant 0 : i32
    return %c0_i32, %c0_i32_0, %c0_i32_1 : i32, i32, i32
  }
  func.func @transform_14(%arg0: i32) -> (i32, i32, i32) {
    %c0_i32 = arith.constant 0 : i32
    %c0_i32_0 = arith.constant 0 : i32
    %c0_i32_1 = arith.constant 0 : i32
    %c0_i32_2 = arith.constant 0 : i32
    return %c0_i32, %c0_i32_0, %c0_i32_1 : i32, i32, i32
  }
  func.func @transform_15(%arg0: i32) -> (i32, i32, i32) {
    %c0_i32 = arith.constant 0 : i32
    %c0_i32_0 = arith.constant 0 : i32
    %c0_i32_1 = arith.constant 0 : i32
    %c0_i32_2 = arith.constant 0 : i32
    return %c0_i32, %c0_i32_0, %c0_i32_1 : i32, i32, i32
  }
  func.func @transform_16(%arg0: i32) -> (i32, i32, i32) {
    %c0_i32 = arith.constant 0 : i32
    %c0_i32_0 = arith.constant 0 : i32
    %c0_i32_1 = arith.constant 0 : i32
    %c0_i32_2 = arith.constant 0 : i32
    return %c0_i32, %c0_i32_0, %c0_i32_1 : i32, i32, i32
  }
  func.func @transform_17(%arg0: i32) -> (i32, i32, i32) {
    %c0_i32 = arith.constant 0 : i32
    %c0_i32_0 = arith.constant 0 : i32
    %c0_i32_1 = arith.constant 0 : i32
    %c0_i32_2 = arith.constant 0 : i32
    return %c0_i32, %c0_i32_0, %c0_i32_1 : i32, i32, i32
  }
  func.func @transform_18(%arg0: i32) -> (i32, i32, i32) {
    %c0_i32 = arith.constant 0 : i32
    %c0_i32_0 = arith.constant 0 : i32
    %c0_i32_1 = arith.constant 0 : i32
    %c0_i32_2 = arith.constant 0 : i32
    return %c0_i32, %c0_i32_0, %c0_i32_1 : i32, i32, i32
  }
  func.func @transform_19(%arg0: i32) -> (i32, i32, i32) {
    %c0_i32 = arith.constant 0 : i32
    %c0_i32_0 = arith.constant 0 : i32
    %c0_i32_1 = arith.constant 0 : i32
    %c0_i32_2 = arith.constant 0 : i32
    return %c0_i32, %c0_i32_0, %c0_i32_1 : i32, i32, i32
  }
  func.func @transform_20(%arg0: i32) -> (i32, i32, i32) {
    %c0_i32 = arith.constant 0 : i32
    %c0_i32_0 = arith.constant 0 : i32
    %c0_i32_1 = arith.constant 0 : i32
    %c0_i32_2 = arith.constant 0 : i32
    return %c0_i32, %c0_i32_0, %c0_i32_1 : i32, i32, i32
  }
  func.func @transform_21(%arg0: i32) -> (i32, i32, i32) {
    %c0_i32 = arith.constant 0 : i32
    %c0_i32_0 = arith.constant 0 : i32
    %c0_i32_1 = arith.constant 0 : i32
    %c0_i32_2 = arith.constant 0 : i32
    return %c0_i32, %c0_i32_0, %c0_i32_1 : i32, i32, i32
  }
  func.func @transform_22(%arg0: i32) -> (i32, i32, i32) {
    %c0_i32 = arith.constant 0 : i32
    %c0_i32_0 = arith.constant 0 : i32
    %c0_i32_1 = arith.constant 0 : i32
    %c0_i32_2 = arith.constant 0 : i32
    return %c0_i32, %c0_i32_0, %c0_i32_1 : i32, i32, i32
  }
  func.func @transform_23(%arg0: i32) -> (i32, i32, i32) {
    %c0_i32 = arith.constant 0 : i32
    %c0_i32_0 = arith.constant 0 : i32
    %c0_i32_1 = arith.constant 0 : i32
    %c0_i32_2 = arith.constant 0 : i32
    return %c0_i32, %c0_i32_0, %c0_i32_1 : i32, i32, i32
  }
  func.func @transform_24(%arg0: i32) -> (i32, i32) {
    %c0_i32 = arith.constant 0 : i32
    %c0_i32_0 = arith.constant 0 : i32
    %c0_i32_1 = arith.constant 0 : i32
    return %c0_i32, %c0_i32_0 : i32, i32
  }
  func.func @transform_25(%arg0: i32) -> (i32, i32, i32) {
    %c0_i32 = arith.constant 0 : i32
    %c0_i32_0 = arith.constant 0 : i32
    %c0_i32_1 = arith.constant 0 : i32
    return %arg0, %c0_i32, %c0_i32_0 : i32, i32, i32
  }
}

</mosaic_0001>

<bundles_post_ra>
// kernel: _lambda_.3
= control target key start
LH: loop header
LB: loop body
LE: loop exit
PB: predicated region body
PF: predicated region fallthrough
CT: control target
= control target key end

     0   :  { %s761_s18 = smov 0   ;;  %s763_s19 = smov 0   ;;  %s828_s0 = inlined_call_operand.vmem [shape: bf16[2,4,256], index: 0, kind: input, shape index: {}]   ;;  %s829_s1 = inlined_call_operand.vmem [shape: bf16[2,96,256], index: 1, kind: input, shape index: {}]   ;;  %s830_s2 = inlined_call_operand.vmem [shape: bf16[16,4], index: 2, kind: input, shape index: {}]   ;;  %s831_s3 = inlined_call_operand.vmem [shape: bf16[16,96], index: 3, kind: input, shape index: {}]   ;;  %s832_s4 = inlined_call_operand.vmem [shape: f32[16,1], index: 4, kind: input, shape index: {}]   ;;  %s833_s5 = inlined_call_operand.vmem [shape: f32[2,16,256], index: 5, kind: output, shape index: {}]  }
   0x1   :  { %s765_s20 = smov 0  }
   0x2 LB: > { %s27_s21 = sadd.s32 1, %s724_s19  ;;  %p631_p0 = scmp.ge.s32.totalorder %s728_s20, 1  ;;  %s728_s20 = sphi %s765_s20, %s15_s20   ;;  %s724_s19 = sphi %s763_s19, %s835_s19   ;;  %s720_s18 = sphi %s761_s18, %s834_s18  }
   0x3   : > { %p29_p1 = scmp.ge.s32.totalorder %s27_s21, 2  ;;  %p225_p2 = scmp.lt.s32.totalorder %s728_s20, 3 }
   0x5   : > { %s837_s21 = smov (%p29_p1, %s27_s21), 0  ;;  %p226_p3 = pnand %p631_p0, %p225_p2 }
   0x6   : > { %p271_p4 = scmp.lt.s32.totalorder (!%p226_p3), %s720_s18, 1 }
   0x7   : > { %229 = sbr.rel (%p226_p3) target bundleno = 247 (0xf7), region = 40 }
   0xc   : > { %v730_v0 = vmov 0   ;;  %s839_s18 = smov (!%p271_p4, %s720_s18), 1  ;;  %v498_v1 = vld [vmem:[%s832_s4] sm:$0xff]  ;;  %vm448_vm0 = vcmask 1041408   ;;  %v499_v2 = vld [vmem:[%s832_s4 + $0x8] sm:$0xff]  ;;  %vm444_vm1 = vcmask 31744  }
   0xd   : > { %487 = vmatprep.mubr.bf16.mxu1 %v730_v0  ;;  %419 = vmatprep.mubr.bf16.mxu0 %v730_v0  ;;  %s659_s24 = smul.u32 96, %s839_s18  ;;  %s657_s25 = sshll.u32 %s839_s18, 2  ;;  %v701_v9 = vld [vmem:[%s830_s2] sm:$0xff]   ;;  %vm383_vm2 = vcmask 785408  }
   0xe   : > { %685 = vset.pattern.permute.xlu0 %v730_v0  ;;  %s278_s30 = scalar_lea.vmem %s828_s0, %s657_s25  ;;  %v705_v19 = vld [vmem:[%s831_s3] sm:$0xff]   ;;  %s658_s13 = sshll.u32 %s839_s18, 5 }
   0xf   : > { %502 = vperm.xlu0 %685, %v498_v1   ;;  %s795_s8 = scalar_lea.vmem %s829_s1, %s659_s24  ;;  %v652_v3 = vld.sshfl [vmem:[%s278_s30] sm:$0x33 pattern:$0x76325410]  ;;  %s298_s16 = scalar_lea.vmem %s833_s5, %s658_s13 }
  0x10   : > { %v686_v4 = vld [vmem:[%s795_s8 + $0x54] ss:$8 sps:$4 sm:$0xff]   ;;  %v443_v5 = vcombine.high %v652_v3, %v652_v3  ;;  %v450_v6 = vsel %vm448_vm0, %v652_v3, 0  ;;  %v688_v7 = vld [vmem:[%s795_s8 + $0x50] ss:$8 sps:$4 sm:$0xff]  }
  0x11   : > { %391 = vmatprep.subr.bf16.mxu0 %v686_v4  ;;  %v689_v8 = vld [vmem:[%s795_s8 + $0x44] ss:$8 sps:$4 sm:$0xff]   ;;  %v691_v10 = vld [vmem:[%s795_s8 + $0x40] ss:$8 sps:$4 sm:$0xff]   ;;  %v692_v11 = vld [vmem:[%s795_s8 + $0x34] ss:$8 sps:$4 sm:$0xff]  }
  0x12   : > { %653 = vmatprep.subr.msk.bf16.mxu1 %vm448_vm0, %v443_v5  ;;  %392 = vmatpush1.bf16.msra.mxu0 %v688_v7  ;;  %v694_v12 = vld [vmem:[%s795_s8 + $0x30] ss:$8 sps:$4 sm:$0xff]   ;;  %v695_v13 = vld [vmem:[%s795_s8 + $0x24] ss:$8 sps:$4 sm:$0xff]   ;;  %v697_v14 = vld [vmem:[%s795_s8 + $0x20] ss:$8 sps:$4 sm:$0xff]  }
  0x13   : > { %507 = vperm.xlu0 %685, %v499_v2   ;;  %470 = vmatpush1.bf16.msra.mxu1 %v450_v6  ;;  %v698_v15 = vld [vmem:[%s795_s8 + $0x14] ss:$8 sps:$4 sm:$0xff]   ;;  %v700_v16 = vld [vmem:[%s795_s8 + $0x10] ss:$8 sps:$4 sm:$0xff]   ;;  %v702_v17 = vld [vmem:[%s795_s8 + $0x4] ss:$8 sps:$4 sm:$0xff]  }
  0x14   : > { %393 = vmatprep.subr.bf16.mxu0 %v689_v8  ;;  %v704_v18 = vld [vmem:[%s795_s8] ss:$8 sps:$4 sm:$0xff]  }
  0x16   : > { %654 = vmatmul.mubr.msk.bf16.vlgmr.msra.gmra.mxu1 %vm444_vm1, %v701_v9  ;;  %394 = vmatpush1.bf16.msra.mxu0 %v691_v10 }
  0x17   : > { %395 = vmatprep.subr.bf16.mxu0 %v692_v11 }
  0x1a   : > { %396 = vmatpush1.bf16.msra.mxu0 %v694_v12 }
  0x1b   : > { %397 = vmatprep.subr.bf16.mxu0 %v695_v13 }
  0x1e   : > { %398 = vmatpush1.bf16.msra.mxu0 %v697_v14 }
  0x1f   : > { %399 = vmatprep.subr.bf16.mxu0 %v698_v15 }
  0x22   : > { %400 = vmatpush1.bf16.msra.mxu0 %v700_v16 }
  0x23   : > { %401 = vmatprep.subr.bf16.mxu0 %v702_v17 }
  0x26   : > { %402 = vmatpush1.bf16.msra.mxu0 %v704_v18 }
  0x29   : > { %650 = vmatmul.mubr.msk.bf16.vlgmr.msra.gmra.mxu0 %vm383_vm2, %v705_v19 }
  0x8a   : > { %v503_v22 = vpop.permute.xlu0 %502 }
  0x8e   : > { %v508_v32 = vpop.permute.xlu0 %507 }
  0xd6   : > { %v489_v20 = vpop.f32.mrf.mxu1 }
  0xd8   : > { %v491_v21 = vpop.f32.mrf.mxu1 }
  0xda   : > { %v493_v25 = vpop.f32.mrf.mxu1 }
  0xdc   : > { %v495_v34 = vpop.f32.mrf.mxu1 }
  0xe9   : > { %v421_v23 = vpop.f32.mrf.mxu0 }
  0xea   : > { %v490_v24 = vadd.f32 %v489_v20, %v421_v23 }
  0xeb   : > { %v423_v26 = vpop.f32.mrf.mxu0 }
  0xec   : > { %v510_v27 = vadd.f32 %v503_v22, %v490_v24  ;;  %v492_v28 = vadd.f32 %v491_v21, %v423_v26 }
  0xed   : > { %v425_v29 = vpop.f32.mrf.mxu0 }
  0xee   : > { %v514_v30 = vmax.f32 %v510_v27, 0.0  ;;  %v511_v31 = vadd.f32 %v503_v22, %v492_v28  ;;  %v494_v33 = vadd.f32 %v493_v25, %v425_v29 }
  0xef   : > { %v427_v35 = vpop.f32.mrf.mxu0 }
  0xf0   : > { %518 = vst [vmem:[%s298_s16] sm:$0xff] %v514_v30  ;;  %v515_v36 = vmax.f32 %v511_v31, 0.0  ;;  %v512_v37 = vadd.f32 %v508_v32, %v494_v33  ;;  %v496_v38 = vadd.f32 %v495_v34, %v427_v35 }
  0xf2   : > { %519 = vst [vmem:[%s298_s16 + $0x8] sm:$0xff] %v515_v36  ;;  %v516_v39 = vmax.f32 %v512_v37, 0.0  ;;  %v513_v40 = vadd.f32 %v508_v32, %v496_v38 }
  0xf4   : > { %520 = vst [vmem:[%s298_s16 + $0x10] sm:$0xff] %v516_v39  ;;  %v517_v41 = vmax.f32 %v513_v40, 0.0 }
  0xf6   : > { %521 = vst [vmem:[%s298_s16 + $0x18] sm:$0xff] %v517_v41 }
  0xf7 PF: > { %s15_s20 = sadd.s32 1, %s728_s20   ;;  %s834_s18 = smov %s724_s19 }
  0xf8   : > { %p12_p5 = scmp.ge.s32.totalorder %s15_s20, 4   ;;  %s835_s19 = smov %s837_s21 }
  0xfa   :  { %14 = sbr.rel (!%p12_p5) target bundleno = 2 (0x2), region = 73 }

// kernel: _lambda_.2
= control target key start
LH: loop header
LB: loop body
LE: loop exit
PB: predicated region body
PF: predicated region fallthrough
CT: control target
= control target key end

     0   :  { %s7221_s0 = inlined_call_operand.vmem [shape: bf16[2,4,256], index: 0, kind: input, shape index: {}]   ;;  %s7222_s1 = inlined_call_operand.vmem [shape: bf16[1,256], index: 1, kind: input, shape index: {}]   ;;  %s7223_s2 = inlined_call_operand.hbm [shape: f32[9,1], index: 2, kind: input, shape index: {}]   ;;  %s7224_s3 = inlined_call_operand.vmem [shape: bf16[1,256], index: 3, kind: input, shape index: {}]   ;;  %s7225_s4 = inlined_call_operand.hbm [shape: bf16[4,256], index: 4, kind: input, shape index: {}]   ;;  %s7226_s5 = inlined_call_operand.hbm [shape: f32[36,4], index: 5, kind: input, shape index: {}]   ;;  %s7227_s6 = inlined_call_operand.hbm [shape: bf16[4,256], index: 6, kind: input, shape index: {}]   ;;  %s7228_s7 = inlined_call_operand.hbm [shape: bf16[16,256], index: 7, kind: input, shape index: {}]   ;;  %s7229_s8 = inlined_call_operand.vmem [shape: f32[144,16], index: 8, kind: input, shape index: {}]   ;;  %s7230_s9 = inlined_call_operand.hbm [shape: bf16[16,256], index: 9, kind: input, shape index: {}]   ;;  %s7231_s10 = inlined_call_operand.vmem [shape: bf16[3,4,16], index: 10, kind: input, shape index: {}]   ;;  %s7232_s11 = inlined_call_operand.hbm [shape: f32[3,1,16], index: 11, kind: input, shape index: {}]   ;;  %s7233_s12 = inlined_call_operand.vmem [shape: bf16[3,4,16], index: 12, kind: input, shape index: {}]   ;;  %s7234_s13 = inlined_call_operand.hbm [shape: f32[3,1,16], index: 13, kind: input, shape index: {}]   ;;  %s7235_s14 = inlined_call_operand.hbm [shape: f32[3,16,2], index: 14, kind: input, shape index: {}]   ;;  %s7236_s15 = inlined_call_operand.hbm [shape: f32[3,1,2], index: 15, kind: input, shape index: {}]   ;;  %s7237_s16 = inlined_call_operand.hbm [shape: f32[3,16,2], index: 16, kind: input, shape index: {}]   ;;  %s7238_s17 = inlined_call_operand.hbm [shape: f32[3,1,2], index: 17, kind: input, shape index: {}]   ;;  %s7239_s18 = inlined_call_operand.vmem [shape: f32[3,16,16], index: 18, kind: input, shape index: {}]   ;;  %s7240_s19 = inlined_call_operand.vmem [shape: f32[3,1,16], index: 19, kind: input, shape index: {}]   ;;  %s7241_s20 = inlined_call_operand.vmem [shape: f32[3,9,16], index: 20, kind: input, shape index: {}]   ;;  %s7242_s21 = inlined_call_operand.vmem [shape: f32[3,1,16], index: 21, kind: input, shape index: {}]   ;;  %s7243_s22 = inlined_call_operand.vmem [shape: f32[3,9,16], index: 22, kind: input, shape index: {}]   ;;  %s7244_s23 = inlined_call_operand.vmem [shape: f32[3,1,16], index: 23, kind: input, shape index: {}]   ;;  %s7245_s24 = inlined_call_operand.vmem [shape: f32[3,2], index: 24, kind: input, shape index: {}]   ;;  %s7246_s25 = inlined_call_operand.vmem [shape: bf16[2,96,256], index: 25, kind: output, shape index: {}]  }
   0x1   :  { %7254 = sst [smem:[#allocation32_spill]] %s7221_s0 }
   0x2   :  { %7255 = sst [smem:[#allocation33_spill]] %s7222_s1 }
   0x3   :  { %7256 = sst [smem:[#allocation34_spill]] %s7223_s2 }
   0x4   :  { %7257 = sst [smem:[#allocation35_spill]] %s7224_s3 }
   0x5   :  { %7258 = sst [smem:[#allocation36_spill]] %s7225_s4 }
   0x6   :  { %7259 = sst [smem:[#allocation37_spill]] %s7226_s5 }
   0x7   :  { %7260 = sst [smem:[#allocation38_spill]] %s7227_s6 }
   0x8   :  { %7261 = sst [smem:[#allocation39_spill]] %s7228_s7 }
   0x9   :  { %7262 = sst [smem:[#allocation40_spill]] %s7229_s8 }
   0xa   :  { %7263 = sst [smem:[#allocation41_spill]] %s7230_s9 }
   0xb   :  { %7264 = sst [smem:[#allocation42_spill]] %s7243_s22 }
   0xc   :  { %7265 = sst [smem:[#allocation43_spill]] %s7244_s23 }
   0xd   :  { %30 = vsyncpa [#allocation3], 0 }
   0xe   :  { %31 = vsyncpa [#allocation6], 0 }
   0xf   :  { %32 = vsyncpa [#allocation9], 0 }
  0x10   :  { %33 = vsyncpa [#allocation12], 0 }
  0x11   :  { %34 = vsyncpa [#allocation15], 0 }
  0x12   :  { %35 = vsyncpa [#allocation18], 0 }
  0x13   :  { %36 = vsyncpa [#allocation21], 0 }
  0x14   :  { %37 = vsyncpa [#allocation4], 0  ;;  %s6400_s29 = smov 0  }
  0x15 LB: > { %7266 = sst [smem:[#allocation31_spill]] %s6247_s29  ;;  %s6249_s2 = smov [#allocation5]   ;;  %s6247_s29 = sphi %s6400_s29, %s43_s29  }
  0x16   : > { %s636_s6 = sshll.u32 %s6249_s2, 4  ;;  %s6406_s30 = sadd.s32 4294967295, %s6247_s29   ;;  %s637_s6 = int_to_ptr.vmem [resolvable:$true] %s636_s6 }
  0x17   : > { %p5080_p0 = scmp.ge.s32.totalorder %s6247_s29, 1  ;;  %p604_p1 = scmp.lt.s32.totalorder %s6247_s29, 3 }
  0x18   : > { %p7248_p2 = scmp.eq.s32.totalorder %s6406_s30, 0  ;;  %s6250_s3 = smov [#allocation8]  }
  0x19   : > { %p6411_p3 = pnand %p5080_p0, %p604_p1  ;;  %s660_s26 = sshll.u32 %s6250_s3, 4  ;;  %s661_s26 = int_to_ptr.vmem [resolvable:$true] %s660_s26 }
  0x1a   : > { %s6251_s8 = smov [#allocation11]   ;;  %s5893_s28 = scalar_lea.vmem %s637_s6, 64 }
  0x1b   : > { %s7267_s7 = scalar_select %p6411_p3, 1, 0 }
  0x1c   : > { %p5740_p4 = pneg %p6411_p3  ;;  %s686_s27 = sshll.u32 %s6251_s8, 4  ;;  %s6423_s27 = int_to_ptr.vmem [resolvable:$true] %s686_s27 }
  0x1d   : > { %p5894_p7 = scmp.ne.s32.totalorder %s637_s6, %s5893_s28  ;;  %p5901_p10 = scmp.lt.s32.totalorder %s637_s6, %s637_s6 }
  0x1e   : > { %p6419_p5 = pnand %p7248_p2, %p5740_p4  ;;  %p5902_p11 = scmp.lt.s32.totalorder %s5893_s28, %s5893_s28 }
  0x20   : > { %p6427_p6 = pneg %p6419_p5  ;;  %p5903_p12 = por %p5902_p11, %p5901_p10 }
  0x22   : > { %p5896_p8 = pnand %p5894_p7, %p6427_p6 }
  0x24   : > { %p5897_p9 = pneg %p5896_p8 }
  0x26   : > { %p5904_p13 = pnand %p5903_p12, %p5897_p9 }
  0x28   : > { %5907 = shalt.err (!%p5904_p13)
}
  0x29   : > { %s7270_s0 = sld [smem:[#allocation36_spill]]  ;;  %s5919_s2 = scalar_lea.vmem %s661_s26, 64 }
  0x2a   : > { %p5920_p0 = scmp.ne.s32.totalorder %s661_s26, %s5919_s2  ;;  %p5927_p2 = scmp.lt.s32.totalorder %s661_s26, %s661_s26 }
  0x2b   : > { %p5928_p7 = scmp.lt.s32.totalorder %s5919_s2, %s5919_s2 }
  0x2c   : > { %p5922_p1 = pnand %p5920_p0, %p6427_p6 }
  0x2d   : > { %p5929_p8 = por %p5928_p7, %p5927_p2 }
  0x2e   : > { %p5923_p4 = pneg %p5922_p1 }
  0x2f   : > { %5746 = dma.hbm_to_vmem [thread:$0]  (!%p6419_p5), %s7270_s0, 64, %s637_s6, [#allocation6]  }
  0x30   : > { %p5930_p3 = pnand %p5929_p8, %p5923_p4 }
  0x32   : > { %5933 = shalt.err (!%p5930_p3)
}
  0x33   : > { %s7271_s28 = sld [smem:[#allocation38_spill]]  ;;  %s5945_s6 = scalar_lea.vmem %s6423_s27, 256 }
  0x34   : > { %p5946_p9 = scmp.ne.s32.totalorder %s6423_s27, %s5945_s6  ;;  %p5953_p12 = scmp.lt.s32.totalorder %s6423_s27, %s6423_s27 }
  0x35   : > { %p5954_p2 = scmp.lt.s32.totalorder %s5945_s6, %s5945_s6 }
  0x36   : > { %p5948_p10 = pnand %p5946_p9, %p6427_p6 }
  0x37   : > { %p5955_p13 = por %p5954_p2, %p5953_p12 }
  0x38   : > { %p5949_p11 = pneg %p5948_p10 }
  0x39   : > { %5752 = dma.hbm_to_vmem [thread:$0]  (!%p6419_p5), %s7271_s28, 64, %s661_s26, [#allocation9]  }
  0x3a   : > { %p5956_p3 = pnand %p5955_p13, %p5949_p11 }
  0x3c   : > { %5959 = shalt.err (!%p5956_p3)
}
  0x3d   : > { %s6252_s9 = smov 128   ;;  %s6253_s5 = smov 8  }
  0x3e   : > { %s7272_s2 = sld [smem:[#allocation41_spill]]  ;;  %s6254_s3 = smov [#allocation14]  }
  0x3f   : > { %s718_s8 = sshll.u32 %s6254_s3, 4  ;;  %s6255_s28 = smov [#allocation17]   ;;  %s719_s8 = int_to_ptr.vmem [resolvable:$true] %s718_s8 }
  0x40   : > { %s744_s6 = sshll.u32 %s6255_s28, 4  ;;  %s5971_s29 = scalar_lea.vmem %s719_s8, 48  ;;  %s745_s6 = int_to_ptr.vmem [resolvable:$true] %s744_s6 }
  0x41   : > { %p5972_p0 = scmp.ne.s32.totalorder %s719_s8, %s5971_s29  ;;  %s5978_s23 = scalar_lea.vmem %s719_s8, 64 }
  0x42   : > { %p5979_p7 = scmp.lt.s32.totalorder %s719_s8, %s719_s8  ;;  %p5980_p8 = scmp.lt.s32.totalorder %s5978_s23, %s5971_s29 }
  0x43   : > { %p5974_p1 = pnand %p5972_p0, %p6427_p6 }
  0x44   : > { %5758 = dma.hbm_to_vmem [thread:$0]  (!%p6419_p5), %s7272_s2, 256, %s6423_s27, [#allocation12], %s6252_s9, %s6252_s9, %s6253_s5  }
  0x45   : > { %p5975_p4 = pneg %p5974_p1  ;;  %p5981_p9 = por %p5980_p8, %p5979_p7 }
  0x47   : > { %p5982_p10 = pnand %p5981_p9, %p5975_p4 }
  0x49   : > { %5985 = shalt.err (!%p5982_p10)
}
  0x4a   : > { %s7253_s22 = smov 16   ;;  %s6257_s27 = smov 1  }
  0x4b   : > { %5764 = dma.hbm_to_vmem [thread:$0]  (!%p6419_p5), %s7234_s13, 48, %s719_s8, [#allocation15], %s7253_s22, %s7253_s22, %s6257_s27  }
  0x4c   : > { %s5997_s2 = scalar_lea.vmem %s745_s6, 48  ;;  %s6004_s23 = scalar_lea.vmem %s745_s6, 64 }
  0x4d   : > { %p5998_p11 = scmp.ne.s32.totalorder %s745_s6, %s5997_s2  ;;  %p6005_p13 = scmp.lt.s32.totalorder %s745_s6, %s745_s6 }
  0x4e   : > { %p6006_p3 = scmp.lt.s32.totalorder %s6004_s23, %s5997_s2 }
  0x4f   : > { %p6000_p12 = pnand %p5998_p11, %p6427_p6 }
  0x50   : > { %p6007_p0 = por %p6006_p3, %p6005_p13 }
  0x51   : > { %p6001_p2 = pneg %p6000_p12 }
  0x53   : > { %p6008_p1 = pnand %p6007_p0, %p6001_p2 }
  0x55   : > { %6011 = shalt.err (!%p6008_p1)
}
  0x56   : > { %5770 = dma.hbm_to_vmem [thread:$0]  (!%p6419_p5), %s7236_s15, 48, %s745_s6, [#allocation18], %s7253_s22, %s7253_s22, %s6257_s27  }
  0x57   : > { %s6258_s8 = smov [#allocation2]   ;;  %s6259_s26 = smov [#allocation7]  }
  0x58   : > { %s619_s28 = sshll.u32 %s6258_s8, 4  ;;  %s646_s0 = sshll.u32 %s6259_s26, 4  ;;  %s620_s28 = int_to_ptr.vmem [resolvable:$true] %s619_s28  ;;  %s647_s0 = int_to_ptr.vmem [resolvable:$true] %s646_s0 }
  0x59   : > { %s6023_s2 = scalar_lea.vmem %s620_s28, 256  ;;  %p6031_p9 = scmp.lt.s32.totalorder %s620_s28, %s620_s28 }
  0x5a   : > { %p6024_p4 = scmp.ne.s32.totalorder %s620_s28, %s6023_s2  ;;  %p6032_p10 = scmp.lt.s32.totalorder %s6023_s2, %s6023_s2 }
  0x5c   : > { %p6026_p7 = pnand %p6024_p4, %p6427_p6  ;;  %p6033_p11 = por %p6032_p10, %p6031_p9 }
  0x5e   : > { %p6027_p8 = pneg %p6026_p7 }
  0x60   : > { %p6034_p12 = pnand %p6033_p11, %p6027_p8 }
  0x62   : > { %6037 = shalt.err (!%p6034_p12)
}
  0x63   : > { %s7273_s29 = sld [smem:[#allocation34_spill]]  ;;  %s6049_s3 = scalar_lea.vmem %s647_s0, 640 }
  0x64   : > { %p6050_p2 = scmp.ne.s32.totalorder %s647_s0, %s6049_s3  ;;  %p6057_p0 = scmp.lt.s32.totalorder %s647_s0, %s647_s0 }
  0x65   : > { %p6058_p1 = scmp.lt.s32.totalorder %s6049_s3, %s6049_s3 }
  0x66   : > { %p6052_p13 = pnand %p6050_p2, %p6427_p6 }
  0x67   : > { %p6059_p4 = por %p6058_p1, %p6057_p0 }
  0x68   : > { %p6053_p3 = pneg %p6052_p13 }
  0x69   : > { %5743 = dma.hbm_to_vmem [thread:$0]  (!%p6419_p5), %s7273_s29, 256, %s620_s28, [#allocation3], %s6252_s9, %s6252_s9, %s6253_s5  }
  0x6a   : > { %p6060_p7 = pnand %p6059_p4, %p6053_p3 }
  0x6c   : > { %6063 = shalt.err (!%p6060_p7)
}
  0x6d   : > { %s7274_s2 = sld [smem:[#allocation37_spill]]  ;;  %s6260_s28 = smov [#allocation10]  }
  0x6e   : > { %s670_s6 = sshll.u32 %s6260_s28, 4  ;;  %s6261_s23 = smov [#allocation13]   ;;  %s671_s6 = int_to_ptr.vmem [resolvable:$true] %s670_s6 }
  0x6f   : > { %s702_s29 = sshll.u32 %s6261_s23, 4  ;;  %s6075_s3 = scalar_lea.vmem %s671_s6, 256  ;;  %s703_s29 = int_to_ptr.vmem [resolvable:$true] %s702_s29 }
  0x70   : > { %p6076_p8 = scmp.ne.s32.totalorder %s671_s6, %s6075_s3  ;;  %p6083_p11 = scmp.lt.s32.totalorder %s671_s6, %s671_s6 }
  0x71   : > { %p6084_p12 = scmp.lt.s32.totalorder %s6075_s3, %s6075_s3 }
  0x72   : > { %p6078_p9 = pnand %p6076_p8, %p6427_p6 }
  0x73   : > { %5749 = dma.hbm_to_vmem [thread:$0]  (!%p6419_p5), %s7274_s2, 640, %s647_s0, [#allocation6], %s6252_s9, %s6252_s9, %s6253_s5  }
  0x74   : > { %p6079_p10 = pneg %p6078_p9  ;;  %p6085_p2 = por %p6084_p12, %p6083_p11 }
  0x76   : > { %p6086_p13 = pnand %p6085_p2, %p6079_p10 }
  0x78   : > { %6089 = shalt.err (!%p6086_p13)
}
  0x79   : > { %s7275_s26 = sld [smem:[#allocation39_spill]]  ;;  %s6101_s2 = scalar_lea.vmem %s703_s29, 48 }
  0x7a   : > { %p6102_p3 = scmp.ne.s32.totalorder %s703_s29, %s6101_s2  ;;  %s6108_s28 = scalar_lea.vmem %s703_s29, 64 }
  0x7b   : > { %p6109_p4 = scmp.lt.s32.totalorder %s703_s29, %s703_s29  ;;  %p6110_p7 = scmp.lt.s32.totalorder %s6108_s28, %s6101_s2 }
  0x7c   : > { %p6104_p0 = pnand %p6102_p3, %p6427_p6 }
  0x7d   : > { %p6111_p8 = por %p6110_p7, %p6109_p4 }
  0x7e   : > { %p6105_p1 = pneg %p6104_p0 }
  0x7f   : > { %5755 = dma.hbm_to_vmem [thread:$0]  (!%p6419_p5), %s7275_s26, 256, %s671_s6, [#allocation9], %s6252_s9, %s6252_s9, %s6253_s5  }
  0x80   : > { %p6112_p9 = pnand %p6111_p8, %p6105_p1 }
  0x82   : > { %6115 = shalt.err (!%p6112_p9)
}
  0x83   : > { %5761 = dma.hbm_to_vmem [thread:$0]  (!%p6419_p5), %s7232_s11, 48, %s703_s29, [#allocation12], %s7253_s22, %s7253_s22, %s6257_s27  }
  0x84   : > { %s6262_s6 = smov [#allocation16]   ;;  %s6263_s8 = smov [#allocation19]  }
  0x85   : > { %s731_s0 = sshll.u32 %s6262_s6, 4  ;;  %s757_s26 = sshll.u32 %s6263_s8, 4  ;;  %s732_s0 = int_to_ptr.vmem [resolvable:$true] %s731_s0  ;;  %s758_s26 = int_to_ptr.vmem [resolvable:$true] %s757_s26 }
  0x86   : > { %s6127_s2 = scalar_lea.vmem %s732_s0, 768  ;;  %p6135_p2 = scmp.lt.s32.totalorder %s732_s0, %s732_s0 }
  0x87   : > { %p6128_p10 = scmp.ne.s32.totalorder %s732_s0, %s6127_s2  ;;  %p6136_p13 = scmp.lt.s32.totalorder %s6127_s2, %s6127_s2 }
  0x89   : > { %p6130_p11 = pnand %p6128_p10, %p6427_p6  ;;  %p6137_p3 = por %p6136_p13, %p6135_p2 }
  0x8b   : > { %p6131_p12 = pneg %p6130_p11 }
  0x8d   : > { %p6138_p0 = pnand %p6137_p3, %p6131_p12 }
  0x8f   : > { %6141 = shalt.err (!%p6138_p0)
}
  0x90   : > { %5767 = dma.hbm_to_vmem [thread:$0]  (!%p6419_p5), %s7235_s14, 768, %s732_s0, [#allocation15], %s6252_s9, %s6252_s9, %s6253_s5  }
  0x91   : > { %s6153_s23 = scalar_lea.vmem %s758_s26, 768  ;;  %p6161_p8 = scmp.lt.s32.totalorder %s758_s26, %s758_s26 }
  0x92   : > { %p6154_p1 = scmp.ne.s32.totalorder %s758_s26, %s6153_s23  ;;  %p6162_p9 = scmp.lt.s32.totalorder %s6153_s23, %s6153_s23 }
  0x94   : > { %p6156_p4 = pnand %p6154_p1, %p6427_p6  ;;  %p6163_p10 = por %p6162_p9, %p6161_p8 }
  0x96   : > { %p6157_p7 = pneg %p6156_p4 }
  0x98   : > { %p6164_p11 = pnand %p6163_p10, %p6157_p7 }
  0x9a   : > { %6167 = shalt.err (!%p6164_p11)
}
  0x9b   : > { %5773 = dma.hbm_to_vmem [thread:$0]  (!%p6419_p5), %s7237_s16, 768, %s758_s26, [#allocation18], %s6252_s9, %s6252_s9, %s6253_s5  }
  0x9c   : > { %s802_s2 = sshll.u32 %s7245_s24, 4  ;;  %s6264_s29 = smov [#allocation20]   ;;  %s803_s2 = int_to_ptr.vmem [resolvable:$true] %s802_s2 }
  0x9d   : > { %s770_s28 = sshll.u32 %s6264_s29, 4  ;;  %s771_s28 = int_to_ptr.vmem [resolvable:$true] %s770_s28 }
  0x9e   : > { %s6179_s23 = scalar_lea.vmem %s771_s28, 48  ;;  %s6186_s22 = scalar_lea.vmem %s771_s28, 64 }
  0x9f   : > { %p6180_p12 = scmp.ne.s32.totalorder %s771_s28, %s6179_s23  ;;  %p6187_p3 = scmp.lt.s32.totalorder %s771_s28, %s771_s28 }
  0xa0   : > { %p6188_p0 = scmp.lt.s32.totalorder %s6186_s22, %s6179_s23 }
  0xa1   : > { %p6182_p2 = pnand %p6180_p12, %p6427_p6 }
  0xa2   : > { %p6189_p1 = por %p6188_p0, %p6187_p3 }
  0xa3   : > { %p6183_p13 = pneg %p6182_p2 }
  0xa5   : > { %p6190_p4 = pnand %p6189_p1, %p6183_p13 }
  0xa7   : > { %6193 = shalt.err (!%p6190_p4)
}
  0xa8   : > { %s7276_s9 = smov 16   ;;  %s6194_s3 = scalar_lea.vmem %s803_s2, 64 }
  0xa9   : > { %5776 = dma.hbm_to_vmem [thread:$0]  (!%p6419_p5), %s7238_s17, 48, %s771_s28, [#allocation21], %s7276_s9, %s7276_s9, %s6257_s27  }
  0xaa   : > { %p6195_p7 = scmp.ne.s32.totalorder %s803_s2, %s6194_s3  ;;  %p6202_p10 = scmp.lt.s32.totalorder %s803_s2, %s803_s2 }
  0xab   : > { %p6203_p11 = scmp.lt.s32.totalorder %s6194_s3, %s6194_s3 }
  0xac   : > { %p6197_p8 = pnand %p6195_p7, %p6427_p6 }
  0xad   : > { %p6204_p12 = por %p6203_p11, %p6202_p10 }
  0xae   : > { %p6198_p9 = pneg %p6197_p8 }
  0xb0   : > { %p6205_p2 = pnand %p6204_p12, %p6198_p9 }
  0xb2   : > { %6208 = shalt.err (!%p6205_p2)
}
  0xb3   : > { %s6265_s22 = smov [#allocation22]   ;;  %p7277_p13 = scmp.ne.s32.totalorder %s7267_s7, 0 }
  0xb4   : > { %5779 = dma.vmem_to_smem (!%p6419_p5), %s803_s2, 64, %s6265_s22, [#allocation4]  }
  0xb5   : > { %823 = sbr.rel (%p7277_p13) target bundleno = 8596 (0x2194), region = 120  ;;  %p7278_p3 = scmp.eq.s32.totalorder (!%p7277_p13), %s6406_s30, 0 }
  0xba   : > { %6214 = dma.done.wait (%p7278_p3), [#allocation3], 256   ;;  %p7279_p0 = pmov %p7278_p3 }
  0xbc   : > { %6216 = vsyncadd (%p7279_p0), [#allocation3], 4294967040  ;;  %p7280_p6 = pmov %p7279_p0 }
  0xbd   : > { %p7281_p1 = pmov %p7279_p0 }
  0xbe   : > { %6218 = dma.done.wait (%p7280_p6), [#allocation6], 704  }
  0xbf   : > { %6220 = vsyncadd (%p7281_p1), [#allocation6], 4294966592  ;;  %p7282_p4 = pmov %p7279_p0 }
  0xc0   : > { %p7283_p5 = pmov %p7279_p0 }
  0xc1   : > { %6222 = dma.done.wait (%p7282_p4), [#allocation9], 320  }
  0xc2   : > { %6224 = vsyncadd (%p7283_p5), [#allocation9], 4294966976  ;;  %p7284_p7 = pmov %p7279_p0 }
  0xc3   : > { %p7285_p8 = pmov %p7279_p0 }
  0xc4   : > { %6226 = dma.done.wait (%p7284_p7), [#allocation12], 304  }
  0xc5   : > { %6228 = vsyncadd (%p7285_p8), [#allocation12], 4294966992  ;;  %p7286_p9 = pmov %p7279_p0 }
  0xc6   : > { %p7287_p10 = pmov %p7279_p0 }
  0xc7   : > { %6230 = dma.done.wait (%p7286_p9), [#allocation15], 816  }
  0xc8   : > { %6232 = vsyncadd (%p7287_p10), [#allocation15], 4294966480  ;;  %p7288_p11 = pmov %p7279_p0 }
  0xc9   : > { %p7289_p12 = pmov %p7279_p0 }
  0xca   : > { %6234 = dma.done.wait (%p7288_p11), [#allocation18], 816  }
  0xcb   : > { %6236 = vsyncadd (%p7289_p12), [#allocation18], 4294966480  ;;  %p7290_p2 = pmov %p7279_p0 }
  0xcc   : > { %p7291_p13 = pmov %p7279_p0 }
  0xcd   : > { %6238 = dma.done.wait (%p7290_p2), [#allocation21], 48  }
  0xce   : > { %6240 = vsyncadd (%p7291_p13), [#allocation21], 4294967248  ;;  %p7292_p3 = pmov %p7279_p0 }
  0xd0   : > { %6242 = dma.done.wait (%p7292_p3), [#allocation4], 64  }
  0xd1   : > { %6244 = vsyncadd (%p7279_p0), [#allocation4], 4294967232 }
  0xd2   : > { %877 = sfence }
  0xd3   : > { %p940_p6 = scmp.lt.s32.totalorder %s6406_s30, 1  ;;  %s7293_s4 = sld [smem:[#allocation33_spill]]  ;;  %v966_v1 = vlaneseq  ;;  %v6266_v2 = vmov 0.0   ;;  %v6267_v3 = vmov 1966171168   ;;  %vm1037_vm0 = vcmask 1041408  }
  0xd4   : > { %5438 = vmatprep.subr.mxu0 %v6266_v2  ;;  %v964_v4 = vunpack.c.l.s4 %v6267_v3  ;;  %s7294_s8 = sld [smem:[#allocation32_spill]]  ;;  %v1031_v13 = vld [vmem:[%s7231_s10] sm:$0x3]  ;;  %vm6268_vm1 = vmmov 0   ;;  %vm1033_vm2 = vcmask 31744   ;;  %v1083_v20 = vld [vmem:[#allocation16 + $0x8] sm:$0xff] }
  0xd5   : > { %s7301_s30 = smov (!%p940_p6, %s6406_s30), 1  ;;  %v6599_v5 = vshrl.u32 %v966_v1, 7  ;;  %v1039_v14 = vsel %vm1037_vm0, %v1031_v13, 0  ;;  %5442 = vmatprep.mubr.msk.f32.mxu0 %vm6268_vm1, %v6266_v2  ;;  %v1160_v21 = vld [vmem:[#allocation19 + $0x8] sm:$0xff]  ;;  %v1159_v23 = vld [vmem:[#allocation19] sm:$0xff]  ;;  %vm1085_vm3 = vcmask 130048  }
  0xd6   : > { %s5284_s27 = sshll.u32 %s7301_s30, 2  ;;  %v965_v7 = vunpack.c.0.s8 %v964_v4  ;;  %5439 = vmatpush3.msra.mxu0 %v1160_v21  ;;  %v1082_v22 = vld [vmem:[#allocation16] sm:$0xff]  ;;  %v1032_v24 = vld [vmem:[#allocation13] sm:$0x1]  ;;  %v1084_v33 = vld [vmem:[#allocation17] sm:$0x1] }
  0xd7   : > { %5440 = vmatprep.subr.mxu0 %v6266_v2  ;;  %v1233_v29 = vld [vmem:[%s7239_s18 + $0x8] sm:$0xff]  ;;  %v1232_v31 = vld [vmem:[%s7239_s18] sm:$0xff]  ;;  %vm1306_vm4 = vcmask 8192   ;;  %vm1320_vm5 = vcmask 1040384   ;;  %vm1316_vm6 = vcmask 7168   ;;  %s7295_s6 = sld [smem:[#allocation35_spill]] }
  0xd8   : > { %v6611_v9 = vsub.s32 %v965_v7, %v6599_v5  ;;  %5441 = vmatpush3.msra.mxu0 %v1159_v23  ;;  %v1161_v34 = vld [vmem:[#allocation20] sm:$0x1]  ;;  %v1234_v41 = vld [vmem:[%s7240_s19] sm:$0x1]  ;;  %v6269_v59 = vmov 0   ;;  %s1394_s0 = sld [smem:[#allocation22]] }
  0xd9   : > { %v5112_v0 = vld.sshfl [vmem:[%s7293_s4] sm:$0x11 pattern:$0x75316420]  ;;  %5452 = vmatprep.subr.mxu0 %v6266_v2  ;;  %v1450_v60 = vsel %vm1320_vm5, 65535, %v6269_v59  ;;  %s5687_s9 = smul.u32 96, %s7301_s30 }
  0xda   : > { %v962_v6 = vcombine.high %v5112_v0, %v5112_v0  ;;  %s6605_s2 = scalar_lea.vmem %s7294_s8, %s5284_s27  ;;  %v969_v12 = vrot.slane %v5112_v0, %v6611_v9  ;;  %v1514_v51 = vld [vmem:[%s7233_s12] sm:$0x3]  ;;  %v1515_v7 = vld [vmem:[#allocation14] sm:$0x1]  ;;  %s5131_s30 = sld [smem:[#allocation22 + $0x1]]  ;;  %vm2230_vm7 = vcmask 15360  }
  0xdb   : > { %v6608_v8 = vld.sshfl [vmem:[%s6605_s2] sm:$0x33 pattern:$0x76325410]  ;;  %v1517_v54 = vsel %vm1037_vm0, %v1514_v51, 0  ;;  %s6708_s3 = scalar_lea.vmem %s7246_s25, %s5687_s9  ;;  %s7296_s1 = sld [smem:[#allocation42_spill]] }
  0xdc   : > { %v6615_v10 = vcombine.high %v6608_v8, %v6608_v8  ;;  %v976_v11 = vrot.slane %v962_v6, %v6611_v9  ;;  %v1398_v0 = vld [vmem:[%s7241_s20] sm:$0xff]  ;;  %vm2322_vm8 = vcmask 1043456   ;;  %vm2307_vm9 = vcmask 27648   ;;  %s5178_s23 = sld [smem:[#allocation22 + $0x81]] }
  0xdd   : > { %v5120_v55 = vld.sshfl [vmem:[%s7295_s6] sm:$0x11 pattern:$0x75316420]  ;;  %v1401_v4 = vrot.slane %v1398_v0, 4  ;;  %s7297_s6 = sld [smem:[#allocation43_spill]] }
  0xde   : > { %1004 = vmatprep.subr.bf16.mxu1 %v6615_v10  ;;  %1022 = vmatprep.mubr.bf16.mxu1 %v976_v11  ;;  %v1431_v56 = vcombine.high %v5120_v55, %v5120_v55  ;;  %v1438_v58 = vrot.slane %v5120_v55, %v6611_v9  ;;  %v1395_v63 = vstv %s1394_s0  ;;  %s7298_s26 = sld [smem:[#allocation40_spill]] }
  0xdf   : > { %1005 = vmatpush1.bf16.xpose.msra.mxu1 %v6608_v8  ;;  %s5255_s27 = sld [smem:[#allocation22 + $0x101]] }
  0xe0   : > { %5425 = vmatprep.subr.bf16.mxu1 %v6266_v2  ;;  %v1445_v57 = vrot.slane %v1431_v56, %v6611_v9  ;;  %v1452_v62 = vand.u32 %v1450_v60, %v1438_v58  ;;  %v5135_v56 = vld.sshfl [vmem:[#allocation5] sm:$0x33 pattern:$0x76325410] }
  0xe1   : > { %v1883_v58 = vcombine.high %v5135_v56, %v5135_v56 }
  0xe2   : > { %v1455_v61 = vand.u32 %v1450_v60, %v1445_v57  ;;  %v1785_v60 = vstv %s5131_s30  ;;  %s5152_s30 = sld [smem:[#allocation22 + $0x80]] }
  0xe6   : > { %1023 = vmatmul.mubr.bf16.vlgmr.msra.gmra.mxu1 %v969_v12  ;;  %v1399_v12 = vld [vmem:[%s7242_s21] sm:$0x1] }
  0xe7   : > { %5426 = vmatpush3.bf16.msra.mxu1 %v1039_v14  ;;  %5427 = vmatprep.mubr.msk.bf16.mxu1 %vm6268_vm1, %v6266_v2 }
  0xe8   : > { %5431 = vmatprep.subr.mxu1 %v6266_v2 }
 0x1a6   : > { %v1024_v15 = vpop.f32.mrf.mxu1 }
 0x1a7   : > { %v6631_v16 = vpack.c.bf16 %v1024_v15, %v1024_v15 }
 0x1a8   : > { %v1026_v17 = vpop.f32.mrf.mxu1 }
 0x1a9   : > { %5428 = vmatmul.mubr.msk.bf16.vlgmr.msra.gmra.mxu1 %vm1033_vm2, %v6631_v16 }
 0x1aa   : > { %v1027_v18 = vpop.f32.mrf.mxu1  ;;  %5435 = vmatprep.mubr.msk.f32.mxu1 %vm6268_vm1, %v6266_v2  ;;  %5432 = vmatpush3.msra.mxu1 %v1083_v20 }
 0x1ab   : > { %5433 = vmatprep.subr.mxu1 %v6266_v2 }
 0x1ac   : > { %v1028_v19 = vpop.f32.mrf.mxu1  ;;  %5434 = vmatpush3.msra.mxu1 %v1082_v22 }
 0x1ad   : > { %5445 = vmatprep.subr.mxu1 %v6266_v2 }
 0x269   : > { %v1075_v25 = vpop.f32.mrf.mxu1 }
 0x26a   : > { %v1076_v26 = vadd.f32 %v1075_v25, %v1032_v24 }
 0x26b   : > { %v5429_v27 = vpop.f32.mrf.mxu1 }
 0x26c   : > { %v6641_v28 = vmax.f32 %v1076_v26, 0.0 }
 0x26d   : > { %v1078_v30 = vpop.f32.mrf.mxu1 }
 0x26e   : > { %5436 = vmatmul.mubr.msk.f32.vlgmr.msra.gmra.mxu1 %vm1085_vm3, %v6641_v28  ;;  %5443 = vmatmul.mubr.msk.f32.vlgmr.msra.gmra.mxu0 %vm1085_vm3, %v6641_v28 }
 0x26f   : > { %v5430_v32 = vpop.f32.mrf.mxu1  ;;  %5446 = vmatpush3.msra.mxu1 %v1233_v29  ;;  %5449 = vmatprep.mubr.msk.f32.mxu1 %vm6268_vm1, %v6266_v2 }
 0x270   : > { %5447 = vmatprep.subr.mxu1 %v6266_v2  ;;  %5454 = vmatprep.mubr.msk.f32.mxu0 %vm6268_vm1, %v6266_v2 }
 0x271   : > { %5448 = vmatpush3.msra.mxu1 %v1232_v31 }
 0x272   : > { %5450 = vmatmul.mubr.msk.f32.vlgmr.msra.gmra.mxu1 %vm1085_vm3, %v6641_v28  ;;  %1471 = vmatprep.subr.bf16.mxu1 %v1455_v61 }
 0x273   : > { %1489 = vmatprep.mubr.bf16.mxu1 %v6269_v59  ;;  %1472 = vmatpush1.bf16.msra.mxu1 %v1452_v62 }
 0x32e   : > { %v1155_v35 = vpop.f32.mrf.mxu1  ;;  %v1228_v36 = vpop.f32.mrf.mxu0 }
 0x32f   : > { %v1156_v37 = vadd.f32 %v1155_v35, %v1084_v33  ;;  %v1229_v38 = vadd.f32 %v1228_v36, %v1161_v34 }
 0x330   : > { %v5437_v39 = vpop.f32.mrf.mxu1  ;;  %v5444_v40 = vpop.f32.mrf.mxu0 }
 0x331   : > { %v1305_v42 = vmul.f32 %v1229_v38, %v1156_v37 }
 0x332   : > { %v1301_v43 = vpop.f32.mrf.mxu1 }
 0x333   : > { %v1302_v44 = vadd.f32 %v1301_v43, %v1234_v41  ;;  %v1307_v45 = vsel %vm1306_vm4, %v1305_v42, 0.0 }
 0x334   : > { %1308 = vadd.xlane.f32.xlu0 %v1307_v45  ;;  %v5451_v46 = vpop.f32.mrf.mxu1 }
 0x335   : > { %5453 = vmatpush3.msk.msra.mxu0 %vm1320_vm5, %v1302_v44 }
 0x336   : > { %5457 = vmatprep.subr.bf16.mxu0 %v6266_v2 }
 0x3bd   : > { %v1309_v47 = vpop.xlane.xlu0 %1308 }
 0x3be   : > { %v1310_v48 = vsub.f32 %v1309_v47, %v1309_v47 }
 0x3c0   : > { %v1311_v49 = vmul.f32 1.442695, %v1310_v48 }
 0x3c2   : > { %5841 = vpow2.f32 %v1311_v49 }
 0x3cf   : > { %v5842_v50 = vpop.eup %5841 }
 0x3d0   : > { %5843 = vrcp.f32 %v5842_v50 }
 0x3dd   : > { %v5844_v52 = vpop.eup %5843 }
 0x3de   : > { %v1315_v53 = vmul.f32 %v5844_v52, %v5842_v50 }
 0x3e0   : > { %5455 = vmatmul.mubr.msk.f32.vlgmr.msra.gmra.mxu0 %vm1316_vm6, %v1315_v53 }
 0x3e1   : > { %5458 = vmatpush3.bf16.msra.mxu0 %v1517_v54  ;;  %5459 = vmatprep.mubr.msk.bf16.mxu0 %vm6268_vm1, %v6266_v2 }
 0x3e2   : > { %5468 = vmatprep.subr.mxu0 %v6266_v2 }
 0x3e4   : > { %5460 = vmatmul.mubr.msk.bf16.vlgmr.msra.gmra.mxu0 %vm1033_vm2, %v6631_v16 }
 0x3e5   : > { %5472 = vmatprep.mubr.msk.f32.mxu0 %vm6268_vm1, %v6266_v2 }
 0x4a0   : > { %v1390_v1 = vpop.f32.mrf.mxu0 }
 0x4a1   : > { %v1396_v3 = vmul.f32 %v1395_v63, %v1390_v1 }
 0x4a2   : > { %v5456_v6 = vpop.f32.mrf.mxu0 }
 0x4a3   : > { %v1397_v9 = vadd.f32 %v1396_v3, %v6641_v28 }
 0x4a4   : > { %v1553_v11 = vpop.f32.mrf.mxu0 }
 0x4a5   : > { %v1554_v13 = vadd.f32 %v1553_v11, %v1515_v7  ;;  %v1403_v14 = vmul.f32 %v1401_v4, %v1397_v9 }
 0x4a6   : > { %v5461_v15 = vpop.f32.mrf.mxu0 }
 0x4a7   : > { %v6692_v16 = vmax.f32 %v1554_v13, 0.0  ;;  %v1404_v17 = vadd.f32 %v1403_v14, %v1399_v12  ;;  %v5136_v15 = vld [vmem:[%s7231_s10 + $0x2] sm:$0x3] }
 0x4a8   : > { %v1556_v18 = vpop.f32.mrf.mxu0 }
 0x4a9   : > { %1560 = vxpose.xlu1.b32.start.end [1/1] (short) (narrow) %v6692_v16, 16  ;;  %5463 = vmatprep.subr.msk.mxu1 %vm1320_vm5, %v6692_v16  ;;  %v1405_v19 = vmax.f32 %v1404_v17, 0.0  ;;  %v1941_v17 = vsel %vm1037_vm0, %v5136_v15, 0  ;;  %v5153_v15 = vld [vmem:[%s7241_s20 + $0x10] sm:$0xff] }
 0x4aa   : > { %v5462_v20 = vpop.f32.mrf.mxu0 }
 0x4ab   : > { %v1406_v21 = vpack.c.bf16 %v1405_v19, %v1405_v19  ;;  %v1986_v19 = vld [vmem:[#allocation16 + $0x18] sm:$0xff]  ;;  %v2070_v20 = vld [vmem:[#allocation19 + $0x18] sm:$0xff] }
 0x4ad   : > { %1407 = vxpose.xlu0.c.b16.start.end [1/1] (short) (narrow) %v1406_v21, 16  ;;  %v1985_v21 = vld [vmem:[#allocation16 + $0x10] sm:$0xff] }
 0x50f   : > { %v1415_v22 = vpop.trf.xlu0 }
 0x510   : > { %5121 = vmatmul.mubr.msk.bf16.vlgmr.msra.gmra.mxu1 %vm1316_vm6, %v1415_v22  ;;  %v2069_v22 = vld [vmem:[#allocation19 + $0x10] sm:$0xff] }
 0x511   : > { %5464 = vmatpush3.msk.msra.mxu1 %vm1320_vm5, %v6692_v16 }
 0x512   : > { %1830 = vmatprep.subr.bf16.mxu1 %v1455_v61  ;;  %v1788_v61 = vld [vmem:[%s7296_s1] sm:$0xff] }
 0x513   : > { %v1791_v0 = vrot.slane %v1788_v61, 4 }
 0x525   : > { %v1576_v23 = vpop.trf.xlu1 }
 0x526   : > { %5465 = vmatprep.mubr.msk.f32.mxu1 %vm1316_vm6, %v1576_v23 }
 0x529   : > { %v1577_v24 = vpop.trf.xlu1 }
 0x52a   : > { %5466 = vmatmul.mubr.msk.f32.vlgmr.msra.gmra.mxu1 %vm1316_vm6, %v1577_v24 }
 0x52b   : > { %1831 = vmatpush1.bf16.msra.mxu1 %v1452_v62  ;;  %1848 = vmatprep.mubr.bf16.mxu1 %v6269_v59 }
 0x52c   : > { %5475 = vmatprep.subr.bf16.mxu1 %v6266_v2 }
 0x5d0   : > { %v1491_v25 = vpop.f32.mrf.mxu1 }
 0x5d2   : > { %v1493_v26 = vpop.f32.mrf.mxu1 }
 0x5d3   : > { %v5285_v27 = vpack.c.bf16 %v1493_v26, %v1491_v25 }
 0x5d4   : > { %v1495_v28 = vpop.f32.mrf.mxu1 }
 0x5d5   : > { %1512 = vst [vmem:[%s6708_s3] sm:$0xff] %v5285_v27 }
 0x5d6   : > { %v1497_v29 = vpop.f32.mrf.mxu1 }
 0x5d7   : > { %v5286_v30 = vpack.c.bf16 %v1497_v29, %v1495_v28  ;;  %v5137_v28 = vld [vmem:[#allocation13 + $0x1] ss:$0 sm:$0xff] }
 0x5d9   : > { %1513 = vst [vmem:[%s6708_s3 + $0x8] sm:$0xff] %v5286_v30 }
 0x5ea   : > { %v5467_v31 = vpop.f32.mrf.mxu1 }
 0x5eb   : > { %v1679_v32 = vsel %vm1085_vm3, %v5467_v31, -inf }
 0x5ec   : > { %1680 = vmax.xlane.f32.xlu1 %v1679_v32  ;;  %v1667_v33 = vpop.f32.mrf.mxu1 }
 0x5ed   : > { %v1676_v34 = vsel %vm1085_vm3, %v1667_v33, -inf }
 0x5f0   : > { %1677 = vmax.xlane.f32.xlu1 %v1676_v34  ;;  %v5144_v34 = vld [vmem:[%s7239_s18 + $0x18] sm:$0xff] }
 0x675   : > { %v1681_v35 = vpop.xlane.xlu1 %1680 }
 0x676   : > { %v1683_v36 = vsub.f32 %v1681_v35, %v5467_v31 }
 0x678   : > { %v1687_v37 = vsel %vm1085_vm3, %v1683_v36, -inf }
 0x679   : > { %1688 = vmax.xlane.f32.xlu0 %v1687_v37  ;;  %v1678_v38 = vpop.xlane.xlu1 %1677 }
 0x67a   : > { %v1682_v39 = vsub.f32 %v1678_v38, %v1667_v33  ;;  %v5141_v38 = vld [vmem:[#allocation20 + $0x1] ss:$0 sm:$0xff] }
 0x67c   : > { %v1684_v40 = vsel %vm1085_vm3, %v1682_v39, -inf }
 0x67d   : > { %1685 = vmax.xlane.f32.xlu1 %v1684_v40 }
 0x702   : > { %v1689_v41 = vpop.xlane.xlu0 %1688 }
 0x703   : > { %v1691_v42 = vsub.f32 %v1683_v36, %v1689_v41  ;;  %v5143_v36 = vld [vmem:[%s7239_s18 + $0x10] sm:$0xff]  ;;  %v5139_v41 = vld [vmem:[#allocation17 + $0x1] ss:$0 sm:$0xff] }
 0x705   : > { %v1694_v43 = vmul.f32 1.442695, %v1691_v42 }
 0x706   : > { %v1686_v44 = vpop.xlane.xlu1 %1685 }
 0x707   : > { %5845 = vpow2.f32 %v1694_v43  ;;  %v1690_v45 = vsub.f32 %v1682_v39, %v1686_v44 }
 0x709   : > { %v1692_v46 = vmul.f32 1.442695, %v1690_v45  ;;  %v5146_v45 = vld [vmem:[%s7240_s19 + $0x1] ss:$0 sm:$0xff] }
 0x70b   : > { %5847 = vpow2.f32 %v1692_v46 }
 0x714   : > { %v5846_v47 = vpop.eup %5845 }
 0x715   : > { %v1699_v48 = vsel %vm1085_vm3, %v5846_v47, 0.0 }
 0x716   : > { %1700 = vadd.xlane.f32.xlu1 %v1699_v48 }
 0x718   : > { %v5848_v49 = vpop.eup %5847 }
 0x719   : > { %v1696_v50 = vsel %vm1085_vm3, %v5848_v49, 0.0 }
 0x71a   : > { %1697 = vadd.xlane.f32.xlu1 %v1696_v50 }
 0x79f   : > { %v1701_v51 = vpop.xlane.xlu1 %1700 }
 0x7a0   : > { %5849 = vrcp.f32 %v1701_v51 }
 0x7a3   : > { %v1698_v52 = vpop.xlane.xlu1 %1697 }
 0x7a4   : > { %5851 = vrcp.f32 %v1698_v52 }
 0x7ad   : > { %v5850_v53 = vpop.eup %5849 }
 0x7ae   : > { %v1705_v54 = vmul.f32 %v5850_v53, %v5846_v47 }
 0x7b0   : > { %5469 = vmatpush3.xpose.msk.msra.mxu0 %vm1085_vm3, %v1705_v54 }
 0x7b1   : > { %v5852_v55 = vpop.eup %5851  ;;  %5470 = vmatprep.subr.mxu0 %v6266_v2 }
 0x7b2   : > { %v1704_v57 = vmul.f32 %v5852_v55, %v5848_v49 }
 0x7b4   : > { %5471 = vmatpush3.xpose.msk.msra.mxu0 %vm1085_vm3, %v1704_v57 }
 0x7b5   : > { %1900 = vmatprep.subr.bf16.mxu0 %v6615_v10 }
 0x7b7   : > { %5473 = vmatmul.mubr.msk.f32.vlgmr.msra.gmra.mxu0 %vm1085_vm3, %v6692_v16 }
 0x7b8   : > { %1901 = vmatpush1.bf16.xpose.msra.mxu0 %v6608_v8  ;;  %1918 = vmatprep.mubr.bf16.mxu0 %v1883_v58  ;;  %v1789_v8 = vld [vmem:[%s7297_s6] sm:$0x1] }
 0x7b9   : > { %5481 = vmatprep.subr.mxu0 %v6266_v2 }
 0x7bf   : > { %1919 = vmatmul.mubr.bf16.vlgmr.msra.gmra.mxu0 %v5135_v56 }
 0x7c0   : > { %5485 = vmatprep.mubr.msk.f32.mxu0 %vm6268_vm1, %v6266_v2  ;;  %5482 = vmatpush3.msra.mxu0 %v1986_v19  ;;  %v6832_v19 = vsub.s32 2, %v6599_v5 }
 0x7c1   : > { %5483 = vmatprep.subr.mxu0 %v6266_v2 }
 0x7c2   : > { %5484 = vmatpush3.msra.mxu0 %v1985_v21 }
 0x7c3   : > { %5495 = vmatprep.subr.mxu0 %v6266_v2 }
 0x877   : > { %v1780_v62 = vpop.f32.mrf.mxu0 }
 0x878   : > { %v1786_v63 = vmul.f32 %v1785_v60, %v1780_v62  ;;  %v2397_v62 = vstv %s5152_s30  ;;  %s5217_s30 = sld [smem:[#allocation22 + $0x100]] }
 0x879   : > { %v5474_v1 = vpop.f32.mrf.mxu0 }
 0x87a   : > { %v1787_v3 = vadd.f32 %v1786_v63, %v6692_v16 }
 0x87c   : > { %v1793_v4 = vmul.f32 %v1791_v0, %v1787_v3 }
 0x87e   : > { %v1794_v6 = vadd.f32 %v1793_v4, %v1789_v8  ;;  %v6783_v8 = vld [vmem:[#allocation7] sm:$0xff]  ;;  %v6791_v4 = vld [vmem:[#allocation7 + $0x8] sm:$0xff] }
 0x87f   : > { %v1920_v7 = vpop.f32.mrf.mxu0 }
 0x880   : > { %v1795_v9 = vmax.f32 %v1794_v6, 0.0  ;;  %v6743_v18 = vpack.c.bf16 %v1920_v7, %v1920_v7  ;;  %v6797_v6 = vld [vmem:[#allocation7 + $0x10] sm:$0xff]  ;;  %v6803_v7 = vld [vmem:[#allocation7 + $0x18] sm:$0xff] }
 0x881   : > { %v1922_v11 = vpop.f32.mrf.mxu0 }
 0x882   : > { %v1796_v12 = vpack.c.bf16 %v1795_v9, %v1795_v9  ;;  %v2409_v9 = vld [vmem:[#allocation7 + $0x20] sm:$0xf]  ;;  %v5164_v11 = vld.sshfl [vmem:[#allocation8] sm:$0x33 pattern:$0x76325410] }
 0x883   : > { %v1923_v13 = vpop.f32.mrf.mxu0 }
 0x884   : > { %1797 = vxpose.xlu0.c.b16.start.end [1/1] (short) (narrow) %v1796_v12, 16  ;;  %v6812_v12 = vcombine.high %v5164_v11, %v5164_v11  ;;  %v6815_v13 = vsel %vm1037_vm0, %v5164_v11, 0  ;;  %v5169_v11 = vld [vmem:[%s7233_s12 + $0x2] sm:$0x3] }
 0x885   : > { %v1924_v14 = vpop.f32.mrf.mxu0 }
 0x886   : > { %v6822_v14 = vsub.s32 1, %v6599_v5 }
 0x8e6   : > { %v1805_v16 = vpop.trf.xlu0 }
 0x8e7   : > { %5132 = vmatmul.mubr.msk.bf16.vlgmr.msra.gmra.mxu1 %vm1316_vm6, %v1805_v16  ;;  %v2527_v16 = vrot.slane %v5153_v15, %v6822_v14 }
 0x8e8   : > { %5476 = vmatpush3.bf16.msra.mxu1 %v1941_v17  ;;  %5477 = vmatprep.mubr.msk.bf16.mxu1 %vm6268_vm1, %v6266_v2  ;;  %v6828_v17 = vsub.s32 0, %v6599_v5 }
 0x8e9   : > { %5488 = vmatprep.subr.mxu1 %v6266_v2 }
 0x8ea   : > { %v2521_v21 = vrot.slane %v5153_v15, %v6828_v17 }
 0x8ef   : > { %5478 = vmatmul.mubr.msk.bf16.vlgmr.msra.gmra.mxu1 %vm1033_vm2, %v6743_v18 }
 0x8f0   : > { %5492 = vmatprep.mubr.msk.f32.mxu1 %vm6268_vm1, %v6266_v2  ;;  %5489 = vmatpush3.msra.mxu1 %v2070_v20  ;;  %v6835_v20 = vsub.s32 3, %v6599_v5 }
 0x8f1   : > { %5490 = vmatprep.subr.mxu1 %v6266_v2 }
 0x8f2   : > { %5491 = vmatpush3.msra.mxu1 %v2069_v22 }
 0x8f3   : > { %5502 = vmatprep.subr.mxu1 %v6266_v2 }
 0x9a7   : > { %v1850_v23 = vpop.f32.mrf.mxu1 }
 0x9a9   : > { %v1852_v24 = vpop.f32.mrf.mxu1 }
 0x9aa   : > { %v5287_v25 = vpack.c.bf16 %v1852_v24, %v1850_v23  ;;  %v6839_v23 = vsub.s32 4, %v6599_v5  ;;  %v6842_v24 = vsub.s32 5, %v6599_v5 }
 0x9ab   : > { %v1854_v26 = vpop.f32.mrf.mxu1 }
 0x9ac   : > { %1871 = vst [vmem:[%s6708_s3 + $0x10] sm:$0xff] %v5287_v25 }
 0x9ad   : > { %v1856_v27 = vpop.f32.mrf.mxu1 }
 0x9ae   : > { %v5288_v29 = vpack.c.bf16 %v1856_v27, %v1854_v26  ;;  %v2536_v26 = vrot.slane %v5153_v15, %v6832_v19  ;;  %v2542_v27 = vrot.slane %v5153_v15, %v6835_v20 }
 0x9af   : > { %v1977_v30 = vpop.f32.mrf.mxu1 }
 0x9b0   : > { %1872 = vst [vmem:[%s6708_s3 + $0x18] sm:$0xff] %v5288_v29  ;;  %v1978_v31 = vadd.f32 %v5137_v28, %v1977_v30 }
 0x9b1   : > { %v5479_v32 = vpop.f32.mrf.mxu1 }
 0x9b2   : > { %v1983_v33 = vmax.f32 %v1978_v31, 0.0  ;;  %v2551_v32 = vrot.slane %v5153_v15, %v6839_v23 }
 0x9b3   : > { %v1980_v35 = vpop.f32.mrf.mxu1 }
 0x9b4   : > { %5486 = vmatmul.mubr.msk.f32.vlgmr.msra.gmra.mxu0 %vm1085_vm3, %v1983_v33  ;;  %5493 = vmatmul.mubr.msk.f32.vlgmr.msra.gmra.mxu1 %vm1085_vm3, %v1983_v33 }
 0x9b5   : > { %v5480_v37 = vpop.f32.mrf.mxu1  ;;  %5496 = vmatpush3.msra.mxu0 %v5144_v34  ;;  %5499 = vmatprep.mubr.msk.f32.mxu0 %vm6268_vm1, %v6266_v2  ;;  %v6849_v34 = vsub.s32 6, %v6599_v5 }
 0x9b6   : > { %5497 = vmatprep.subr.mxu0 %v6266_v2  ;;  %5504 = vmatprep.mubr.msk.f32.mxu1 %vm6268_vm1, %v6266_v2 }
 0x9b7   : > { %5498 = vmatpush3.msra.mxu0 %v5143_v36 }
 0x9b8   : > { %5500 = vmatmul.mubr.msk.f32.vlgmr.msra.gmra.mxu0 %vm1085_vm3, %v1983_v33  ;;  %5507 = vmatprep.subr.mxu0 %v6266_v2 }
 0x9b9   : > { %5509 = vmatprep.mubr.msk.f32.mxu0 %vm6268_vm1, %v6266_v2 }
 0xa74   : > { %v2064_v39 = vpop.f32.mrf.mxu0  ;;  %v2145_v40 = vpop.f32.mrf.mxu1 }
 0xa75   : > { %v2146_v42 = vadd.f32 %v5141_v38, %v2145_v40  ;;  %v2065_v46 = vadd.f32 %v5139_v41, %v2064_v39  ;;  %v6852_v38 = vsub.s32 7, %v6599_v5 }
 0xa76   : > { %v5487_v43 = vpop.f32.mrf.mxu0  ;;  %v5494_v44 = vpop.f32.mrf.mxu1 }
 0xa77   : > { %5503 = vmatpush3.xpose.msk.msra.mxu1 %vm2230_vm7, %v2146_v42  ;;  %v2566_v43 = vrot.slane %v5153_v15, %v6849_v34 }
 0xa78   : > { %v2226_v47 = vpop.f32.mrf.mxu0  ;;  %5512 = vmatprep.subr.mxu1 %v6266_v2 }
 0xa79   : > { %v2227_v48 = vadd.f32 %v5146_v45, %v2226_v47  ;;  %v2572_v47 = vrot.slane %v5153_v15, %v6852_v38 }
 0xa7a   : > { %v5501_v49 = vpop.f32.mrf.mxu0  ;;  %5505 = vmatmul.mubr.msk.f32.vlgmr.msra.gmra.mxu1 %vm2230_vm7, %v2065_v46 }
 0xa7b   : > { %5508 = vmatpush3.msk.msra.mxu0 %vm2322_vm8, %v2227_v48  ;;  %5514 = vmatprep.mubr.msk.f32.mxu1 %vm6268_vm1, %v6266_v2 }
 0xa7c   : > { %5165 = vmatprep.subr.msk.bf16.mxu0 %vm1037_vm0, %v6812_v12 }
 0xb3a   : > { %v2303_v50 = vpop.f32.mrf.mxu1 }
 0xb3b   : > { %v2308_v51 = vsel %vm2307_vm9, %v2303_v50, -inf }
 0xb3c   : > { %2309 = vmax.xlane.f32.xlu1 %v2308_v51  ;;  %v5506_v52 = vpop.f32.mrf.mxu1 }
 0xbc5   : > { %v2310_v53 = vpop.xlane.xlu1 %2309 }
 0xbc6   : > { %v2311_v54 = vsub.f32 %v2303_v50, %v2310_v53 }
 0xbc8   : > { %v2312_v55 = vmul.f32 1.442695, %v2311_v54 }
 0xbca   : > { %5853 = vpow2.f32 %v2312_v55  ;;  %v5162_v55 = vld [vmem:[%s7241_s20 + $0x18] ss:$0 sm:$0xff] }
 0xbd7   : > { %v5854_v56 = vpop.eup %5853 }
 0xbd8   : > { %v2314_v57 = vsel %vm2307_vm9, %v5854_v56, 0.0 }
 0xbd9   : > { %2315 = vadd.xlane.f32.xlu1 %v2314_v57 }
 0xc62   : > { %v2316_v58 = vpop.xlane.xlu1 %2315 }
 0xc63   : > { %5855 = vrcp.f32 %v2316_v58 }
 0xc70   : > { %v5856_v60 = vpop.eup %5855 }
 0xc71   : > { %v2318_v61 = vmul.f32 %v5856_v60, %v5854_v56 }
 0xc73   : > { %5510 = vmatmul.mubr.msk.f32.vlgmr.msra.gmra.mxu0 %vm1033_vm2, %v2318_v61 }
 0xc74   : > { %2659 = vmatprep.mubr.bf16.mxu0 %v6269_v59  ;;  %2642 = vmatpush1.bf16.msra.mxu0 %v6815_v13 }
 0xc75   : > { %5529 = vmatprep.subr.bf16.mxu0 %v6266_v2 }
 0xd33   : > { %v2392_v63 = vpop.f32.mrf.mxu0 }
 0xd34   : > { %v2398_v0 = vmul.f32 %v2397_v62, %v2392_v63  ;;  %v5163_v62 = vld [vmem:[%s7242_s21 + $0x1] ss:$0 sm:$0xff] }
 0xd35   : > { %v5511_v1 = vpop.f32.mrf.mxu0 }
 0xd36   : > { %v2399_v3 = vadd.f32 %v2398_v0, %v1983_v33  ;;  %v2557_v33 = vrot.slane %v5153_v15, %v6842_v24  ;;  %v2695_v15 = vsel %vm1037_vm0, %v5169_v11, 0 }
 0xd38   : > { %5513 = vmatpush3.msk.msra.mxu1 %vm2322_vm8, %v2399_v3 }
 0xd39   : > { %5515 = vmatmul.mubr.msk.f32.vlgmr.msra.gmra.mxu1 %vm1033_vm2, %v6783_v8  ;;  %5540 = vmatprep.subr.mxu1 %v6266_v2 }
 0xd3a   : > { %5517 = vmatprep.mubr.msk.f32.mxu1 %vm6268_vm1, %v6266_v2 }
 0xd3d   : > { %5518 = vmatmul.mubr.msk.f32.gmra.mxu1 %vm1033_vm2, %v6791_v4 }
 0xd3e   : > { %5520 = vmatprep.mubr.msk.f32.mxu1 %vm6268_vm1, %v6266_v2 }
 0xd41   : > { %5521 = vmatmul.mubr.msk.f32.gmra.mxu1 %vm1033_vm2, %v6797_v6 }
 0xd42   : > { %5523 = vmatprep.mubr.msk.f32.mxu1 %vm6268_vm1, %v6266_v2 }
 0xd45   : > { %5524 = vmatmul.mubr.msk.f32.gmra.mxu1 %vm1033_vm2, %v6803_v7 }
 0xd46   : > { %5526 = vmatprep.mubr.msk.f32.mxu1 %vm6268_vm1, %v6266_v2 }
 0xd49   : > { %5527 = vmatmul.mubr.msk.f32.gmra.mxu1 %vm1033_vm2, %v2409_v9 }
 0xd4a   : > { %5544 = vmatprep.mubr.msk.f32.mxu1 %vm6268_vm1, %v6266_v2 }
 0xdf9   : > { %v2494_v22 = vpop.f32.mrf.mxu1 }
 0xdfa   : > { %v2528_v25 = vmul.f32 %v2527_v16, %v2494_v22  ;;  %v2522_v29 = vmul.f32 %v2521_v21, %v2494_v22 }
 0xdfb   : > { %v5516_v28 = vpop.f32.mrf.mxu1 }
 0xdfc   : > { %v2530_v30 = vrot.slane %v2528_v25, 4  ;;  %v5170_v28 = vld [vmem:[#allocation14 + $0x1] ss:$0 sm:$0xff] }
 0xdfd   : > { %v2499_v31 = vpop.f32.mrf.mxu1 }
 0xdfe   : > { %v2532_v35 = vadd.f32 %v2530_v30, %v2522_v29  ;;  %v2537_v36 = vmul.f32 %v2536_v26, %v2499_v31  ;;  %v2543_v37 = vmul.f32 %v2542_v27, %v2499_v31 }
 0xdff   : > { %v5519_v39 = vpop.f32.mrf.mxu1 }
 0xe00   : > { %v2538_v40 = vadd.f32 %v2537_v36, %v2532_v35  ;;  %v2545_v41 = vrot.slane %v2543_v37, 4 }
 0xe01   : > { %v2504_v42 = vpop.f32.mrf.mxu1 }
 0xe02   : > { %v2547_v44 = vadd.f32 %v2545_v41, %v2538_v40  ;;  %v2552_v45 = vmul.f32 %v2551_v32, %v2504_v42  ;;  %v2558_v46 = vmul.f32 %v2557_v33, %v2504_v42 }
 0xe03   : > { %v5522_v48 = vpop.f32.mrf.mxu1 }
 0xe04   : > { %v2553_v49 = vadd.f32 %v2552_v45, %v2547_v44  ;;  %v2560_v50 = vrot.slane %v2558_v46, 4 }
 0xe05   : > { %v2509_v51 = vpop.f32.mrf.mxu1 }
 0xe06   : > { %v2562_v52 = vadd.f32 %v2560_v50, %v2553_v49  ;;  %v2567_v53 = vmul.f32 %v2566_v43, %v2509_v51  ;;  %v2573_v54 = vmul.f32 %v2572_v47, %v2509_v51 }
 0xe07   : > { %v5525_v5 = vpop.f32.mrf.mxu1 }
 0xe08   : > { %v2568_v56 = vadd.f32 %v2567_v53, %v2562_v52  ;;  %v2575_v57 = vrot.slane %v2573_v54, 4 }
 0xe09   : > { %v2514_v58 = vpop.f32.mrf.mxu1 }
 0xe0a   : > { %v2577_v60 = vadd.f32 %v2575_v57, %v2568_v56  ;;  %v2582_v61 = vmul.f32 %v5162_v55, %v2514_v58 }
 0xe0b   : > { %v5528_v63 = vpop.f32.mrf.mxu1 }
 0xe0c   : > { %v2583_v0 = vadd.f32 %v2582_v61, %v2577_v60 }
 0xe0e   : > { %v2590_v1 = vadd.f32 %v5163_v62, %v2583_v0 }
 0xe10   : > { %v2591_v3 = vmax.f32 %v2590_v1, 0.0  ;;  %v2963_v1 = vstv %s5178_s23 }
 0xe12   : > { %v2592_v9 = vpack.c.bf16 %v2591_v3, %v2591_v3 }
 0xe14   : > { %2593 = vxpose.xlu1.c.b16.start.end [1/1] (short) (narrow) %v2592_v9, 16 }
 0xe76   : > { %v2601_v16 = vpop.trf.xlu1 }
 0xe77   : > { %5166 = vmatmul.mubr.msk.bf16.vlgmr.msra.gmra.mxu0 %vm1033_vm2, %v2601_v16 }
 0xe78   : > { %5530 = vmatpush3.bf16.msra.mxu0 %v2695_v15  ;;  %5531 = vmatprep.mubr.msk.bf16.mxu0 %vm6268_vm1, %v6266_v2 }
 0xe7f   : > { %5532 = vmatmul.mubr.msk.bf16.vlgmr.msra.gmra.mxu0 %vm1033_vm2, %v6743_v18 }
 0xf37   : > { %v2661_v21 = vpop.f32.mrf.mxu0 }
 0xf39   : > { %v2663_v22 = vpop.f32.mrf.mxu0 }
 0xf3a   : > { %v5289_v25 = vpack.c.bf16 %v2663_v22, %v2661_v21 }
 0xf3b   : > { %v2665_v26 = vpop.f32.mrf.mxu0 }
 0xf3c   : > { %2682 = vst [vmem:[%s6708_s3 + $0x20] sm:$0xff] %v5289_v25 }
 0xf3d   : > { %v2667_v27 = vpop.f32.mrf.mxu0 }
 0xf3e   : > { %v5290_v29 = vpack.c.bf16 %v2667_v27, %v2665_v26 }
 0xf3f   : > { %v2731_v30 = vpop.f32.mrf.mxu0 }
 0xf40   : > { %2683 = vst [vmem:[%s6708_s3 + $0x28] sm:$0xff] %v5290_v29  ;;  %v2732_v31 = vadd.f32 %v5170_v28, %v2731_v30 }
 0xf41   : > { %v5533_v32 = vpop.f32.mrf.mxu0 }
 0xf42   : > { %v2737_v33 = vmax.f32 %v2732_v31, 0.0 }
 0xf43   : > { %v2734_v35 = vpop.f32.mrf.mxu0 }
 0xf44   : > { %2738 = vxpose.xlu0.b32.start.end [1/1] (short) (narrow) %v2737_v33, 16  ;;  %5535 = vmatprep.subr.msk.mxu0 %vm2322_vm8, %v2737_v33 }
 0xf45   : > { %v5534_v36 = vpop.f32.mrf.mxu0  ;;  %5536 = vmatpush3.msk.msra.mxu0 %vm2322_vm8, %v2737_v33 }
 0xf46   : > { %5547 = vmatprep.subr.mxu0 %v6266_v2 }
 0xfc0   : > { %v2754_v18 = vpop.trf.xlu0 }
 0xfc1   : > { %5537 = vmatprep.mubr.msk.f32.mxu0 %vm1033_vm2, %v2754_v18 }
 0xfc4   : > { %v2755_v37 = vpop.trf.xlu0 }
 0xfc5   : > { %5538 = vmatmul.mubr.msk.f32.vlgmr.msra.gmra.mxu0 %vm1033_vm2, %v2755_v37 }
 0xfc6   : > { %5549 = vmatprep.mubr.msk.f32.mxu0 %vm6268_vm1, %v6266_v2 }
0x1085   : > { %v5539_v39 = vpop.f32.mrf.mxu0 }
0x1086   : > { %v2857_v40 = vsel %vm1085_vm3, %v5539_v39, -inf }
0x1087   : > { %2858 = vmax.xlane.f32.xlu0 %v2857_v40  ;;  %v2845_v41 = vpop.f32.mrf.mxu0 }
0x1088   : > { %v2854_v42 = vsel %vm1085_vm3, %v2845_v41, -inf }
0x1089   : > { %2855 = vmax.xlane.f32.xlu1 %v2854_v42 }
0x1110   : > { %v2859_v43 = vpop.xlane.xlu0 %2858 }
0x1111   : > { %v2861_v44 = vsub.f32 %v2859_v43, %v5539_v39 }
0x1112   : > { %v2856_v45 = vpop.xlane.xlu1 %2855 }
0x1113   : > { %v2860_v46 = vsub.f32 %v2856_v45, %v2845_v41  ;;  %v2865_v47 = vsel %vm1085_vm3, %v2861_v44, -inf }
0x1114   : > { %2866 = vmax.xlane.f32.xlu1 %v2865_v47 }
0x1115   : > { %v2862_v48 = vsel %vm1085_vm3, %v2860_v46, -inf }
0x1118   : > { %2863 = vmax.xlane.f32.xlu1 %v2862_v48 }
0x119d   : > { %v2867_v49 = vpop.xlane.xlu1 %2866 }
0x119e   : > { %v2869_v50 = vsub.f32 %v2861_v44, %v2867_v49 }
0x11a0   : > { %v2872_v51 = vmul.f32 1.442695, %v2869_v50  ;;  %v5188_v50 = vld [vmem:[%s7296_s1 + $0x18] ss:$0 sm:$0xff] }
0x11a1   : > { %v2864_v52 = vpop.xlane.xlu1 %2863 }
0x11a2   : > { %5857 = vpow2.f32 %v2872_v51  ;;  %v2868_v53 = vsub.f32 %v2860_v46, %v2864_v52 }
0x11a4   : > { %v2870_v54 = vmul.f32 1.442695, %v2868_v53 }
0x11a6   : > { %5859 = vpow2.f32 %v2870_v54 }
0x11af   : > { %v5858_v5 = vpop.eup %5857 }
0x11b0   : > { %v2877_v55 = vsel %vm1085_vm3, %v5858_v5, 0.0 }
0x11b1   : > { %2878 = vadd.xlane.f32.xlu1 %v2877_v55  ;;  %v5189_v55 = vld [vmem:[%s7297_s6 + $0x1] ss:$0 sm:$0xff] }
0x11b3   : > { %v5860_v56 = vpop.eup %5859 }
0x11b4   : > { %v2874_v57 = vsel %vm1085_vm3, %v5860_v56, 0.0 }
0x11b5   : > { %2875 = vadd.xlane.f32.xlu1 %v2874_v57 }
0x123a   : > { %v2879_v58 = vpop.xlane.xlu1 %2878 }
0x123b   : > { %5861 = vrcp.f32 %v2879_v58 }
0x123e   : > { %v2876_v60 = vpop.xlane.xlu1 %2875 }
0x123f   : > { %5863 = vrcp.f32 %v2876_v60 }
0x1248   : > { %v5862_v61 = vpop.eup %5861 }
0x1249   : > { %v2883_v62 = vmul.f32 %v5862_v61, %v5858_v5 }
0x124b   : > { %5541 = vmatpush3.xpose.msk.msra.mxu1 %vm1085_vm3, %v2883_v62  ;;  %v5837_v62 = vld [vmem:[#allocation10 + $0x4] ss:$8 sps:$4 sm:$0xff]  }
0x124c   : > { %v5864_v63 = vpop.eup %5863  ;;  %5542 = vmatprep.subr.mxu1 %v6266_v2 }
0x124d   : > { %v2882_v0 = vmul.f32 %v5864_v63, %v5860_v56 }
0x124f   : > { %5543 = vmatpush3.xpose.msk.msra.mxu1 %vm1085_vm3, %v2882_v0  ;;  %v5881_v0 = vld.sshfl [vmem:[%s6605_s2] sm:$0x33 pattern:$0x76325410] }
0x1250   : > { %5190 = vmatprep.subr.msk.bf16.mxu1 %vm1037_vm0, %v6812_v12 }
0x1252   : > { %5545 = vmatmul.mubr.msk.f32.vlgmr.msra.gmra.mxu1 %vm1085_vm3, %v2737_v33 }
0x1253   : > { %3193 = vmatpush1.bf16.msra.mxu1 %v6815_v13  ;;  %3210 = vmatprep.mubr.bf16.mxu1 %v6269_v59 }
0x1254   : > { %3263 = vmatprep.subr.bf16.mxu1 %v6615_v10  ;;  %v2975_v10 = vld [vmem:[#allocation7 + $0x20] sm:$0xf] }
0x1312   : > { %v2958_v3 = vpop.f32.mrf.mxu1 }
0x1313   : > { %v2964_v9 = vmul.f32 %v2963_v1, %v2958_v3  ;;  %v5835_v1 = vld [vmem:[#allocation10] ss:$8 sps:$4 sm:$0xff]   ;;  %v5196_v3 = vld [vmem:[%s7231_s10 + $0x4] sm:$0x3] }
0x1314   : > { %v5546_v11 = vpop.f32.mrf.mxu1 }
0x1315   : > { %v2965_v15 = vadd.f32 %v2964_v9, %v2737_v33  ;;  %v3305_v9 = vsel %vm1037_vm0, %v5196_v3, 0 }
0x1317   : > { %5548 = vmatpush3.msk.msra.mxu0 %vm2322_vm8, %v2965_v15 }
0x1318   : > { %5550 = vmatmul.mubr.msk.f32.vlgmr.msra.gmra.mxu0 %vm1033_vm2, %v6783_v8  ;;  %v5179_v8 = vld [vmem:[%s7296_s1 + $0x10] sm:$0xff] }
0x1319   : > { %5552 = vmatprep.mubr.msk.f32.mxu0 %vm6268_vm1, %v6266_v2  ;;  %v3102_v16 = vrot.slane %v5179_v8, %v6832_v19  ;;  %v3117_v27 = vrot.slane %v5179_v8, %v6839_v23  ;;  %v3123_v31 = vrot.slane %v5179_v8, %v6842_v24  ;;  %v3132_v18 = vrot.slane %v5179_v8, %v6849_v34 }
0x131a   : > { %v3138_v41 = vrot.slane %v5179_v8, %v6852_v38 }
0x131c   : > { %5553 = vmatmul.mubr.msk.f32.gmra.mxu0 %vm1033_vm2, %v6791_v4  ;;  %v3093_v4 = vrot.slane %v5179_v8, %v6822_v14 }
0x131d   : > { %5555 = vmatprep.mubr.msk.f32.mxu0 %vm6268_vm1, %v6266_v2 }
0x1320   : > { %5556 = vmatmul.mubr.msk.f32.gmra.mxu0 %vm1033_vm2, %v6797_v6  ;;  %v3087_v6 = vrot.slane %v5179_v8, %v6828_v17 }
0x1321   : > { %5558 = vmatprep.mubr.msk.f32.mxu0 %vm6268_vm1, %v6266_v2 }
0x1324   : > { %5559 = vmatmul.mubr.msk.f32.gmra.mxu0 %vm1033_vm2, %v6803_v7  ;;  %v3108_v7 = vrot.slane %v5179_v8, %v6835_v20 }
0x1325   : > { %5561 = vmatprep.mubr.msk.f32.mxu0 %vm6268_vm1, %v6266_v2 }
0x1328   : > { %5562 = vmatmul.mubr.msk.f32.gmra.mxu0 %vm1033_vm2, %v2975_v10 }
0x13d8   : > { %v3060_v12 = vpop.f32.mrf.mxu0 }
0x13d9   : > { %v3094_v13 = vmul.f32 %v3093_v4, %v3060_v12  ;;  %v3088_v22 = vmul.f32 %v3087_v6, %v3060_v12 }
0x13da   : > { %v5551_v21 = vpop.f32.mrf.mxu0 }
0x13db   : > { %v3096_v25 = vrot.slane %v3094_v13, 4 }
0x13dc   : > { %v3065_v26 = vpop.f32.mrf.mxu0 }
0x13dd   : > { %v3098_v28 = vadd.f32 %v3096_v25, %v3088_v22  ;;  %v3103_v29 = vmul.f32 %v3102_v16, %v3065_v26  ;;  %v3109_v30 = vmul.f32 %v3108_v7, %v3065_v26  ;;  %v3352_v22 = vld [vmem:[#allocation16 + $0x28] sm:$0xff]  ;;  %v5206_v25 = vld [vmem:[%s7239_s18 + $0x28] sm:$0xff] }
0x13de   : > { %v5554_v32 = vpop.f32.mrf.mxu0  ;;  %5570 = vmatprep.subr.mxu0 %v3352_v22  ;;  %v3351_v26 = vld [vmem:[#allocation16 + $0x20] sm:$0xff] }
0x13df   : > { %v3104_v33 = vadd.f32 %v3103_v29, %v3098_v28  ;;  %v3111_v35 = vrot.slane %v3109_v30, 4  ;;  %5571 = vmatpush3.msra.mxu0 %v3352_v22  ;;  %v3444_v28 = vld [vmem:[#allocation19 + $0x28] sm:$0xff]  ;;  %v5197_v29 = vld [vmem:[#allocation13 + $0x2] ss:$0 sm:$0xff] }
0x13e0   : > { %v3070_v36 = vpop.f32.mrf.mxu0  ;;  %5572 = vmatprep.subr.mxu0 %v3351_v26 }
0x13e1   : > { %v3113_v37 = vadd.f32 %v3111_v35, %v3104_v33  ;;  %v3118_v39 = vmul.f32 %v3117_v27, %v3070_v36  ;;  %v3124_v40 = vmul.f32 %v3123_v31, %v3070_v36  ;;  %v5205_v27 = vld [vmem:[%s7239_s18 + $0x20] sm:$0xff]  ;;  %5573 = vmatpush3.msra.mxu0 %v3351_v26 }
0x13e2   : > { %v5557_v42 = vpop.f32.mrf.mxu0  ;;  %5577 = vmatprep.subr.mxu0 %v3444_v28 }
0x13e3   : > { %v3119_v43 = vadd.f32 %v3118_v39, %v3113_v37  ;;  %v3126_v44 = vrot.slane %v3124_v40, 4  ;;  %v3443_v39 = vld [vmem:[#allocation19 + $0x20] sm:$0xff] }
0x13e4   : > { %v3075_v45 = vpop.f32.mrf.mxu0  ;;  %v5208_v40 = vld [vmem:[%s7240_s19 + $0x2] ss:$0 sm:$0xff] }
0x13e5   : > { %v3128_v46 = vadd.f32 %v3126_v44, %v3119_v43  ;;  %v3133_v47 = vmul.f32 %v3132_v18, %v3075_v45  ;;  %v3139_v48 = vmul.f32 %v3138_v41, %v3075_v45  ;;  %v5199_v44 = vld [vmem:[#allocation17 + $0x2] ss:$0 sm:$0xff] }
0x13e6   : > { %v5560_v49 = vpop.f32.mrf.mxu0 }
0x13e7   : > { %v3134_v51 = vadd.f32 %v3133_v47, %v3128_v46  ;;  %v3141_v52 = vrot.slane %v3139_v48, 4  ;;  %v5202_v47 = vld [vmem:[#allocation20 + $0x2] ss:$0 sm:$0xff] }
0x13e8   : > { %v3080_v53 = vpop.f32.mrf.mxu0 }
0x13e9   : > { %v3143_v54 = vadd.f32 %v3141_v52, %v3134_v51  ;;  %v3148_v5 = vmul.f32 %v5188_v50, %v3080_v53 }
0x13ea   : > { %v5563_v56 = vpop.f32.mrf.mxu0 }
0x13eb   : > { %v3149_v57 = vadd.f32 %v3148_v5, %v3143_v54 }
0x13ed   : > { %v3156_v58 = vadd.f32 %v5189_v55, %v3149_v57 }
0x13ef   : > { %v3157_v60 = vmax.f32 %v3156_v58, 0.0 }
0x13f1   : > { %v3158_v61 = vpack.c.bf16 %v3157_v60, %v3157_v60 }
0x13f3   : > { %3159 = vxpose.xlu1.c.b16.start.end [1/1] (short) (narrow) %v3158_v61, 16 }
0x1455   : > { %v3167_v63 = vpop.trf.xlu1 }
0x1456   : > { %5191 = vmatmul.mubr.msk.bf16.vlgmr.msra.gmra.mxu1 %vm1033_vm2, %v3167_v63 }
0x1457   : > { %3264 = vmatpush1.bf16.xpose.msra.mxu1 %v5881_v0  ;;  %3281 = vmatprep.mubr.bf16.mxu1 %v5837_v62 }
0x1458   : > { %5564 = vmatprep.subr.bf16.mxu1 %v6266_v2 }
0x145e   : > { %3282 = vmatmul.mubr.bf16.vlgmr.msra.gmra.mxu1 %v5835_v1 }
0x145f   : > { %5566 = vmatprep.mubr.msk.bf16.mxu1 %vm6268_vm1, %v6266_v2  ;;  %5565 = vmatpush3.bf16.msra.mxu1 %v3305_v9 }
0x1460   : > { %5584 = vmatprep.subr.mxu1 %v5206_v25 }
0x1516   : > { %v3212_v11 = vpop.f32.mrf.mxu1 }
0x1518   : > { %v3214_v15 = vpop.f32.mrf.mxu1 }
0x1519   : > { %v5291_v10 = vpack.c.bf16 %v3214_v15, %v3212_v11 }
0x151a   : > { %v3216_v8 = vpop.f32.mrf.mxu1 }
0x151b   : > { %3233 = vst [vmem:[%s6708_s3 + $0x30] sm:$0xff] %v5291_v10 }
0x151c   : > { %v3218_v4 = vpop.f32.mrf.mxu1 }
0x151d   : > { %v5292_v6 = vpack.c.bf16 %v3218_v4, %v3216_v8 }
0x151e   : > { %v3283_v12 = vpop.f32.mrf.mxu1 }
0x151f   : > { %3234 = vst [vmem:[%s6708_s3 + $0x38] sm:$0xff] %v5292_v6 }
0x1520   : > { %v3285_v13 = vpop.f32.mrf.mxu1 }
0x1521   : > { %v6986_v13 = vld [vmem:[%s7298_s26] sm:$0xff] }
0x1522   : > { %v3286_v16 = vpop.f32.mrf.mxu1 }
0x1523   : > { %v6941_v7 = vpack.c.bf16 %v3286_v16, %v3283_v12  ;;  %v3805_v16 = vstv %s5217_s30 }
0x1524   : > { %v3288_v21 = vpop.f32.mrf.mxu1 }
0x1525   : > { %5567 = vmatmul.mubr.msk.bf16.vlgmr.msra.gmra.mxu1 %vm1033_vm2, %v6941_v7 }
0x1526   : > { %5585 = vmatpush3.msra.mxu1 %v5206_v25 }
0x1527   : > { %5586 = vmatprep.subr.mxu1 %v5205_v27 }
0x1528   : > { %5587 = vmatpush3.msra.mxu1 %v5205_v27 }
0x15e5   : > { %v3341_v30 = vpop.f32.mrf.mxu1 }
0x15e6   : > { %v3342_v31 = vadd.f32 %v5197_v29, %v3341_v30  ;;  %v7000_v30 = vld [vmem:[%s7298_s26 + $0x10] sm:$0xff] }
0x15e7   : > { %v5568_v32 = vpop.f32.mrf.mxu1 }
0x15e8   : > { %v6951_v33 = vmax.f32 %v3342_v31, 0.0  ;;  %v7009_v31 = vld [vmem:[%s7298_s26 + $0x18] sm:$0xff]  ;;  %v7014_v32 = vld [vmem:[%s7298_s26 + $0x20] sm:$0xff] }
0x15e9   : > { %v3344_v35 = vpop.f32.mrf.mxu1 }
0x15ea   : > { %v3345_v36 = vadd.f32 %v5197_v29, %v3344_v35  ;;  %5574 = vmatprep.mubr.msk.f32.mxu0 %vm1085_vm3, %v6951_v33  ;;  %5588 = vmatprep.mubr.msk.f32.mxu1 %vm1085_vm3, %v6951_v33  ;;  %v6995_v29 = vld [vmem:[%s7298_s26 + $0x8] sm:$0xff]  ;;  %v7028_v35 = vld [vmem:[%s7298_s26 + $0x30] sm:$0xff] }
0x15eb   : > { %v5569_v18 = vpop.f32.mrf.mxu1 }
0x15ec   : > { %v6957_v37 = vmax.f32 %v3345_v36, 0.0  ;;  %v7037_v36 = vld [vmem:[%s7298_s26 + $0x38] sm:$0xff]  ;;  %v7042_v18 = vld [vmem:[%s7298_s26 + $0x40] sm:$0xff] }
0x15ee   : > { %5575 = vmatmul.mubr.msk.f32.vlgmr.msra.gmra.mxu0 %vm1085_vm3, %v6957_v37  ;;  %5589 = vmatmul.mubr.msk.f32.vlgmr.msra.gmra.mxu1 %vm1085_vm3, %v6957_v37 }
0x15ef   : > { %5578 = vmatpush3.msra.mxu0 %v3444_v28  ;;  %5581 = vmatprep.mubr.msk.f32.mxu0 %vm1085_vm3, %v6951_v33 }
0x15f0   : > { %5579 = vmatprep.subr.mxu0 %v3443_v39 }
0x15f1   : > { %5580 = vmatpush3.msra.mxu0 %v3443_v39  ;;  %v7056_v39 = vld [vmem:[%s7298_s26 + $0x50] sm:$0xff] }
0x15f2   : > { %5582 = vmatmul.mubr.msk.f32.vlgmr.msra.gmra.mxu0 %vm1085_vm3, %v6957_v37 }
0x16ae   : > { %v5576_v41 = vpop.f32.mrf.mxu0  ;;  %v5590_v42 = vpop.f32.mrf.mxu1 }
0x16af   : > { %v3611_v43 = vadd.f32 %v5590_v42, %v5208_v40  ;;  %v3439_v54 = vadd.f32 %v5576_v41, %v5199_v44  ;;  %v7070_v41 = vld [vmem:[%s7298_s26 + $0x60] sm:$0xff]  ;;  %v7079_v42 = vld [vmem:[%s7298_s26 + $0x68] sm:$0xff] }
0x16b0   : > { %v3433_v45 = vpop.f32.mrf.mxu0  ;;  %v3605_v46 = vpop.f32.mrf.mxu1 }
0x16b1   : > { %v3434_v48 = vadd.f32 %v5199_v44, %v3433_v45  ;;  %v3606_v49 = vadd.f32 %v5208_v40, %v3605_v46  ;;  %5598 = vmatprep.subr.mxu1 %v3611_v43  ;;  %v7065_v40 = vld [vmem:[%s7298_s26 + $0x58] sm:$0xff]  ;;  %v7098_v45 = vld [vmem:[%s7298_s26 + $0x80] sm:$0xff]  ;;  %v7107_v46 = vld [vmem:[%s7298_s26 + $0x88] sm:$0xff] }
0x16b2   : > { %v5583_v50 = vpop.f32.mrf.mxu0  ;;  %5599 = vmatpush3.msra.mxu1 %v3611_v43  ;;  %v7084_v43 = vld [vmem:[%s7298_s26 + $0x70] sm:$0xff]  ;;  %v7093_v44 = vld [vmem:[%s7298_s26 + $0x78] sm:$0xff] }
0x16b3   : > { %v3525_v51 = vadd.f32 %v5583_v50, %v5202_v47  ;;  %5600 = vmatprep.subr.mxu1 %v3606_v49  ;;  %5595 = vmatprep.mubr.msk.f32.mxu0 %vm2230_vm7, %v3434_v48  ;;  %v5840_v48 = vld [vmem:[#allocation11 + $0x4] ss:$8 sps:$4 sm:$0xff]  }
0x16b4   : > { %v3519_v52 = vpop.f32.mrf.mxu0  ;;  %5601 = vmatpush3.msra.mxu1 %v3606_v49 }
0x16b5   : > { %v3520_v53 = vadd.f32 %v5202_v47, %v3519_v52  ;;  %5591 = vmatprep.subr.msk.mxu0 %vm2230_vm7, %v3525_v51  ;;  %v5838_v47 = vld [vmem:[#allocation11] ss:$8 sps:$4 sm:$0xff]  }
0x16b6   : > { %5592 = vmatpush3.xpose.msk.msra.mxu0 %vm2230_vm7, %v3525_v51 }
0x16b7   : > { %5593 = vmatprep.subr.msk.mxu0 %vm2230_vm7, %v3520_v53 }
0x16ba   : > { %5594 = vmatpush3.xpose.msk.msra.mxu0 %vm2230_vm7, %v3520_v53 }
0x16bb   : > { %4168 = vmatprep.subr.bf16.mxu0 %v5840_v48 }
0x16bd   : > { %5596 = vmatmul.mubr.msk.f32.vlgmr.msra.gmra.mxu0 %vm2230_vm7, %v3439_v54 }
0x16be   : > { %4186 = vmatprep.mubr.bf16.mxu0 %v6269_v59  ;;  %4169 = vmatpush1.bf16.msra.mxu0 %v5838_v47 }
0x16bf   : > { %5636 = vmatprep.subr.bf16.mxu0 %v6266_v2 }
0x177d   : > { %v5597_v5 = vpop.f32.mrf.mxu0 }
0x177e   : > { %v3704_v57 = vsel %vm1085_vm3, %v5597_v5, -inf }
0x177f   : > { %v3692_v55 = vpop.f32.mrf.mxu0 }
0x1780   : > { %v3701_v56 = vsel %vm1085_vm3, %v3692_v55, -inf }
0x1781   : > { %3702 = vmax.xlane.f32.xlu0 %v3701_v56 }
0x1785   : > { %3705 = vmax.xlane.f32.xlu0 %v3704_v57 }
0x180a   : > { %v3703_v58 = vpop.xlane.xlu0 %3702 }
0x180b   : > { %v3707_v60 = vsub.f32 %v3692_v55, %v3703_v58 }
0x180d   : > { %v3709_v61 = vmul.f32 1.442695, %v3707_v60 }
0x180e   : > { %v3706_v62 = vpop.xlane.xlu0 %3705 }
0x180f   : > { %5865 = vpow2.f32 %v3709_v61  ;;  %v3708_v63 = vsub.f32 %v5597_v5, %v3706_v62  ;;  %v5218_v5 = vld [vmem:[%s7241_s20 + $0x20] sm:$0xff] }
0x1810   : > { %v4045_v57 = vrot.slane %v5218_v5, %v6828_v17  ;;  %v4061_v58 = vrot.slane %v5218_v5, %v6832_v19  ;;  %v4069_v62 = vrot.slane %v5218_v5, %v6835_v20 }
0x1811   : > { %v3711_v0 = vmul.f32 1.442695, %v3708_v63 }
0x1813   : > { %5867 = vpow2.f32 %v3711_v0 }
0x181c   : > { %v5866_v1 = vpop.eup %5865 }
0x181d   : > { %v3713_v3 = vsel %vm1085_vm3, %v5866_v1, 0.0 }
0x181e   : > { %3714 = vadd.xlane.f32.xlu0 %v3713_v3 }
0x1820   : > { %v5868_v9 = vpop.eup %5867 }
0x1821   : > { %v3716_v11 = vsel %vm1085_vm3, %v5868_v9, 0.0 }
0x1822   : > { %3717 = vadd.xlane.f32.xlu0 %v3716_v11 }
0x18a7   : > { %v3715_v15 = vpop.xlane.xlu0 %3714 }
0x18a8   : > { %5869 = vrcp.f32 %v3715_v15  ;;  %v4085_v15 = vrot.slane %v5218_v5, %v6842_v24 }
0x18ab   : > { %v3718_v10 = vpop.xlane.xlu0 %3717 }
0x18ac   : > { %5871 = vrcp.f32 %v3718_v10 }
0x18b5   : > { %v5870_v8 = vpop.eup %5869 }
0x18b6   : > { %v3721_v4 = vmul.f32 %v5870_v8, %v5866_v1 }
0x18b8   : > { %5602 = vmatprep.mubr.msk.f32.mxu1 %vm1085_vm3, %v3721_v4 }
0x18b9   : > { %v5872_v6 = vpop.eup %5871 }
0x18ba   : > { %v3722_v12 = vmul.f32 %v5872_v6, %v5868_v9  ;;  %v4077_v9 = vrot.slane %v5218_v5, %v6839_v23 }
0x18bc   : > { %5603 = vmatmul.mubr.msk.f32.vlgmr.msra.gmra.mxu1 %vm1085_vm3, %v3722_v12 }
0x18bd   : > { %5609 = vmatprep.mubr.msk.f32.mxu1 %vm1085_vm3, %v6986_v13 }
0x197c   : > { %v5604_v21 = vpop.f32.mrf.mxu1 }
0x197d   : > { %v3807_v22 = vmul.f32 %v5604_v21, %v3805_v16 }
0x197e   : > { %v3795_v25 = vpop.f32.mrf.mxu1 }
0x197f   : > { %v3809_v26 = vadd.f32 %v3807_v22, %v6957_v37  ;;  %v3806_v27 = vmul.f32 %v3805_v16, %v3795_v25  ;;  %v7051_v37 = vld [vmem:[%s7298_s26 + $0x48] sm:$0xff]  ;;  %v4093_v16 = vrot.slane %v5218_v5, %v6849_v34 }
0x1981   : > { %v3808_v28 = vadd.f32 %v3806_v27, %v6951_v33  ;;  %5605 = vmatprep.subr.mxu1 %v3809_v26  ;;  %v7023_v33 = vld [vmem:[%s7298_s26 + $0x28] sm:$0xff] }
0x1982   : > { %5606 = vmatpush3.msra.mxu1 %v3809_v26 }
0x1983   : > { %5607 = vmatprep.subr.mxu1 %v3808_v28 }
0x1984   : > { %5608 = vmatpush3.msra.mxu1 %v3808_v28  ;;  %v4101_v28 = vrot.slane %v5218_v5, %v6852_v38 }
0x1985   : > { %5610 = vmatmul.mubr.msk.f32.vlgmr.msra.gmra.mxu1 %vm1085_vm3, %v6995_v29  ;;  %4851 = vmatprep.subr.bf16.mxu1 %v5840_v48 }
0x1986   : > { %5612 = vmatprep.mubr.msk.f32.mxu1 %vm1085_vm3, %v7000_v30  ;;  %4852 = vmatpush1.bf16.msra.mxu1 %v5838_v47 }
0x1989   : > { %5613 = vmatmul.mubr.msk.f32.gmra.mxu1 %vm1085_vm3, %v7009_v31 }
0x198a   : > { %5615 = vmatprep.mubr.msk.f32.mxu1 %vm1085_vm3, %v7014_v32 }
0x198d   : > { %5616 = vmatmul.mubr.msk.f32.gmra.mxu1 %vm1085_vm3, %v7023_v33 }
0x198e   : > { %5618 = vmatprep.mubr.msk.f32.mxu1 %vm1085_vm3, %v7028_v35 }
0x1991   : > { %5619 = vmatmul.mubr.msk.f32.gmra.mxu1 %vm1085_vm3, %v7037_v36 }
0x1992   : > { %5621 = vmatprep.mubr.msk.f32.mxu1 %vm1085_vm3, %v7042_v18 }
0x1995   : > { %5622 = vmatmul.mubr.msk.f32.gmra.mxu1 %vm1085_vm3, %v7051_v37 }
0x1996   : > { %5624 = vmatprep.mubr.msk.f32.mxu1 %vm1085_vm3, %v7056_v39 }
0x1999   : > { %5625 = vmatmul.mubr.msk.f32.gmra.mxu1 %vm1085_vm3, %v7065_v40 }
0x199a   : > { %5627 = vmatprep.mubr.msk.f32.mxu1 %vm1085_vm3, %v7070_v41 }
0x199d   : > { %5628 = vmatmul.mubr.msk.f32.gmra.mxu1 %vm1085_vm3, %v7079_v42 }
0x199e   : > { %5630 = vmatprep.mubr.msk.f32.mxu1 %vm1085_vm3, %v7084_v43 }
0x19a1   : > { %5631 = vmatmul.mubr.msk.f32.gmra.mxu1 %vm1085_vm3, %v7093_v44 }
0x19a2   : > { %5633 = vmatprep.mubr.msk.f32.mxu1 %vm1085_vm3, %v7098_v45 }
0x19a5   : > { %5634 = vmatmul.mubr.msk.f32.gmra.mxu1 %vm1085_vm3, %v7107_v46 }
0x19a6   : > { %4869 = vmatprep.mubr.bf16.mxu1 %v6269_v59  ;;  %v4053_v59 = vrot.slane %v5218_v5, %v6822_v14 }
0x1a45   : > { %v5611_v49 = vpop.f32.mrf.mxu1 }
0x1a46   : > { %v4047_v0 = vmul.f32 %v5611_v49, %v4045_v57 }
0x1a47   : > { %v3953_v50 = vpop.f32.mrf.mxu1 }
0x1a48   : > { %v4046_v10 = vmul.f32 %v4045_v57, %v3953_v50 }
0x1a49   : > { %v5614_v51 = vpop.f32.mrf.mxu1 }
0x1a4a   : > { %v4055_v61 = vmul.f32 %v5614_v51, %v4053_v59 }
0x1a4b   : > { %v3963_v52 = vpop.f32.mrf.mxu1 }
0x1a4c   : > { %v4054_v1 = vmul.f32 %v4053_v59, %v3963_v52  ;;  %v4057_v8 = vadd.f32 %v4055_v61, %v4047_v0 }
0x1a4d   : > { %v5617_v53 = vpop.f32.mrf.mxu1 }
0x1a4e   : > { %v4063_v3 = vmul.f32 %v5617_v53, %v4061_v58  ;;  %v4056_v21 = vadd.f32 %v4054_v1, %v4046_v10 }
0x1a4f   : > { %v3973_v54 = vpop.f32.mrf.mxu1 }
0x1a50   : > { %v4062_v4 = vmul.f32 %v4061_v58, %v3973_v54  ;;  %v4065_v22 = vadd.f32 %v4063_v3, %v4057_v8 }
0x1a51   : > { %v5620_v55 = vpop.f32.mrf.mxu1 }
0x1a52   : > { %v4071_v6 = vmul.f32 %v5620_v55, %v4069_v62  ;;  %v4064_v47 = vadd.f32 %v4062_v4, %v4056_v21 }
0x1a53   : > { %v3983_v56 = vpop.f32.mrf.mxu1 }
0x1a54   : > { %v4070_v25 = vmul.f32 %v4069_v62, %v3983_v56  ;;  %v4073_v48 = vadd.f32 %v4071_v6, %v4065_v22  ;;  %v5239_v56 = vld [vmem:[%s7241_s20 + $0x28] ss:$0 sm:$0xff] }
0x1a55   : > { %v5623_v60 = vpop.f32.mrf.mxu1 }
0x1a56   : > { %v4079_v26 = vmul.f32 %v5623_v60, %v4077_v9  ;;  %v4072_v53 = vadd.f32 %v4070_v25, %v4064_v47 }
0x1a57   : > { %v3993_v63 = vpop.f32.mrf.mxu1 }
0x1a58   : > { %v4078_v49 = vmul.f32 %v4077_v9, %v3993_v63  ;;  %v4081_v50 = vadd.f32 %v4079_v26, %v4073_v48 }
0x1a59   : > { %v5626_v11 = vpop.f32.mrf.mxu1 }
0x1a5a   : > { %v4087_v51 = vmul.f32 %v5626_v11, %v4085_v15  ;;  %v4080_v57 = vadd.f32 %v4078_v49, %v4072_v53 }
0x1a5b   : > { %v4003_v12 = vpop.f32.mrf.mxu1 }
0x1a5c   : > { %v4086_v59 = vmul.f32 %v4085_v15, %v4003_v12  ;;  %v4089_v58 = vadd.f32 %v4087_v51, %v4081_v50  ;;  %v5240_v15 = vld [vmem:[%s7242_s21 + $0x2] ss:$0 sm:$0xff]  ;;  %v5247_v50 = vld [vmem:[#allocation14 + $0x2] ss:$0 sm:$0xff] }
0x1a5d   : > { %v5629_v27 = vpop.f32.mrf.mxu1 }
0x1a5e   : > { %v4095_v54 = vmul.f32 %v5629_v27, %v4093_v16  ;;  %v4088_v5 = vadd.f32 %v4086_v59, %v4080_v57  ;;  %v5246_v27 = vld [vmem:[%s7233_s12 + $0x4] sm:$0x3] }
0x1a5f   : > { %v4013_v52 = vpop.f32.mrf.mxu1 }
0x1a60   : > { %v4094_v61 = vmul.f32 %v4093_v16, %v4013_v52  ;;  %v4097_v60 = vadd.f32 %v4095_v54, %v4089_v58 }
0x1a61   : > { %v5632_v55 = vpop.f32.mrf.mxu1 }
0x1a62   : > { %v4103_v0 = vmul.f32 %v5632_v55, %v4101_v28  ;;  %v4096_v3 = vadd.f32 %v4094_v61, %v4088_v5 }
0x1a63   : > { %v4023_v1 = vpop.f32.mrf.mxu1 }
0x1a64   : > { %v4102_v62 = vmul.f32 %v4101_v28, %v4023_v1  ;;  %v4105_v9 = vadd.f32 %v4103_v0, %v4097_v60  ;;  %v4222_v28 = vsel %vm1037_vm0, %v5246_v27, 0 }
0x1a65   : > { %v5635_v63 = vpop.f32.mrf.mxu1 }
0x1a66   : > { %v4111_v11 = vmul.f32 %v5635_v63, %v5239_v56  ;;  %v4104_v8 = vadd.f32 %v4102_v62, %v4096_v3 }
0x1a67   : > { %v4033_v10 = vpop.f32.mrf.mxu1 }
0x1a68   : > { %v4113_v4 = vadd.f32 %v4111_v11, %v4105_v9  ;;  %v4110_v6 = vmul.f32 %v5239_v56, %v4033_v10 }
0x1a6a   : > { %v4121_v12 = vadd.f32 %v5240_v15, %v4113_v4  ;;  %v4112_v16 = vadd.f32 %v4110_v6, %v4104_v8 }
0x1a6c   : > { %v4120_v21 = vadd.f32 %v5240_v15, %v4112_v16  ;;  %v4123_v22 = vmax.f32 %v4121_v12, 0.0 }
0x1a6e   : > { %v4122_v25 = vmax.f32 %v4120_v21, 0.0 }
0x1a70   : > { %v4124_v26 = vpack.c.bf16 %v4123_v22, %v4122_v25 }
0x1a72   : > { %4125 = vxpose.xlu0.c.b16.start.end [1/1] (short) (narrow) %v4124_v26, 16 }
0x1ad4   : > { %v4133_v47 = vpop.trf.xlu0 }
0x1ad5   : > { %5243 = vmatmul.mubr.msk.bf16.vlgmr.msra.gmra.mxu0 %vm1085_vm3, %v4133_v47 }
0x1ad6   : > { %5637 = vmatpush3.bf16.msra.mxu0 %v4222_v28  ;;  %5638 = vmatprep.mubr.msk.bf16.mxu0 %vm6268_vm1, %v6266_v2 }
0x1add   : > { %5639 = vmatmul.mubr.msk.bf16.vlgmr.msra.gmra.mxu0 %vm1033_vm2, %v6941_v7 }
0x1b95   : > { %v4188_v48 = vpop.f32.mrf.mxu0 }
0x1b97   : > { %v4190_v49 = vpop.f32.mrf.mxu0 }
0x1b98   : > { %v5293_v51 = vpack.c.bf16 %v4190_v49, %v4188_v48 }
0x1b99   : > { %v4192_v52 = vpop.f32.mrf.mxu0 }
0x1b9a   : > { %4209 = vst [vmem:[%s6708_s3 + $0x40] sm:$0xff] %v5293_v51 }
0x1b9b   : > { %v4194_v53 = vpop.f32.mrf.mxu0 }
0x1b9c   : > { %v5294_v59 = vpack.c.bf16 %v4194_v53, %v4192_v52 }
0x1b9d   : > { %v4258_v54 = vpop.f32.mrf.mxu0 }
0x1b9e   : > { %4210 = vst [vmem:[%s6708_s3 + $0x48] sm:$0xff] %v5294_v59  ;;  %v4259_v55 = vadd.f32 %v5247_v50, %v4258_v54 }
0x1b9f   : > { %v5640_v57 = vpop.f32.mrf.mxu0 }
0x1ba0   : > { %v7141_v58 = vmax.f32 %v4259_v55, 0.0 }
0x1ba1   : > { %v4261_v61 = vpop.f32.mrf.mxu0 }
0x1ba2   : > { %v4262_v0 = vadd.f32 %v5247_v50, %v4261_v61  ;;  %4267 = vxpose.xlu1.b32.start [1/2] (short) (narrow) %v7141_v58, 16  ;;  %v4498_v50 = vstv %s5255_s27 }
0x1ba3   : > { %v5641_v2 = vpop.f32.mrf.mxu0 }
0x1ba4   : > { %v4266_v7 = vmax.f32 %v4262_v0, 0.0 }
0x1ba6   : > { %4268 = vxpose.xlu1.b32.end [2/2] (short) (narrow) %v4266_v7, 16  ;;  %5642 = vmatprep.subr.mxu0 %v4266_v7 }
0x1ba7   : > { %5643 = vmatpush3.msra.mxu0 %v4266_v7 }
0x1ba8   : > { %5644 = vmatprep.subr.mxu0 %v7141_v58 }
0x1ba9   : > { %5645 = vmatpush3.msra.mxu0 %v7141_v58 }
0x1c1e   : > { %v4283_v1 = vpop.trf.xlu1 }
0x1c1f   : > { %5646 = vmatprep.mubr.msk.f32.mxu0 %vm1085_vm3, %v4283_v1 }
0x1c22   : > { %v4284_v56 = vpop.trf.xlu1 }
0x1c23   : > { %5647 = vmatmul.mubr.msk.f32.vlgmr.msra.gmra.mxu0 %vm1085_vm3, %v4284_v56 }
0x1c24   : > { %5653 = vmatprep.mubr.msk.f32.mxu0 %vm1085_vm3, %v7141_v58 }
0x1ce3   : > { %v5648_v5 = vpop.f32.mrf.mxu0 }
0x1ce4   : > { %v4383_v60 = vsel %vm1085_vm3, %v5648_v5, -inf }
0x1ce5   : > { %4384 = vmax.xlane.f32.xlu1 %v4383_v60  ;;  %v4371_v62 = vpop.f32.mrf.mxu0 }
0x1ce6   : > { %v4380_v63 = vsel %vm1085_vm3, %v4371_v62, -inf }
0x1ce7   : > { %4381 = vmax.xlane.f32.xlu0 %v4380_v63 }
0x1d6e   : > { %v4385_v3 = vpop.xlane.xlu1 %4384 }
0x1d6f   : > { %v4387_v9 = vsub.f32 %v4385_v3, %v5648_v5 }
0x1d70   : > { %v4382_v11 = vpop.xlane.xlu0 %4381 }
0x1d71   : > { %v4386_v15 = vsub.f32 %v4382_v11, %v4371_v62  ;;  %v4391_v10 = vsel %vm1085_vm3, %v4387_v9, -inf }
0x1d72   : > { %4392 = vmax.xlane.f32.xlu0 %v4391_v10 }
0x1d73   : > { %v4388_v8 = vsel %vm1085_vm3, %v4386_v15, -inf }
0x1d76   : > { %4389 = vmax.xlane.f32.xlu0 %v4388_v8 }
0x1dfb   : > { %v4393_v4 = vpop.xlane.xlu0 %4392 }
0x1dfc   : > { %v4395_v6 = vsub.f32 %v4387_v9, %v4393_v4 }
0x1dfe   : > { %v4398_v12 = vmul.f32 1.442695, %v4395_v6 }
0x1dff   : > { %v4390_v16 = vpop.xlane.xlu0 %4389 }
0x1e00   : > { %5873 = vpow2.f32 %v4398_v12  ;;  %v4394_v21 = vsub.f32 %v4386_v15, %v4390_v16 }
0x1e02   : > { %v4396_v22 = vmul.f32 1.442695, %v4394_v21 }
0x1e04   : > { %5875 = vpow2.f32 %v4396_v22 }
0x1e0d   : > { %v5874_v25 = vpop.eup %5873 }
0x1e0e   : > { %v4403_v26 = vsel %vm1085_vm3, %v5874_v25, 0.0 }
0x1e0f   : > { %4404 = vadd.xlane.f32.xlu0 %v4403_v26 }
0x1e11   : > { %v5876_v27 = vpop.eup %5875 }
0x1e12   : > { %v4400_v28 = vsel %vm1085_vm3, %v5876_v27, 0.0 }
0x1e13   : > { %4401 = vadd.xlane.f32.xlu1 %v4400_v28  ;;  %v5277_v28 = vld [vmem:[%s7296_s1 + $0x28] ss:$0 sm:$0xff] }
0x1e98   : > { %v4405_v47 = vpop.xlane.xlu0 %4404 }
0x1e99   : > { %5877 = vrcp.f32 %v4405_v47 }
0x1e9c   : > { %v4402_v48 = vpop.xlane.xlu1 %4401 }
0x1e9d   : > { %5879 = vrcp.f32 %v4402_v48 }
0x1ea6   : > { %v5878_v49 = vpop.eup %5877 }
0x1ea7   : > { %v4409_v51 = vmul.f32 %v5878_v49, %v5874_v25 }
0x1ea9   : > { %5649 = vmatprep.subr.msk.mxu0 %vm1085_vm3, %v4409_v51 }
0x1eaa   : > { %v5880_v52 = vpop.eup %5879  ;;  %5650 = vmatpush3.xpose.msk.msra.mxu0 %vm1085_vm3, %v4409_v51 }
0x1eab   : > { %v4408_v53 = vmul.f32 %v5880_v52, %v5876_v27 }
0x1ead   : > { %5651 = vmatprep.subr.msk.mxu0 %vm1085_vm3, %v4408_v53 }
0x1eae   : > { %5652 = vmatpush3.xpose.msk.msra.mxu0 %vm1085_vm3, %v4408_v53 }
0x1eb1   : > { %5654 = vmatmul.mubr.msk.f32.vlgmr.msra.gmra.mxu0 %vm1085_vm3, %v4266_v7 }
0x1eb2   : > { %5660 = vmatprep.mubr.msk.f32.mxu0 %vm1085_vm3, %v6986_v13 }
0x1f71   : > { %v5655_v59 = vpop.f32.mrf.mxu0 }
0x1f72   : > { %v4500_v54 = vmul.f32 %v5655_v59, %v4498_v50 }
0x1f73   : > { %v4488_v55 = vpop.f32.mrf.mxu0 }
0x1f74   : > { %v4502_v57 = vadd.f32 %v4500_v54, %v4266_v7  ;;  %v4499_v61 = vmul.f32 %v4498_v50, %v4488_v55  ;;  %v5278_v50 = vld [vmem:[%s7297_s6 + $0x2] ss:$0 sm:$0xff] }
0x1f76   : > { %v4501_v0 = vadd.f32 %v4499_v61, %v7141_v58  ;;  %5656 = vmatprep.subr.mxu0 %v4502_v57 }
0x1f77   : > { %5657 = vmatpush3.msra.mxu0 %v4502_v57 }
0x1f78   : > { %5658 = vmatprep.subr.mxu0 %v4501_v0 }
0x1f79   : > { %5659 = vmatpush3.msra.mxu0 %v4501_v0 }
0x1f7a   : > { %5661 = vmatmul.mubr.msk.f32.vlgmr.msra.gmra.mxu0 %vm1085_vm3, %v6995_v29 }
0x1f7b   : > { %5663 = vmatprep.mubr.msk.f32.mxu0 %vm1085_vm3, %v7000_v30 }
0x1f7e   : > { %5664 = vmatmul.mubr.msk.f32.gmra.mxu0 %vm1085_vm3, %v7009_v31 }
0x1f7f   : > { %5666 = vmatprep.mubr.msk.f32.mxu0 %vm1085_vm3, %v7014_v32 }
0x1f82   : > { %5667 = vmatmul.mubr.msk.f32.gmra.mxu0 %vm1085_vm3, %v7023_v33 }
0x1f83   : > { %5669 = vmatprep.mubr.msk.f32.mxu0 %vm1085_vm3, %v7028_v35  ;;  %v5256_v35 = vld [vmem:[%s7296_s1 + $0x20] sm:$0xff] }
0x1f84   : > { %v4770_v2 = vrot.slane %v5256_v35, %v6839_v23  ;;  %v4778_v1 = vrot.slane %v5256_v35, %v6842_v24  ;;  %v4794_v11 = vrot.slane %v5256_v35, %v6852_v38 }
0x1f86   : > { %5670 = vmatmul.mubr.msk.f32.gmra.mxu0 %vm1085_vm3, %v7037_v36 }
0x1f87   : > { %5672 = vmatprep.mubr.msk.f32.mxu0 %vm1085_vm3, %v7042_v18  ;;  %v4746_v18 = vrot.slane %v5256_v35, %v6822_v14 }
0x1f8a   : > { %5673 = vmatmul.mubr.msk.f32.gmra.mxu0 %vm1085_vm3, %v7051_v37 }
0x1f8b   : > { %5675 = vmatprep.mubr.msk.f32.mxu0 %vm1085_vm3, %v7056_v39  ;;  %v4738_v39 = vrot.slane %v5256_v35, %v6828_v17 }
0x1f8e   : > { %5676 = vmatmul.mubr.msk.f32.gmra.mxu0 %vm1085_vm3, %v7065_v40  ;;  %v4754_v40 = vrot.slane %v5256_v35, %v6832_v19  ;;  %v4786_v19 = vrot.slane %v5256_v35, %v6849_v34 }
0x1f8f   : > { %5678 = vmatprep.mubr.msk.f32.mxu0 %vm1085_vm3, %v7070_v41 }
0x1f92   : > { %5679 = vmatmul.mubr.msk.f32.gmra.mxu0 %vm1085_vm3, %v7079_v42 }
0x1f93   : > { %5681 = vmatprep.mubr.msk.f32.mxu0 %vm1085_vm3, %v7084_v43  ;;  %v4762_v43 = vrot.slane %v5256_v35, %v6835_v20 }
0x1f96   : > { %5682 = vmatmul.mubr.msk.f32.gmra.mxu0 %vm1085_vm3, %v7093_v44 }
0x1f97   : > { %5684 = vmatprep.mubr.msk.f32.mxu0 %vm1085_vm3, %v7098_v45 }
0x1f9a   : > { %5685 = vmatmul.mubr.msk.f32.gmra.mxu0 %vm1085_vm3, %v7107_v46 }
0x203a   : > { %v5662_v13 = vpop.f32.mrf.mxu0 }
0x203b   : > { %v4740_v45 = vmul.f32 %v5662_v13, %v4738_v39 }
0x203c   : > { %v4646_v29 = vpop.f32.mrf.mxu0 }
0x203d   : > { %v4739_v56 = vmul.f32 %v4738_v39, %v4646_v29 }
0x203e   : > { %v5665_v30 = vpop.f32.mrf.mxu0 }
0x203f   : > { %v4748_v42 = vmul.f32 %v5665_v30, %v4746_v18 }
0x2040   : > { %v4656_v31 = vpop.f32.mrf.mxu0 }
0x2041   : > { %v4747_v46 = vmul.f32 %v4746_v18, %v4656_v31  ;;  %v4750_v14 = vadd.f32 %v4748_v42, %v4740_v45 }
0x2042   : > { %v5668_v32 = vpop.f32.mrf.mxu0 }
0x2043   : > { %v4756_v58 = vmul.f32 %v5668_v32, %v4754_v40  ;;  %v4749_v62 = vadd.f32 %v4747_v46, %v4739_v56 }
0x2044   : > { %v4666_v33 = vpop.f32.mrf.mxu0 }
0x2045   : > { %v4755_v5 = vmul.f32 %v4754_v40, %v4666_v33  ;;  %v4758_v63 = vadd.f32 %v4756_v58, %v4750_v14 }
0x2046   : > { %v5671_v36 = vpop.f32.mrf.mxu0 }
0x2047   : > { %v4764_v60 = vmul.f32 %v5671_v36, %v4762_v43  ;;  %v4757_v15 = vadd.f32 %v4755_v5, %v4749_v62 }
0x2048   : > { %v4676_v37 = vpop.f32.mrf.mxu0 }
0x2049   : > { %v4763_v3 = vmul.f32 %v4762_v43, %v4676_v37  ;;  %v4766_v10 = vadd.f32 %v4764_v60, %v4758_v63 }
0x204a   : > { %v5674_v41 = vpop.f32.mrf.mxu0 }
0x204b   : > { %v4772_v20 = vmul.f32 %v5674_v41, %v4770_v2  ;;  %v4765_v24 = vadd.f32 %v4763_v3, %v4757_v15 }
0x204c   : > { %v4686_v44 = vpop.f32.mrf.mxu0 }
0x204d   : > { %v4771_v23 = vmul.f32 %v4770_v2, %v4686_v44  ;;  %v4774_v6 = vadd.f32 %v4772_v20, %v4766_v10 }
0x204e   : > { %v5677_v7 = vpop.f32.mrf.mxu0 }
0x204f   : > { %v4780_v8 = vmul.f32 %v5677_v7, %v4778_v1  ;;  %v4773_v22 = vadd.f32 %v4771_v23, %v4765_v24 }
0x2050   : > { %v4696_v17 = vpop.f32.mrf.mxu0 }
0x2051   : > { %v4779_v12 = vmul.f32 %v4778_v1, %v4696_v17  ;;  %v4782_v25 = vadd.f32 %v4780_v8, %v4774_v6 }
0x2052   : > { %v5680_v9 = vpop.f32.mrf.mxu0 }
0x2053   : > { %v4788_v16 = vmul.f32 %v5680_v9, %v4786_v19  ;;  %v4781_v38 = vadd.f32 %v4779_v12, %v4773_v22 }
0x2054   : > { %v4706_v4 = vpop.f32.mrf.mxu0 }
0x2055   : > { %v4787_v34 = vmul.f32 %v4786_v19, %v4706_v4  ;;  %v4790_v47 = vadd.f32 %v4788_v16, %v4782_v25 }
0x2056   : > { %v5683_v21 = vpop.f32.mrf.mxu0 }
0x2057   : > { %v4796_v26 = vmul.f32 %v5683_v21, %v4794_v11  ;;  %v4789_v51 = vadd.f32 %v4787_v34, %v4781_v38 }
0x2058   : > { %v4716_v27 = vpop.f32.mrf.mxu0 }
0x2059   : > { %v4795_v48 = vmul.f32 %v4794_v11, %v4716_v27  ;;  %v4798_v52 = vadd.f32 %v4796_v26, %v4790_v47 }
0x205a   : > { %v5686_v49 = vpop.f32.mrf.mxu0 }
0x205b   : > { %v4804_v53 = vmul.f32 %v5686_v49, %v5277_v28  ;;  %v4797_v54 = vadd.f32 %v4795_v48, %v4789_v51 }
0x205c   : > { %v4726_v59 = vpop.f32.mrf.mxu0 }
0x205d   : > { %v4806_v55 = vadd.f32 %v4804_v53, %v4798_v52  ;;  %v4803_v57 = vmul.f32 %v5277_v28, %v4726_v59 }
0x205f   : > { %v4814_v61 = vadd.f32 %v5278_v50, %v4806_v55  ;;  %v4805_v0 = vadd.f32 %v4803_v57, %v4797_v54 }
0x2061   : > { %v4813_v13 = vadd.f32 %v5278_v50, %v4805_v0  ;;  %v4816_v29 = vmax.f32 %v4814_v61, 0.0 }
0x2063   : > { %v4815_v30 = vmax.f32 %v4813_v13, 0.0 }
0x2065   : > { %v4817_v31 = vpack.c.bf16 %v4816_v29, %v4815_v30 }
0x2067   : > { %4818 = vxpose.xlu0.c.b16.start.end [1/1] (short) (narrow) %v4817_v31, 16 }
0x20c9   : > { %v4826_v32 = vpop.trf.xlu0 }
0x20ca   : > { %5279 = vmatmul.mubr.msk.bf16.vlgmr.msra.gmra.mxu1 %vm1085_vm3, %v4826_v32 }
0x218a   : > { %v4871_v33 = vpop.f32.mrf.mxu1 }
0x218c   : > { %v4873_v35 = vpop.f32.mrf.mxu1 }
0x218d   : > { %v5295_v36 = vpack.c.bf16 %v4873_v35, %v4871_v33 }
0x218e   : > { %v4875_v18 = vpop.f32.mrf.mxu1 }
0x218f   : > { %4892 = vst [vmem:[%s6708_s3 + $0x50] sm:$0xff] %v5295_v36 }
0x2190   : > { %v4877_v37 = vpop.f32.mrf.mxu1 }
0x2191   : > { %v5296_v39 = vpack.c.bf16 %v4877_v37, %v4875_v18 }
0x2193   : > { %4893 = vst [vmem:[%s6708_s3 + $0x58] sm:$0xff] %v5296_v39 }
0x2194 PF: > { %s7299_s9 = sld [smem:[#allocation31_spill]] }
0x219a   : > { %s43_s29 = sadd.s32 1, %s7299_s9  }
0x219b   : > { %p40_p1 = scmp.ge.s32.totalorder %s43_s29, 4  }
0x219d   :  { %42 = sbr.rel (!%p40_p1) target bundleno = 21 (0x15), region = 232 }
0x21a2   :  { %4915 = vsyncpa [#allocation3], 1 }
0x21a3   :  { %4917 = vsyncpa [#allocation3 + $0x1], 1 }
0x21a4   :  { %4918 = vsyncpa [#allocation6], 1 }
0x21a5   :  { %4919 = vsyncpa [#allocation9], 1 }
0x21a6   :  { %4920 = vsyncpa [#allocation12], 1 }
0x21a7   :  { %4921 = vsyncpa [#allocation15], 1 }
0x21a8   :  { %4922 = vsyncpa [#allocation18], 1 }
0x21a9   :  { %4923 = vsyncpa [#allocation21], 1 }
0x21aa   :  { %4924 = vsyncpa [#allocation4], 1 }
0x21ab   :  { %4926 = vsyncpa [#allocation4 + $0x1], 1 }

</bundles_post_ra>
